<compile_context>
chip_gen: v7x
topology: tpu7x:2x2x1
jax: 0.10.0
libtpu: 0.0.40
codegen_flags: <defaults>
</compile_context>

<pallas_src>
import functools

import numpy as np

import jax
import jax.numpy as jnp
from jax import lax
from jax.experimental import pallas as pl
from jax.experimental.pallas import tpu as pltpu


# ---------------------------------------------------------------------------
# Pallas kernels
# ---------------------------------------------------------------------------
def _conv1x1_lrelu_kernel(x_ref, w_ref, b_ref, o_ref):
    # x: (1, Cin, tm)  w: (Cout, Cin)  b: (Cout, 1) f32  ->  o: (1, Cout, tm)
    # Operands arrive already in the compute dtype (bf16 or f32); f32 accum.
    y = jnp.dot(w_ref[...], x_ref[0], preferred_element_type=jnp.float32)
    y = y + b_ref[...]                                   # lane-broadcast bias
    o_ref[0] = jnp.where(y > 0, y, 0.2 * y).astype(o_ref.dtype)


def _instance_norm(y, eps=1e-5):
    # Per-channel stats over the spatial (lane) axis, single-pass variance,
    # clamped at 0 to guard against E[y^2] - mean^2 cancellation.
    inv_n = 1.0 / y.shape[1]
    mean = jnp.sum(y, axis=1, keepdims=True) * inv_n
    var = jnp.sum(y * y, axis=1, keepdims=True) * inv_n - mean * mean
    var = jnp.maximum(var, 0.0)
    return (y - mean) * lax.rsqrt(var + eps)


def _patchgan_head_kernel(y1_ref, w2_ref, b2_ref, g2_ref,
                          w3_ref, b3_ref, g3_ref, o_ref):
    """Fused stage 2 + stage 3 for one sample per grid step.

    y1: (1, D, HW)            w2: (16, 2D, D)   b2: (2D, 1)  g2: (16, HW, HW2)
                              w3: (16, 2D, 2D)  b3: (2D, 1)  g3: (16, HW2, HW3)
    out: (1, 2D, HW3)
    The stride-2 4x4 / pad-1 im2col is expressed as one-hot gather matmuls
    (zero columns encode padding), so everything is plain 2-D GEMMs.
    """
    y1 = y1_ref[0]                                            # (D, HW) f32

    # ---- stage 2: conv 4x4 s2 p1 (D -> 2D) + InstanceNorm + LeakyReLU ----
    cout2 = w2_ref.shape[1]
    hw2 = g2_ref.shape[2]
    acc2 = jnp.zeros((cout2, hw2), jnp.float32)
    for kk in range(16):
        patch = jnp.dot(y1, g2_ref[kk], preferred_element_type=jnp.float32)
        acc2 = acc2 + jnp.dot(w2_ref[kk], patch,
                              preferred_element_type=jnp.float32)
    y2 = _instance_norm(acc2 + b2_ref[...])
    y2 = jnp.where(y2 > 0, y2, 0.2 * y2)                      # (2D, HW2)

    # ---- stage 3: conv 4x4 s2 p1 (2D -> 2D) + InstanceNorm + Sigmoid ----
    hw3 = g3_ref.shape[2]
    acc3 = jnp.zeros((cout2, hw3), jnp.float32)
    for kk in range(16):
        patch = jnp.dot(y2, g3_ref[kk], preferred_element_type=jnp.float32)
        acc3 = acc3 + jnp.dot(w3_ref[kk], patch,
                              preferred_element_type=jnp.float32)
    y3 = _instance_norm(acc3 + b3_ref[...])
    o_ref[0] = jax.nn.sigmoid(y3).astype(o_ref.dtype)


# ---------------------------------------------------------------------------
# Kernel wrappers
# ---------------------------------------------------------------------------
def _pick_m_tile(m, itemsize, n):
    """Largest M tile (<=1024 bf16 / <=512 f32) dividing M, preferring >=2
    total grid blocks so v7x's two TensorCores both get work."""
    max_tm = 1024 if itemsize <= 2 else 512
    fallback = None
    for tm in (1024, 512, 256, 128):
        if tm <= max_tm and m % tm == 0:
            if n * (m // tm) >= 2:
                return tm
            if fallback is None:
                fallback = tm
    # Non-128-multiple M: single full-width block (masked stores; OK for odd
    # resolutions but avoid it for hot paths).
    return fallback if fallback is not None else m


def conv1x1_lrelu(x, w, b):
    # x: (N, Cin, M) compute dtype   w: (Cout, Cin) compute dtype
    # b: (Cout, 1) f32               ->  (N, Cout, M) f32
    N, Cin, M = x.shape
    Cout = w.shape[0]
    tm = _pick_m_tile(M, x.dtype.itemsize, N)
    return pl.pallas_call(
        _conv1x1_lrelu_kernel,
        out_shape=jax.ShapeDtypeStruct((N, Cout, M), jnp.float32),
        grid=(N, M // tm),
        in_specs=[
            pl.BlockSpec((1, Cin, tm), lambda n, m: (n, 0, m)),
            pl.BlockSpec((Cout, Cin), lambda n, m: (0, 0)),
            pl.BlockSpec((Cout, 1), lambda n, m: (0, 0)),
        ],
        out_specs=pl.BlockSpec((1, Cout, tm), lambda n, m: (n, 0, m)),
        compiler_params=pltpu.CompilerParams(
            dimension_semantics=("parallel", "parallel")),
    )(x, w, b)


def patchgan_head(y1, w2s, b2, g2, w3s, b3, g3):
    # y1: (N, D, HW) -> (N, 2D, HW3); everything else is a resident constant.
    N, D, HW = y1.shape
    Cout2 = w2s.shape[1]
    HW2 = g2.shape[2]
    HW3 = g3.shape[2]
    return pl.pallas_call(
        _patchgan_head_kernel,
        out_shape=jax.ShapeDtypeStruct((N, Cout2, HW3), jnp.float32),
        grid=(N,),
        in_specs=[
            pl.BlockSpec((1, D, HW), lambda n: (n, 0, 0)),
            pl.BlockSpec((16, Cout2, D), lambda n: (0, 0, 0)),
            pl.BlockSpec((Cout2, 1), lambda n: (0, 0)),
            pl.BlockSpec((16, HW, HW2), lambda n: (0, 0, 0)),
            pl.BlockSpec((16, Cout2, Cout2), lambda n: (0, 0, 0)),
            pl.BlockSpec((Cout2, 1), lambda n: (0, 0)),
            pl.BlockSpec((16, HW2, HW3), lambda n: (0, 0, 0)),
        ],
        out_specs=pl.BlockSpec((1, Cout2, HW3), lambda n: (n, 0, 0)),
        compiler_params=pltpu.CompilerParams(
            dimension_semantics=("parallel",)),
    )(y1, w2s, b2, g2, w3s, b3, g3)


# ---------------------------------------------------------------------------
# Host-side constant builders (trace-time, numpy -> embedded constants)
# ---------------------------------------------------------------------------
def _make_gather_mats(h, w):
    """G[kk=kh*4+kw] of shape (h*w, (h//2)*(w//2)) such that  x_flat @ G[kk]
    gathers x_pad[:, 2*oh+kh, 2*ow+kw] for a 4x4 / stride-2 / pad-1 conv
    (out-of-bounds taps are all-zero columns)."""
    ho, wo = h // 2, w // 2
    mats = np.zeros((16, h * w, ho * wo), np.float32)
    for kh in range(4):
        for kw in range(4):
            kk = kh * 4 + kw
            for oh in range(ho):
                i = 2 * oh + kh - 1
                if not 0 <= i < h:
                    continue
                for ow in range(wo):
                    j = 2 * ow + kw - 1
                    if 0 <= j < w:
                        mats[kk, i * w + j, oh * wo + ow] = 1.0
    return jnp.asarray(mats)


def _w4x4_to_taps(w_oihw):
    # (Cout, Cin, 4, 4) -> (16, Cout, Cin), tap order kk = kh*4 + kw.
    cout, cin = w_oihw.shape[0], w_oihw.shape[1]
    return jnp.transpose(w_oihw, (2, 3, 0, 1)).reshape(16, cout, cin)


# ---------------------------------------------------------------------------
# Forward pass
# ---------------------------------------------------------------------------
def discriminator_forward(x_nchw, params, *, compute_dtype=jnp.float32):
    N, C, H, W = x_nchw.shape
    assert H % 4 == 0 and W % 4 == 0, "two stride-2 convs require H, W % 4 == 0"
    cd = jnp.dtype(compute_dtype)

    # Stage 1: 1x1 conv (2048 -> D) + LeakyReLU(0.2).  NCHW is already the
    # lane-dense layout for the transposed matmul (Cout,Cin)@(Cin,HW).
    # Best case the caller feeds bf16 feature maps so this cast is a no-op and
    # the HBM stream into the kernel is already half-width.
    x2d = x_nchw.reshape(N, C, H * W)
    if x2d.dtype != cd:
        x2d = x2d.astype(cd)
    w1 = params["w1"][:, :, 0, 0].astype(cd)           # pre-cast once, wrapper
    b1 = params["b1"].reshape(-1, 1).astype(jnp.float32)
    y1 = conv1x1_lrelu(x2d, w1, b1)                     # (N, D, H*W) f32

    # Stages 2+3 fused (conv4x4/s2/p1 + IN + LeakyReLU, conv4x4/s2/p1 + IN +
    # Sigmoid) in ONE pallas_call; no im2col expansion, no y2 HBM round trip.
    g2 = _make_gather_mats(H, W)
    g3 = _make_gather_mats(H // 2, W // 2)
    w2s = _w4x4_to_taps(params["w2"])
    w3s = _w4x4_to_taps(params["w3"])
    b2 = params["b2"].reshape(-1, 1).astype(jnp.float32)
    b3 = params["b3"].reshape(-1, 1).astype(jnp.float32)
    y3 = patchgan_head(y1, w2s, b2, g2, w3s, b3, g3)    # (N, 2D, HW/16)
    return y3.reshape(N, -1, H // 4, W // 4)            # NCHW


# ---------------------------------------------------------------------------
# Pure-JAX reference (for correctness check)
# ---------------------------------------------------------------------------
def _ref_forward(x, params):
    def conv(x, w, b, stride, pad):
        y = lax.conv_general_dilated(
            x, w, window_strides=(stride, stride),
            padding=[(pad, pad), (pad, pad)],
            dimension_numbers=("NCHW", "OIHW", "NCHW"))
        return y + b[None, :, None, None]

    def lrelu(v):
        return jnp.where(v > 0, v, 0.2 * v)

    def inorm(v):
        m = jnp.mean(v, axis=(2, 3), keepdims=True)
        var = jnp.mean((v - m) ** 2, axis=(2, 3), keepdims=True)
        return (v - m) / jnp.sqrt(var + 1e-5)

    y = lrelu(conv(x, params["w1"], params["b1"], 1, 0))
    y = lrelu(inorm(conv(y, params["w2"], params["b2"], 2, 1)))
    y = jax.nn.sigmoid(inorm(conv(y, params["w3"], params["b3"], 2, 1)))
    return y


def make_params(key, conv_dim):
    ks = jax.random.split(key, 6)
    D, D2 = conv_dim, conv_dim * 2
    scale = 0.05
    return {
        "w1": scale * jax.random.normal(ks[0], (D, 2048, 1, 1), jnp.float32),
        "b1": scale * jax.random.normal(ks[1], (D,), jnp.float32),
        "w2": scale * jax.random.normal(ks[2], (D2, D, 4, 4), jnp.float32),
        "b2": scale * jax.random.normal(ks[3], (D2,), jnp.float32),
        "w3": scale * jax.random.normal(ks[4], (D2, D2, 4, 4), jnp.float32),
        "b3": scale * jax.random.normal(ks[5], (D2,), jnp.float32),
    }


if __name__ == "__main__":
    key = jax.random.PRNGKey(0)
    k_x, k_p = jax.random.split(key)

    conv_dim = 8                   # small conv_dim (layer_num unused by module)
    N, C, H, W = 2, 2048, 16, 16   # input channels fixed to 2048 by the model
    x = jax.random.normal(k_x, (N, C, H, W), jnp.float32)
    params = make_params(k_p, conv_dim)

    ref = jax.block_until_ready(_ref_forward(x, params))

    # f32 path: strict reference check.
    fwd_f32 = jax.jit(functools.partial(discriminator_forward,
                                        compute_dtype=jnp.float32))
    out = jax.block_until_ready(fwd_f32(x, params))
    assert out.shape == ref.shape == (N, 2 * conv_dim, H // 4, W // 4)
    max_err = float(jnp.max(jnp.abs(out - ref)))
    assert max_err < 1e-4, f"f32 mismatch vs reference: {max_err}"

    # bf16-fed stage 1 (HBM bytes halved, f32 accumulation): loose tolerance
    # since the 2048-deep bf16 matmul legitimately drifts from the f32 ref.
    x_bf16 = x.astype(jnp.bfloat16)
    fwd_bf16 = jax.jit(functools.partial(discriminator_forward,
                                         compute_dtype=jnp.bfloat16))
    out_bf16 = jax.block_until_ready(fwd_bf16(x_bf16, params))
    max_err_bf16 = float(jnp.max(jnp.abs(out_bf16 - ref)))
    assert max_err_bf16 < 1e-1, f"bf16 mismatch vs reference: {max_err_bf16}"

    print("KERNEL_OK")
</pallas_src>

<mosaic_0001>
module attributes {stable_mosaic.version = 11 : i64} {
  func.func @_conv1x1_lrelu_kernel(%arg0: i32, %arg1: i32, %arg2: memref<1x2048x256xf32, #tpu.memory_space<vmem>>, %arg3: memref<8x2048xf32, #tpu.memory_space<vmem>>, %arg4: memref<8x1xf32, #tpu.memory_space<vmem>>, %arg5: memref<1x8x256xf32, #tpu.memory_space<vmem>>) attributes {dimension_semantics = [#tpu.dimension_semantics<parallel>, #tpu.dimension_semantics<parallel>], iteration_bounds = array<i64: 2, 1>, scalar_prefetch = 0 : i64, scratch_operands = 0 : i64, tpu.core_type = #tpu.core_type<tc>, window_params = [{transform_indices = @transform_0, window_bounds = array<i64: 1, 2048, 256>}, {pipeline_mode = #tpu.pipeline_mode<synchronous>, transform_indices = @transform_1, window_bounds = array<i64: 8, 2048>}, {pipeline_mode = #tpu.pipeline_mode<synchronous>, transform_indices = @transform_2, window_bounds = array<i64: 8, 1>}, {transform_indices = @transform_3, window_bounds = array<i64: 1, 8, 256>}]} {
    %c0 = arith.constant 0 : index
    %c0_0 = arith.constant 0 : index
    %0 = vector.load %arg3[%c0, %c0_0] : memref<8x2048xf32, #tpu.memory_space<vmem>>, vector<8x2048xf32>
    %c0_1 = arith.constant 0 : index
    %c0_2 = arith.constant 0 : index
    %c0_3 = arith.constant 0 : index
    %1 = vector.load %arg2[%c0_1, %c0_2, %c0_3] : memref<1x2048x256xf32, #tpu.memory_space<vmem>>, vector<1x2048x256xf32>
    %2 = vector.shape_cast %1 : vector<1x2048x256xf32> to vector<2048x256xf32>
    %cst = arith.constant dense<0.000000e+00> : vector<8x256xf32>
    %3 = tpu.matmul %0, %2, %cst {dimension_numbers = #tpu.dot_dimension_numbers<[1], [0], [0], [1], [0, 0, 1, 1], [], []>} : vector<8x2048xf32>, vector<2048x256xf32>, vector<8x256xf32> -> vector<8x256xf32>
    %c0_4 = arith.constant 0 : index
    %c0_5 = arith.constant 0 : index
    %4 = vector.load %arg4[%c0_4, %c0_5] : memref<8x1xf32, #tpu.memory_space<vmem>>, vector<8x1xf32>
    %5 = vector.broadcast %4 : vector<8x1xf32> to vector<8x256xf32>
    %6 = arith.addf %3, %5 : vector<8x256xf32>
    %cst_6 = arith.constant 0.000000e+00 : f32
    %7 = vector.broadcast %cst_6 : f32 to vector<8x256xf32>
    %8 = arith.cmpf ogt, %6, %7 : vector<8x256xf32>
    %cst_7 = arith.constant 2.000000e-01 : f32
    %9 = vector.broadcast %cst_7 : f32 to vector<8x256xf32>
    %10 = arith.mulf %9, %6 : vector<8x256xf32>
    %11 = arith.select %8, %6, %10 : vector<8x256xi1>, vector<8x256xf32>
    %c0_8 = arith.constant 0 : index
    %c0_9 = arith.constant 0 : index
    %c0_10 = arith.constant 0 : index
    %12 = vector.load %arg5[%c0_8, %c0_9, %c0_10] : memref<1x8x256xf32, #tpu.memory_space<vmem>>, vector<1x8x256xf32>
    %13 = vector.shape_cast %12 : vector<1x8x256xf32> to vector<8x256xf32>
    %14 = vector.shape_cast %11 : vector<8x256xf32> to vector<1x8x256xf32>
    tpu.vector_store %arg5[%c0_8, %c0_9, %c0_10], %14 {strides = array<i32>} : memref<1x8x256xf32, #tpu.memory_space<vmem>>, vector<1x8x256xf32>,
    return
  }
  func.func @transform_0(%arg0: i32, %arg1: i32) -> (i32, i32, i32) {
    %c0_i32 = arith.constant 0 : i32
    %c0_i32_0 = arith.constant 0 : i32
    return %arg0, %c0_i32, %arg1 : i32, i32, i32
  }
  func.func @transform_1(%arg0: i32, %arg1: i32) -> (i32, i32) {
    %c0_i32 = arith.constant 0 : i32
    %c0_i32_0 = arith.constant 0 : i32
    %c0_i32_1 = arith.constant 0 : i32
    return %c0_i32, %c0_i32_0 : i32, i32
  }
  func.func @transform_2(%arg0: i32, %arg1: i32) -> (i32, i32) {
    %c0_i32 = arith.constant 0 : i32
    %c0_i32_0 = arith.constant 0 : i32
    %c0_i32_1 = arith.constant 0 : i32
    return %c0_i32, %c0_i32_0 : i32, i32
  }
  func.func @transform_3(%arg0: i32, %arg1: i32) -> (i32, i32, i32) {
    %c0_i32 = arith.constant 0 : i32
    %c0_i32_0 = arith.constant 0 : i32
    return %arg0, %c0_i32, %arg1 : i32, i32, i32
  }
}

module attributes {stable_mosaic.version = 11 : i64} {
  func.func @_patchgan_head_kernel(%arg0: i32, %arg1: memref<1x8x256xf32, #tpu.memory_space<vmem>>, %arg2: memref<16x16x8xf32, #tpu.memory_space<vmem>>, %arg3: memref<16x1xf32, #tpu.memory_space<vmem>>, %arg4: memref<16x256x64xf32, #tpu.memory_space<vmem>>, %arg5: memref<16x16x16xf32, #tpu.memory_space<vmem>>, %arg6: memref<16x1xf32, #tpu.memory_space<vmem>>, %arg7: memref<16x64x16xf32, #tpu.memory_space<vmem>>, %arg8: memref<1x16x16xf32, #tpu.memory_space<vmem>>) attributes {dimension_semantics = [#tpu.dimension_semantics<parallel>], iteration_bounds = array<i64: 2>, scalar_prefetch = 0 : i64, scratch_operands = 0 : i64, tpu.core_type = #tpu.core_type<tc>, window_params = [{transform_indices = @transform_0, window_bounds = array<i64: 1, 8, 256>}, {pipeline_mode = #tpu.pipeline_mode<synchronous>, transform_indices = @transform_1, window_bounds = array<i64: 16, 16, 8>}, {pipeline_mode = #tpu.pipeline_mode<synchronous>, transform_indices = @transform_2, window_bounds = array<i64: 16, 1>}, {pipeline_mode = #tpu.pipeline_mode<synchronous>, transform_indices = @transform_3, window_bounds = array<i64: 16, 256, 64>}, {pipeline_mode = #tpu.pipeline_mode<synchronous>, transform_indices = @transform_4, window_bounds = array<i64: 16, 16, 16>}, {pipeline_mode = #tpu.pipeline_mode<synchronous>, transform_indices = @transform_5, window_bounds = array<i64: 16, 1>}, {pipeline_mode = #tpu.pipeline_mode<synchronous>, transform_indices = @transform_6, window_bounds = array<i64: 16, 64, 16>}, {transform_indices = @transform_7, window_bounds = array<i64: 1, 16, 16>}]} {
    %c0 = arith.constant 0 : index
    %c0_0 = arith.constant 0 : index
    %c0_1 = arith.constant 0 : index
    %0 = vector.load %arg1[%c0, %c0_0, %c0_1] : memref<1x8x256xf32, #tpu.memory_space<vmem>>, vector<1x8x256xf32>
    %1 = vector.shape_cast %0 : vector<1x8x256xf32> to vector<8x256xf32>
    %cst = arith.constant 0.000000e+00 : f32
    %2 = vector.broadcast %cst : f32 to vector<16x64xf32>
    %c0_2 = arith.constant 0 : index
    %c0_3 = arith.constant 0 : index
    %c0_4 = arith.constant 0 : index
    %3 = vector.load %arg4[%c0_2, %c0_3, %c0_4] : memref<16x256x64xf32, #tpu.memory_space<vmem>>, vector<1x256x64xf32>
    %4 = vector.shape_cast %3 : vector<1x256x64xf32> to vector<256x64xf32>
    %cst_5 = arith.constant dense<0.000000e+00> : vector<8x64xf32>
    %5 = tpu.matmul %1, %4, %cst_5 {dimension_numbers = #tpu.dot_dimension_numbers<[1], [0], [0], [1], [0, 0, 1, 1], [], []>} : vector<8x256xf32>, vector<256x64xf32>, vector<8x64xf32> -> vector<8x64xf32>
    %c0_6 = arith.constant 0 : index
    %c0_7 = arith.constant 0 : index
    %c0_8 = arith.constant 0 : index
    %6 = vector.load %arg2[%c0_6, %c0_7, %c0_8] : memref<16x16x8xf32, #tpu.memory_space<vmem>>, vector<1x16x8xf32>
    %7 = vector.shape_cast %6 : vector<1x16x8xf32> to vector<16x8xf32>
    %cst_9 = arith.constant dense<0.000000e+00> : vector<16x64xf32>
    %8 = tpu.matmul %7, %5, %cst_9 {dimension_numbers = #tpu.dot_dimension_numbers<[1], [0], [0], [1], [0, 0, 1, 1], [], []>} : vector<16x8xf32>, vector<8x64xf32>, vector<16x64xf32> -> vector<16x64xf32>
    %9 = arith.addf %2, %8 : vector<16x64xf32>
    %c1 = arith.constant 1 : index
    %c0_10 = arith.constant 0 : index
    %c0_11 = arith.constant 0 : index
    %10 = vector.load %arg4[%c1, %c0_10, %c0_11] : memref<16x256x64xf32, #tpu.memory_space<vmem>>, vector<1x256x64xf32>
    %11 = vector.shape_cast %10 : vector<1x256x64xf32> to vector<256x64xf32>
    %cst_12 = arith.constant dense<0.000000e+00> : vector<8x64xf32>
    %12 = tpu.matmul %1, %11, %cst_12 {dimension_numbers = #tpu.dot_dimension_numbers<[1], [0], [0], [1], [0, 0, 1, 1], [], []>} : vector<8x256xf32>, vector<256x64xf32>, vector<8x64xf32> -> vector<8x64xf32>
    %c1_13 = arith.constant 1 : index
    %c0_14 = arith.constant 0 : index
    %c0_15 = arith.constant 0 : index
    %13 = vector.load %arg2[%c1_13, %c0_14, %c0_15] : memref<16x16x8xf32, #tpu.memory_space<vmem>>, vector<1x16x8xf32>
    %14 = vector.shape_cast %13 : vector<1x16x8xf32> to vector<16x8xf32>
    %cst_16 = arith.constant dense<0.000000e+00> : vector<16x64xf32>
    %15 = tpu.matmul %14, %12, %cst_16 {dimension_numbers = #tpu.dot_dimension_numbers<[1], [0], [0], [1], [0, 0, 1, 1], [], []>} : vector<16x8xf32>, vector<8x64xf32>, vector<16x64xf32> -> vector<16x64xf32>
    %16 = arith.addf %9, %15 : vector<16x64xf32>
    %c2 = arith.constant 2 : index
    %c0_17 = arith.constant 0 : index
    %c0_18 = arith.constant 0 : index
    %17 = vector.load %arg4[%c2, %c0_17, %c0_18] : memref<16x256x64xf32, #tpu.memory_space<vmem>>, vector<1x256x64xf32>
    %18 = vector.shape_cast %17 : vector<1x256x64xf32> to vector<256x64xf32>
    %cst_19 = arith.constant dense<0.000000e+00> : vector<8x64xf32>
    %19 = tpu.matmul %1, %18, %cst_19 {dimension_numbers = #tpu.dot_dimension_numbers<[1], [0], [0], [1], [0, 0, 1, 1], [], []>} : vector<8x256xf32>, vector<256x64xf32>, vector<8x64xf32> -> vector<8x64xf32>
    %c2_20 = arith.constant 2 : index
    %c0_21 = arith.constant 0 : index
    %c0_22 = arith.constant 0 : index
    %20 = vector.load %arg2[%c2_20, %c0_21, %c0_22] : memref<16x16x8xf32, #tpu.memory_space<vmem>>, vector<1x16x8xf32>
    %21 = vector.shape_cast %20 : vector<1x16x8xf32> to vector<16x8xf32>
    %cst_23 = arith.constant dense<0.000000e+00> : vector<16x64xf32>
    %22 = tpu.matmul %21, %19, %cst_23 {dimension_numbers = #tpu.dot_dimension_numbers<[1], [0], [0], [1], [0, 0, 1, 1], [], []>} : vector<16x8xf32>, vector<8x64xf32>, vector<16x64xf32> -> vector<16x64xf32>
    %23 = arith.addf %16, %22 : vector<16x64xf32>
    %c3 = arith.constant 3 : index
    %c0_24 = arith.constant 0 : index
    %c0_25 = arith.constant 0 : index
    %24 = vector.load %arg4[%c3, %c0_24, %c0_25] : memref<16x256x64xf32, #tpu.memory_space<vmem>>, vector<1x256x64xf32>
    %25 = vector.shape_cast %24 : vector<1x256x64xf32> to vector<256x64xf32>
    %cst_26 = arith.constant dense<0.000000e+00> : vector<8x64xf32>
    %26 = tpu.matmul %1, %25, %cst_26 {dimension_numbers = #tpu.dot_dimension_numbers<[1], [0], [0], [1], [0, 0, 1, 1], [], []>} : vector<8x256xf32>, vector<256x64xf32>, vector<8x64xf32> -> vector<8x64xf32>
    %c3_27 = arith.constant 3 : index
    %c0_28 = arith.constant 0 : index
    %c0_29 = arith.constant 0 : index
    %27 = vector.load %arg2[%c3_27, %c0_28, %c0_29] : memref<16x16x8xf32, #tpu.memory_space<vmem>>, vector<1x16x8xf32>
    %28 = vector.shape_cast %27 : vector<1x16x8xf32> to vector<16x8xf32>
    %cst_30 = arith.constant dense<0.000000e+00> : vector<16x64xf32>
    %29 = tpu.matmul %28, %26, %cst_30 {dimension_numbers = #tpu.dot_dimension_numbers<[1], [0], [0], [1], [0, 0, 1, 1], [], []>} : vector<16x8xf32>, vector<8x64xf32>, vector<16x64xf32> -> vector<16x64xf32>
    %30 = arith.addf %23, %29 : vector<16x64xf32>
    %c4 = arith.constant 4 : index
    %c0_31 = arith.constant 0 : index
    %c0_32 = arith.constant 0 : index
    %31 = vector.load %arg4[%c4, %c0_31, %c0_32] : memref<16x256x64xf32, #tpu.memory_space<vmem>>, vector<1x256x64xf32>
    %32 = vector.shape_cast %31 : vector<1x256x64xf32> to vector<256x64xf32>
    %cst_33 = arith.constant dense<0.000000e+00> : vector<8x64xf32>
    %33 = tpu.matmul %1, %32, %cst_33 {dimension_numbers = #tpu.dot_dimension_numbers<[1], [0], [0], [1], [0, 0, 1, 1], [], []>} : vector<8x256xf32>, vector<256x64xf32>, vector<8x64xf32> -> vector<8x64xf32>
    %c4_34 = arith.constant 4 : index
    %c0_35 = arith.constant 0 : index
    %c0_36 = arith.constant 0 : index
    %34 = vector.load %arg2[%c4_34, %c0_35, %c0_36] : memref<16x16x8xf32, #tpu.memory_space<vmem>>, vector<1x16x8xf32>
    %35 = vector.shape_cast %34 : vector<1x16x8xf32> to vector<16x8xf32>
    %cst_37 = arith.constant dense<0.000000e+00> : vector<16x64xf32>
    %36 = tpu.matmul %35, %33, %cst_37 {dimension_numbers = #tpu.dot_dimension_numbers<[1], [0], [0], [1], [0, 0, 1, 1], [], []>} : vector<16x8xf32>, vector<8x64xf32>, vector<16x64xf32> -> vector<16x64xf32>
    %37 = arith.addf %30, %36 : vector<16x64xf32>
    %c5 = arith.constant 5 : index
    %c0_38 = arith.constant 0 : index
    %c0_39 = arith.constant 0 : index
    %38 = vector.load %arg4[%c5, %c0_38, %c0_39] : memref<16x256x64xf32, #tpu.memory_space<vmem>>, vector<1x256x64xf32>
    %39 = vector.shape_cast %38 : vector<1x256x64xf32> to vector<256x64xf32>
    %cst_40 = arith.constant dense<0.000000e+00> : vector<8x64xf32>
    %40 = tpu.matmul %1, %39, %cst_40 {dimension_numbers = #tpu.dot_dimension_numbers<[1], [0], [0], [1], [0, 0, 1, 1], [], []>} : vector<8x256xf32>, vector<256x64xf32>, vector<8x64xf32> -> vector<8x64xf32>
    %c5_41 = arith.constant 5 : index
    %c0_42 = arith.constant 0 : index
    %c0_43 = arith.constant 0 : index
    %41 = vector.load %arg2[%c5_41, %c0_42, %c0_43] : memref<16x16x8xf32, #tpu.memory_space<vmem>>, vector<1x16x8xf32>
    %42 = vector.shape_cast %41 : vector<1x16x8xf32> to vector<16x8xf32>
    %cst_44 = arith.constant dense<0.000000e+00> : vector<16x64xf32>
    %43 = tpu.matmul %42, %40, %cst_44 {dimension_numbers = #tpu.dot_dimension_numbers<[1], [0], [0], [1], [0, 0, 1, 1], [], []>} : vector<16x8xf32>, vector<8x64xf32>, vector<16x64xf32> -> vector<16x64xf32>
    %44 = arith.addf %37, %43 : vector<16x64xf32>
    %c6 = arith.constant 6 : index
    %c0_45 = arith.constant 0 : index
    %c0_46 = arith.constant 0 : index
    %45 = vector.load %arg4[%c6, %c0_45, %c0_46] : memref<16x256x64xf32, #tpu.memory_space<vmem>>, vector<1x256x64xf32>
    %46 = vector.shape_cast %45 : vector<1x256x64xf32> to vector<256x64xf32>
    %cst_47 = arith.constant dense<0.000000e+00> : vector<8x64xf32>
    %47 = tpu.matmul %1, %46, %cst_47 {dimension_numbers = #tpu.dot_dimension_numbers<[1], [0], [0], [1], [0, 0, 1, 1], [], []>} : vector<8x256xf32>, vector<256x64xf32>, vector<8x64xf32> -> vector<8x64xf32>
    %c6_48 = arith.constant 6 : index
    %c0_49 = arith.constant 0 : index
    %c0_50 = arith.constant 0 : index
    %48 = vector.load %arg2[%c6_48, %c0_49, %c0_50] : memref<16x16x8xf32, #tpu.memory_space<vmem>>, vector<1x16x8xf32>
    %49 = vector.shape_cast %48 : vector<1x16x8xf32> to vector<16x8xf32>
    %cst_51 = arith.constant dense<0.000000e+00> : vector<16x64xf32>
    %50 = tpu.matmul %49, %47, %cst_51 {dimension_numbers = #tpu.dot_dimension_numbers<[1], [0], [0], [1], [0, 0, 1, 1], [], []>} : vector<16x8xf32>, vector<8x64xf32>, vector<16x64xf32> -> vector<16x64xf32>
    %51 = arith.addf %44, %50 : vector<16x64xf32>
    %c7 = arith.constant 7 : index
    %c0_52 = arith.constant 0 : index
    %c0_53 = arith.constant 0 : index
    %52 = vector.load %arg4[%c7, %c0_52, %c0_53] : memref<16x256x64xf32, #tpu.memory_space<vmem>>, vector<1x256x64xf32>
    %53 = vector.shape_cast %52 : vector<1x256x64xf32> to vector<256x64xf32>
    %cst_54 = arith.constant dense<0.000000e+00> : vector<8x64xf32>
    %54 = tpu.matmul %1, %53, %cst_54 {dimension_numbers = #tpu.dot_dimension_numbers<[1], [0], [0], [1], [0, 0, 1, 1], [], []>} : vector<8x256xf32>, vector<256x64xf32>, vector<8x64xf32> -> vector<8x64xf32>
    %c7_55 = arith.constant 7 : index
    %c0_56 = arith.constant 0 : index
    %c0_57 = arith.constant 0 : index
    %55 = vector.load %arg2[%c7_55, %c0_56, %c0_57] : memref<16x16x8xf32, #tpu.memory_space<vmem>>, vector<1x16x8xf32>
    %56 = vector.shape_cast %55 : vector<1x16x8xf32> to vector<16x8xf32>
    %cst_58 = arith.constant dense<0.000000e+00> : vector<16x64xf32>
    %57 = tpu.matmul %56, %54, %cst_58 {dimension_numbers = #tpu.dot_dimension_numbers<[1], [0], [0], [1], [0, 0, 1, 1], [], []>} : vector<16x8xf32>, vector<8x64xf32>, vector<16x64xf32> -> vector<16x64xf32>
    %58 = arith.addf %51, %57 : vector<16x64xf32>
    %c8 = arith.constant 8 : index
    %c0_59 = arith.constant 0 : index
    %c0_60 = arith.constant 0 : index
    %59 = vector.load %arg4[%c8, %c0_59, %c0_60] : memref<16x256x64xf32, #tpu.memory_space<vmem>>, vector<1x256x64xf32>
    %60 = vector.shape_cast %59 : vector<1x256x64xf32> to vector<256x64xf32>
    %cst_61 = arith.constant dense<0.000000e+00> : vector<8x64xf32>
    %61 = tpu.matmul %1, %60, %cst_61 {dimension_numbers = #tpu.dot_dimension_numbers<[1], [0], [0], [1], [0, 0, 1, 1], [], []>} : vector<8x256xf32>, vector<256x64xf32>, vector<8x64xf32> -> vector<8x64xf32>
    %c8_62 = arith.constant 8 : index
    %c0_63 = arith.constant 0 : index
    %c0_64 = arith.constant 0 : index
    %62 = vector.load %arg2[%c8_62, %c0_63, %c0_64] : memref<16x16x8xf32, #tpu.memory_space<vmem>>, vector<1x16x8xf32>
    %63 = vector.shape_cast %62 : vector<1x16x8xf32> to vector<16x8xf32>
    %cst_65 = arith.constant dense<0.000000e+00> : vector<16x64xf32>
    %64 = tpu.matmul %63, %61, %cst_65 {dimension_numbers = #tpu.dot_dimension_numbers<[1], [0], [0], [1], [0, 0, 1, 1], [], []>} : vector<16x8xf32>, vector<8x64xf32>, vector<16x64xf32> -> vector<16x64xf32>
    %65 = arith.addf %58, %64 : vector<16x64xf32>
    %c9 = arith.constant 9 : index
    %c0_66 = arith.constant 0 : index
    %c0_67 = arith.constant 0 : index
    %66 = vector.load %arg4[%c9, %c0_66, %c0_67] : memref<16x256x64xf32, #tpu.memory_space<vmem>>, vector<1x256x64xf32>
    %67 = vector.shape_cast %66 : vector<1x256x64xf32> to vector<256x64xf32>
    %cst_68 = arith.constant dense<0.000000e+00> : vector<8x64xf32>
    %68 = tpu.matmul %1, %67, %cst_68 {dimension_numbers = #tpu.dot_dimension_numbers<[1], [0], [0], [1], [0, 0, 1, 1], [], []>} : vector<8x256xf32>, vector<256x64xf32>, vector<8x64xf32> -> vector<8x64xf32>
    %c9_69 = arith.constant 9 : index
    %c0_70 = arith.constant 0 : index
    %c0_71 = arith.constant 0 : index
    %69 = vector.load %arg2[%c9_69, %c0_70, %c0_71] : memref<16x16x8xf32, #tpu.memory_space<vmem>>, vector<1x16x8xf32>
    %70 = vector.shape_cast %69 : vector<1x16x8xf32> to vector<16x8xf32>
    %cst_72 = arith.constant dense<0.000000e+00> : vector<16x64xf32>
    %71 = tpu.matmul %70, %68, %cst_72 {dimension_numbers = #tpu.dot_dimension_numbers<[1], [0], [0], [1], [0, 0, 1, 1], [], []>} : vector<16x8xf32>, vector<8x64xf32>, vector<16x64xf32> -> vector<16x64xf32>
    %72 = arith.addf %65, %71 : vector<16x64xf32>
    %c10 = arith.constant 10 : index
    %c0_73 = arith.constant 0 : index
    %c0_74 = arith.constant 0 : index
    %73 = vector.load %arg4[%c10, %c0_73, %c0_74] : memref<16x256x64xf32, #tpu.memory_space<vmem>>, vector<1x256x64xf32>
    %74 = vector.shape_cast %73 : vector<1x256x64xf32> to vector<256x64xf32>
    %cst_75 = arith.constant dense<0.000000e+00> : vector<8x64xf32>
    %75 = tpu.matmul %1, %74, %cst_75 {dimension_numbers = #tpu.dot_dimension_numbers<[1], [0], [0], [1], [0, 0, 1, 1], [], []>} : vector<8x256xf32>, vector<256x64xf32>, vector<8x64xf32> -> vector<8x64xf32>
    %c10_76 = arith.constant 10 : index
    %c0_77 = arith.constant 0 : index
    %c0_78 = arith.constant 0 : index
    %76 = vector.load %arg2[%c10_76, %c0_77, %c0_78] : memref<16x16x8xf32, #tpu.memory_space<vmem>>, vector<1x16x8xf32>
    %77 = vector.shape_cast %76 : vector<1x16x8xf32> to vector<16x8xf32>
    %cst_79 = arith.constant dense<0.000000e+00> : vector<16x64xf32>
    %78 = tpu.matmul %77, %75, %cst_79 {dimension_numbers = #tpu.dot_dimension_numbers<[1], [0], [0], [1], [0, 0, 1, 1], [], []>} : vector<16x8xf32>, vector<8x64xf32>, vector<16x64xf32> -> vector<16x64xf32>
    %79 = arith.addf %72, %78 : vector<16x64xf32>
    %c11 = arith.constant 11 : index
    %c0_80 = arith.constant 0 : index
    %c0_81 = arith.constant 0 : index
    %80 = vector.load %arg4[%c11, %c0_80, %c0_81] : memref<16x256x64xf32, #tpu.memory_space<vmem>>, vector<1x256x64xf32>
    %81 = vector.shape_cast %80 : vector<1x256x64xf32> to vector<256x64xf32>
    %cst_82 = arith.constant dense<0.000000e+00> : vector<8x64xf32>
    %82 = tpu.matmul %1, %81, %cst_82 {dimension_numbers = #tpu.dot_dimension_numbers<[1], [0], [0], [1], [0, 0, 1, 1], [], []>} : vector<8x256xf32>, vector<256x64xf32>, vector<8x64xf32> -> vector<8x64xf32>
    %c11_83 = arith.constant 11 : index
    %c0_84 = arith.constant 0 : index
    %c0_85 = arith.constant 0 : index
    %83 = vector.load %arg2[%c11_83, %c0_84, %c0_85] : memref<16x16x8xf32, #tpu.memory_space<vmem>>, vector<1x16x8xf32>
    %84 = vector.shape_cast %83 : vector<1x16x8xf32> to vector<16x8xf32>
    %cst_86 = arith.constant dense<0.000000e+00> : vector<16x64xf32>
    %85 = tpu.matmul %84, %82, %cst_86 {dimension_numbers = #tpu.dot_dimension_numbers<[1], [0], [0], [1], [0, 0, 1, 1], [], []>} : vector<16x8xf32>, vector<8x64xf32>, vector<16x64xf32> -> vector<16x64xf32>
    %86 = arith.addf %79, %85 : vector<16x64xf32>
    %c12 = arith.constant 12 : index
    %c0_87 = arith.constant 0 : index
    %c0_88 = arith.constant 0 : index
    %87 = vector.load %arg4[%c12, %c0_87, %c0_88] : memref<16x256x64xf32, #tpu.memory_space<vmem>>, vector<1x256x64xf32>
    %88 = vector.shape_cast %87 : vector<1x256x64xf32> to vector<256x64xf32>
    %cst_89 = arith.constant dense<0.000000e+00> : vector<8x64xf32>
    %89 = tpu.matmul %1, %88, %cst_89 {dimension_numbers = #tpu.dot_dimension_numbers<[1], [0], [0], [1], [0, 0, 1, 1], [], []>} : vector<8x256xf32>, vector<256x64xf32>, vector<8x64xf32> -> vector<8x64xf32>
    %c12_90 = arith.constant 12 : index
    %c0_91 = arith.constant 0 : index
    %c0_92 = arith.constant 0 : index
    %90 = vector.load %arg2[%c12_90, %c0_91, %c0_92] : memref<16x16x8xf32, #tpu.memory_space<vmem>>, vector<1x16x8xf32>
    %91 = vector.shape_cast %90 : vector<1x16x8xf32> to vector<16x8xf32>
    %cst_93 = arith.constant dense<0.000000e+00> : vector<16x64xf32>
    %92 = tpu.matmul %91, %89, %cst_93 {dimension_numbers = #tpu.dot_dimension_numbers<[1], [0], [0], [1], [0, 0, 1, 1], [], []>} : vector<16x8xf32>, vector<8x64xf32>, vector<16x64xf32> -> vector<16x64xf32>
    %93 = arith.addf %86, %92 : vector<16x64xf32>
    %c13 = arith.constant 13 : index
    %c0_94 = arith.constant 0 : index
    %c0_95 = arith.constant 0 : index
    %94 = vector.load %arg4[%c13, %c0_94, %c0_95] : memref<16x256x64xf32, #tpu.memory_space<vmem>>, vector<1x256x64xf32>
    %95 = vector.shape_cast %94 : vector<1x256x64xf32> to vector<256x64xf32>
    %cst_96 = arith.constant dense<0.000000e+00> : vector<8x64xf32>
    %96 = tpu.matmul %1, %95, %cst_96 {dimension_numbers = #tpu.dot_dimension_numbers<[1], [0], [0], [1], [0, 0, 1, 1], [], []>} : vector<8x256xf32>, vector<256x64xf32>, vector<8x64xf32> -> vector<8x64xf32>
    %c13_97 = arith.constant 13 : index
    %c0_98 = arith.constant 0 : index
    %c0_99 = arith.constant 0 : index
    %97 = vector.load %arg2[%c13_97, %c0_98, %c0_99] : memref<16x16x8xf32, #tpu.memory_space<vmem>>, vector<1x16x8xf32>
    %98 = vector.shape_cast %97 : vector<1x16x8xf32> to vector<16x8xf32>
    %cst_100 = arith.constant dense<0.000000e+00> : vector<16x64xf32>
    %99 = tpu.matmul %98, %96, %cst_100 {dimension_numbers = #tpu.dot_dimension_numbers<[1], [0], [0], [1], [0, 0, 1, 1], [], []>} : vector<16x8xf32>, vector<8x64xf32>, vector<16x64xf32> -> vector<16x64xf32>
    %100 = arith.addf %93, %99 : vector<16x64xf32>
    %c14 = arith.constant 14 : index
    %c0_101 = arith.constant 0 : index
    %c0_102 = arith.constant 0 : index
    %101 = vector.load %arg4[%c14, %c0_101, %c0_102] : memref<16x256x64xf32, #tpu.memory_space<vmem>>, vector<1x256x64xf32>
    %102 = vector.shape_cast %101 : vector<1x256x64xf32> to vector<256x64xf32>
    %cst_103 = arith.constant dense<0.000000e+00> : vector<8x64xf32>
    %103 = tpu.matmul %1, %102, %cst_103 {dimension_numbers = #tpu.dot_dimension_numbers<[1], [0], [0], [1], [0, 0, 1, 1], [], []>} : vector<8x256xf32>, vector<256x64xf32>, vector<8x64xf32> -> vector<8x64xf32>
    %c14_104 = arith.constant 14 : index
    %c0_105 = arith.constant 0 : index
    %c0_106 = arith.constant 0 : index
    %104 = vector.load %arg2[%c14_104, %c0_105, %c0_106] : memref<16x16x8xf32, #tpu.memory_space<vmem>>, vector<1x16x8xf32>
    %105 = vector.shape_cast %104 : vector<1x16x8xf32> to vector<16x8xf32>
    %cst_107 = arith.constant dense<0.000000e+00> : vector<16x64xf32>
    %106 = tpu.matmul %105, %103, %cst_107 {dimension_numbers = #tpu.dot_dimension_numbers<[1], [0], [0], [1], [0, 0, 1, 1], [], []>} : vector<16x8xf32>, vector<8x64xf32>, vector<16x64xf32> -> vector<16x64xf32>
    %107 = arith.addf %100, %106 : vector<16x64xf32>
    %c15 = arith.constant 15 : index
    %c0_108 = arith.constant 0 : index
    %c0_109 = arith.constant 0 : index
    %108 = vector.load %arg4[%c15, %c0_108, %c0_109] : memref<16x256x64xf32, #tpu.memory_space<vmem>>, vector<1x256x64xf32>
    %109 = vector.shape_cast %108 : vector<1x256x64xf32> to vector<256x64xf32>
    %cst_110 = arith.constant dense<0.000000e+00> : vector<8x64xf32>
    %110 = tpu.matmul %1, %109, %cst_110 {dimension_numbers = #tpu.dot_dimension_numbers<[1], [0], [0], [1], [0, 0, 1, 1], [], []>} : vector<8x256xf32>, vector<256x64xf32>, vector<8x64xf32> -> vector<8x64xf32>
    %c15_111 = arith.constant 15 : index
    %c0_112 = arith.constant 0 : index
    %c0_113 = arith.constant 0 : index
    %111 = vector.load %arg2[%c15_111, %c0_112, %c0_113] : memref<16x16x8xf32, #tpu.memory_space<vmem>>, vector<1x16x8xf32>
    %112 = vector.shape_cast %111 : vector<1x16x8xf32> to vector<16x8xf32>
    %cst_114 = arith.constant dense<0.000000e+00> : vector<16x64xf32>
    %113 = tpu.matmul %112, %110, %cst_114 {dimension_numbers = #tpu.dot_dimension_numbers<[1], [0], [0], [1], [0, 0, 1, 1], [], []>} : vector<16x8xf32>, vector<8x64xf32>, vector<16x64xf32> -> vector<16x64xf32>
    %114 = arith.addf %107, %113 : vector<16x64xf32>
    %c0_115 = arith.constant 0 : index
    %c0_116 = arith.constant 0 : index
    %115 = vector.load %arg3[%c0_115, %c0_116] : memref<16x1xf32, #tpu.memory_space<vmem>>, vector<16x1xf32>
    %116 = vector.broadcast %115 : vector<16x1xf32> to vector<16x64xf32>
    %117 = arith.addf %114, %116 : vector<16x64xf32>
    %cst_117 = arith.constant dense<0.000000e+00> : vector<16xf32>
    %118 = vector.multi_reduction <add>, %117, %cst_117 [1] : vector<16x64xf32> to vector<16xf32>
    %119 = vector.shape_cast %118 : vector<16xf32> to vector<16x1xf32>
    %cst_118 = arith.constant 1.562500e-02 : f32
    %120 = vector.broadcast %cst_118 : f32 to vector<16x1xf32>
    %121 = arith.mulf %119, %120 : vector<16x1xf32>
    %122 = arith.mulf %117, %117 : vector<16x64xf32>
    %cst_119 = arith.constant dense<0.000000e+00> : vector<16xf32>
    %123 = vector.multi_reduction <add>, %122, %cst_119 [1] : vector<16x64xf32> to vector<16xf32>
    %124 = vector.shape_cast %123 : vector<16xf32> to vector<16x1xf32>
    %cst_120 = arith.constant 1.562500e-02 : f32
    %125 = vector.broadcast %cst_120 : f32 to vector<16x1xf32>
    %126 = arith.mulf %124, %125 : vector<16x1xf32>
    %127 = arith.mulf %121, %121 : vector<16x1xf32>
    %128 = arith.subf %126, %127 : vector<16x1xf32>
    %cst_121 = arith.constant 0.000000e+00 : f32
    %129 = vector.broadcast %cst_121 : f32 to vector<16x1xf32>
    %130 = arith.maximumf %128, %129 : vector<16x1xf32>
    %131 = vector.broadcast %121 : vector<16x1xf32> to vector<16x64xf32>
    %132 = arith.subf %117, %131 : vector<16x64xf32>
    %cst_122 = arith.constant 9.99999974E-6 : f32
    %133 = vector.broadcast %cst_122 : f32 to vector<16x1xf32>
    %134 = arith.addf %130, %133 : vector<16x1xf32>
    %135 = math.rsqrt %134 : vector<16x1xf32>
    %136 = vector.broadcast %135 : vector<16x1xf32> to vector<16x64xf32>
    %137 = arith.mulf %132, %136 : vector<16x64xf32>
    %cst_123 = arith.constant 0.000000e+00 : f32
    %138 = vector.broadcast %cst_123 : f32 to vector<16x64xf32>
    %139 = arith.cmpf ogt, %137, %138 : vector<16x64xf32>
    %cst_124 = arith.constant 2.000000e-01 : f32
    %140 = vector.broadcast %cst_124 : f32 to vector<16x64xf32>
    %141 = arith.mulf %140, %137 : vector<16x64xf32>
    %142 = arith.select %139, %137, %141 : vector<16x64xi1>, vector<16x64xf32>
    %cst_125 = arith.constant 0.000000e+00 : f32
    %143 = vector.broadcast %cst_125 : f32 to vector<16x16xf32>
    %c0_126 = arith.constant 0 : index
    %c0_127 = arith.constant 0 : index
    %c0_128 = arith.constant 0 : index
    %144 = vector.load %arg7[%c0_126, %c0_127, %c0_128] : memref<16x64x16xf32, #tpu.memory_space<vmem>>, vector<1x64x16xf32>
    %145 = vector.shape_cast %144 : vector<1x64x16xf32> to vector<64x16xf32>
    %cst_129 = arith.constant dense<0.000000e+00> : vector<16x16xf32>
    %146 = tpu.matmul %142, %145, %cst_129 {dimension_numbers = #tpu.dot_dimension_numbers<[1], [0], [0], [1], [0, 0, 1, 1], [], []>} : vector<16x64xf32>, vector<64x16xf32>, vector<16x16xf32> -> vector<16x16xf32>
    %c0_130 = arith.constant 0 : index
    %c0_131 = arith.constant 0 : index
    %c0_132 = arith.constant 0 : index
    %147 = vector.load %arg5[%c0_130, %c0_131, %c0_132] : memref<16x16x16xf32, #tpu.memory_space<vmem>>, vector<1x16x16xf32>
    %148 = vector.shape_cast %147 : vector<1x16x16xf32> to vector<16x16xf32>
    %cst_133 = arith.constant dense<0.000000e+00> : vector<16x16xf32>
    %149 = tpu.matmul %148, %146, %cst_133 {dimension_numbers = #tpu.dot_dimension_numbers<[1], [0], [0], [1], [0, 0, 1, 1], [], []>} : vector<16x16xf32>, vector<16x16xf32>, vector<16x16xf32> -> vector<16x16xf32>
    %150 = arith.addf %143, %149 : vector<16x16xf32>
    %c1_134 = arith.constant 1 : index
    %c0_135 = arith.constant 0 : index
    %c0_136 = arith.constant 0 : index
    %151 = vector.load %arg7[%c1_134, %c0_135, %c0_136] : memref<16x64x16xf32, #tpu.memory_space<vmem>>, vector<1x64x16xf32>
    %152 = vector.shape_cast %151 : vector<1x64x16xf32> to vector<64x16xf32>
    %cst_137 = arith.constant dense<0.000000e+00> : vector<16x16xf32>
    %153 = tpu.matmul %142, %152, %cst_137 {dimension_numbers = #tpu.dot_dimension_numbers<[1], [0], [0], [1], [0, 0, 1, 1], [], []>} : vector<16x64xf32>, vector<64x16xf32>, vector<16x16xf32> -> vector<16x16xf32>
    %c1_138 = arith.constant 1 : index
    %c0_139 = arith.constant 0 : index
    %c0_140 = arith.constant 0 : index
    %154 = vector.load %arg5[%c1_138, %c0_139, %c0_140] : memref<16x16x16xf32, #tpu.memory_space<vmem>>, vector<1x16x16xf32>
    %155 = vector.shape_cast %154 : vector<1x16x16xf32> to vector<16x16xf32>
    %cst_141 = arith.constant dense<0.000000e+00> : vector<16x16xf32>
    %156 = tpu.matmul %155, %153, %cst_141 {dimension_numbers = #tpu.dot_dimension_numbers<[1], [0], [0], [1], [0, 0, 1, 1], [], []>} : vector<16x16xf32>, vector<16x16xf32>, vector<16x16xf32> -> vector<16x16xf32>
    %157 = arith.addf %150, %156 : vector<16x16xf32>
    %c2_142 = arith.constant 2 : index
    %c0_143 = arith.constant 0 : index
    %c0_144 = arith.constant 0 : index
    %158 = vector.load %arg7[%c2_142, %c0_143, %c0_144] : memref<16x64x16xf32, #tpu.memory_space<vmem>>, vector<1x64x16xf32>
    %159 = vector.shape_cast %158 : vector<1x64x16xf32> to vector<64x16xf32>
    %cst_145 = arith.constant dense<0.000000e+00> : vector<16x16xf32>
    %160 = tpu.matmul %142, %159, %cst_145 {dimension_numbers = #tpu.dot_dimension_numbers<[1], [0], [0], [1], [0, 0, 1, 1], [], []>} : vector<16x64xf32>, vector<64x16xf32>, vector<16x16xf32> -> vector<16x16xf32>
    %c2_146 = arith.constant 2 : index
    %c0_147 = arith.constant 0 : index
    %c0_148 = arith.constant 0 : index
    %161 = vector.load %arg5[%c2_146, %c0_147, %c0_148] : memref<16x16x16xf32, #tpu.memory_space<vmem>>, vector<1x16x16xf32>
    %162 = vector.shape_cast %161 : vector<1x16x16xf32> to vector<16x16xf32>
    %cst_149 = arith.constant dense<0.000000e+00> : vector<16x16xf32>
    %163 = tpu.matmul %162, %160, %cst_149 {dimension_numbers = #tpu.dot_dimension_numbers<[1], [0], [0], [1], [0, 0, 1, 1], [], []>} : vector<16x16xf32>, vector<16x16xf32>, vector<16x16xf32> -> vector<16x16xf32>
    %164 = arith.addf %157, %163 : vector<16x16xf32>
    %c3_150 = arith.constant 3 : index
    %c0_151 = arith.constant 0 : index
    %c0_152 = arith.constant 0 : index
    %165 = vector.load %arg7[%c3_150, %c0_151, %c0_152] : memref<16x64x16xf32, #tpu.memory_space<vmem>>, vector<1x64x16xf32>
    %166 = vector.shape_cast %165 : vector<1x64x16xf32> to vector<64x16xf32>
    %cst_153 = arith.constant dense<0.000000e+00> : vector<16x16xf32>
    %167 = tpu.matmul %142, %166, %cst_153 {dimension_numbers = #tpu.dot_dimension_numbers<[1], [0], [0], [1], [0, 0, 1, 1], [], []>} : vector<16x64xf32>, vector<64x16xf32>, vector<16x16xf32> -> vector<16x16xf32>
    %c3_154 = arith.constant 3 : index
    %c0_155 = arith.constant 0 : index
    %c0_156 = arith.constant 0 : index
    %168 = vector.load %arg5[%c3_154, %c0_155, %c0_156] : memref<16x16x16xf32, #tpu.memory_space<vmem>>, vector<1x16x16xf32>
    %169 = vector.shape_cast %168 : vector<1x16x16xf32> to vector<16x16xf32>
    %cst_157 = arith.constant dense<0.000000e+00> : vector<16x16xf32>
    %170 = tpu.matmul %169, %167, %cst_157 {dimension_numbers = #tpu.dot_dimension_numbers<[1], [0], [0], [1], [0, 0, 1, 1], [], []>} : vector<16x16xf32>, vector<16x16xf32>, vector<16x16xf32> -> vector<16x16xf32>
    %171 = arith.addf %164, %170 : vector<16x16xf32>
    %c4_158 = arith.constant 4 : index
    %c0_159 = arith.constant 0 : index
    %c0_160 = arith.constant 0 : index
    %172 = vector.load %arg7[%c4_158, %c0_159, %c0_160] : memref<16x64x16xf32, #tpu.memory_space<vmem>>, vector<1x64x16xf32>
    %173 = vector.shape_cast %172 : vector<1x64x16xf32> to vector<64x16xf32>
    %cst_161 = arith.constant dense<0.000000e+00> : vector<16x16xf32>
    %174 = tpu.matmul %142, %173, %cst_161 {dimension_numbers = #tpu.dot_dimension_numbers<[1], [0], [0], [1], [0, 0, 1, 1], [], []>} : vector<16x64xf32>, vector<64x16xf32>, vector<16x16xf32> -> vector<16x16xf32>
    %c4_162 = arith.constant 4 : index
    %c0_163 = arith.constant 0 : index
    %c0_164 = arith.constant 0 : index
    %175 = vector.load %arg5[%c4_162, %c0_163, %c0_164] : memref<16x16x16xf32, #tpu.memory_space<vmem>>, vector<1x16x16xf32>
    %176 = vector.shape_cast %175 : vector<1x16x16xf32> to vector<16x16xf32>
    %cst_165 = arith.constant dense<0.000000e+00> : vector<16x16xf32>
    %177 = tpu.matmul %176, %174, %cst_165 {dimension_numbers = #tpu.dot_dimension_numbers<[1], [0], [0], [1], [0, 0, 1, 1], [], []>} : vector<16x16xf32>, vector<16x16xf32>, vector<16x16xf32> -> vector<16x16xf32>
    %178 = arith.addf %171, %177 : vector<16x16xf32>
    %c5_166 = arith.constant 5 : index
    %c0_167 = arith.constant 0 : index
    %c0_168 = arith.constant 0 : index
    %179 = vector.load %arg7[%c5_166, %c0_167, %c0_168] : memref<16x64x16xf32, #tpu.memory_space<vmem>>, vector<1x64x16xf32>
    %180 = vector.shape_cast %179 : vector<1x64x16xf32> to vector<64x16xf32>
    %cst_169 = arith.constant dense<0.000000e+00> : vector<16x16xf32>
    %181 = tpu.matmul %142, %180, %cst_169 {dimension_numbers = #tpu.dot_dimension_numbers<[1], [0], [0], [1], [0, 0, 1, 1], [], []>} : vector<16x64xf32>, vector<64x16xf32>, vector<16x16xf32> -> vector<16x16xf32>
    %c5_170 = arith.constant 5 : index
    %c0_171 = arith.constant 0 : index
    %c0_172 = arith.constant 0 : index
    %182 = vector.load %arg5[%c5_170, %c0_171, %c0_172] : memref<16x16x16xf32, #tpu.memory_space<vmem>>, vector<1x16x16xf32>
    %183 = vector.shape_cast %182 : vector<1x16x16xf32> to vector<16x16xf32>
    %cst_173 = arith.constant dense<0.000000e+00> : vector<16x16xf32>
    %184 = tpu.matmul %183, %181, %cst_173 {dimension_numbers = #tpu.dot_dimension_numbers<[1], [0], [0], [1], [0, 0, 1, 1], [], []>} : vector<16x16xf32>, vector<16x16xf32>, vector<16x16xf32> -> vector<16x16xf32>
    %185 = arith.addf %178, %184 : vector<16x16xf32>
    %c6_174 = arith.constant 6 : index
    %c0_175 = arith.constant 0 : index
    %c0_176 = arith.constant 0 : index
    %186 = vector.load %arg7[%c6_174, %c0_175, %c0_176] : memref<16x64x16xf32, #tpu.memory_space<vmem>>, vector<1x64x16xf32>
    %187 = vector.shape_cast %186 : vector<1x64x16xf32> to vector<64x16xf32>
    %cst_177 = arith.constant dense<0.000000e+00> : vector<16x16xf32>
    %188 = tpu.matmul %142, %187, %cst_177 {dimension_numbers = #tpu.dot_dimension_numbers<[1], [0], [0], [1], [0, 0, 1, 1], [], []>} : vector<16x64xf32>, vector<64x16xf32>, vector<16x16xf32> -> vector<16x16xf32>
    %c6_178 = arith.constant 6 : index
    %c0_179 = arith.constant 0 : index
    %c0_180 = arith.constant 0 : index
    %189 = vector.load %arg5[%c6_178, %c0_179, %c0_180] : memref<16x16x16xf32, #tpu.memory_space<vmem>>, vector<1x16x16xf32>
    %190 = vector.shape_cast %189 : vector<1x16x16xf32> to vector<16x16xf32>
    %cst_181 = arith.constant dense<0.000000e+00> : vector<16x16xf32>
    %191 = tpu.matmul %190, %188, %cst_181 {dimension_numbers = #tpu.dot_dimension_numbers<[1], [0], [0], [1], [0, 0, 1, 1], [], []>} : vector<16x16xf32>, vector<16x16xf32>, vector<16x16xf32> -> vector<16x16xf32>
    %192 = arith.addf %185, %191 : vector<16x16xf32>
    %c7_182 = arith.constant 7 : index
    %c0_183 = arith.constant 0 : index
    %c0_184 = arith.constant 0 : index
    %193 = vector.load %arg7[%c7_182, %c0_183, %c0_184] : memref<16x64x16xf32, #tpu.memory_space<vmem>>, vector<1x64x16xf32>
    %194 = vector.shape_cast %193 : vector<1x64x16xf32> to vector<64x16xf32>
    %cst_185 = arith.constant dense<0.000000e+00> : vector<16x16xf32>
    %195 = tpu.matmul %142, %194, %cst_185 {dimension_numbers = #tpu.dot_dimension_numbers<[1], [0], [0], [1], [0, 0, 1, 1], [], []>} : vector<16x64xf32>, vector<64x16xf32>, vector<16x16xf32> -> vector<16x16xf32>
    %c7_186 = arith.constant 7 : index
    %c0_187 = arith.constant 0 : index
    %c0_188 = arith.constant 0 : index
    %196 = vector.load %arg5[%c7_186, %c0_187, %c0_188] : memref<16x16x16xf32, #tpu.memory_space<vmem>>, vector<1x16x16xf32>
    %197 = vector.shape_cast %196 : vector<1x16x16xf32> to vector<16x16xf32>
    %cst_189 = arith.constant dense<0.000000e+00> : vector<16x16xf32>
    %198 = tpu.matmul %197, %195, %cst_189 {dimension_numbers = #tpu.dot_dimension_numbers<[1], [0], [0], [1], [0, 0, 1, 1], [], []>} : vector<16x16xf32>, vector<16x16xf32>, vector<16x16xf32> -> vector<16x16xf32>
    %199 = arith.addf %192, %198 : vector<16x16xf32>
    %c8_190 = arith.constant 8 : index
    %c0_191 = arith.constant 0 : index
    %c0_192 = arith.constant 0 : index
    %200 = vector.load %arg7[%c8_190, %c0_191, %c0_192] : memref<16x64x16xf32, #tpu.memory_space<vmem>>, vector<1x64x16xf32>
    %201 = vector.shape_cast %200 : vector<1x64x16xf32> to vector<64x16xf32>
    %cst_193 = arith.constant dense<0.000000e+00> : vector<16x16xf32>
    %202 = tpu.matmul %142, %201, %cst_193 {dimension_numbers = #tpu.dot_dimension_numbers<[1], [0], [0], [1], [0, 0, 1, 1], [], []>} : vector<16x64xf32>, vector<64x16xf32>, vector<16x16xf32> -> vector<16x16xf32>
    %c8_194 = arith.constant 8 : index
    %c0_195 = arith.constant 0 : index
    %c0_196 = arith.constant 0 : index
    %203 = vector.load %arg5[%c8_194, %c0_195, %c0_196] : memref<16x16x16xf32, #tpu.memory_space<vmem>>, vector<1x16x16xf32>
    %204 = vector.shape_cast %203 : vector<1x16x16xf32> to vector<16x16xf32>
    %cst_197 = arith.constant dense<0.000000e+00> : vector<16x16xf32>
    %205 = tpu.matmul %204, %202, %cst_197 {dimension_numbers = #tpu.dot_dimension_numbers<[1], [0], [0], [1], [0, 0, 1, 1], [], []>} : vector<16x16xf32>, vector<16x16xf32>, vector<16x16xf32> -> vector<16x16xf32>
    %206 = arith.addf %199, %205 : vector<16x16xf32>
    %c9_198 = arith.constant 9 : index
    %c0_199 = arith.constant 0 : index
    %c0_200 = arith.constant 0 : index
    %207 = vector.load %arg7[%c9_198, %c0_199, %c0_200] : memref<16x64x16xf32, #tpu.memory_space<vmem>>, vector<1x64x16xf32>
    %208 = vector.shape_cast %207 : vector<1x64x16xf32> to vector<64x16xf32>
    %cst_201 = arith.constant dense<0.000000e+00> : vector<16x16xf32>
    %209 = tpu.matmul %142, %208, %cst_201 {dimension_numbers = #tpu.dot_dimension_numbers<[1], [0], [0], [1], [0, 0, 1, 1], [], []>} : vector<16x64xf32>, vector<64x16xf32>, vector<16x16xf32> -> vector<16x16xf32>
    %c9_202 = arith.constant 9 : index
    %c0_203 = arith.constant 0 : index
    %c0_204 = arith.constant 0 : index
    %210 = vector.load %arg5[%c9_202, %c0_203, %c0_204] : memref<16x16x16xf32, #tpu.memory_space<vmem>>, vector<1x16x16xf32>
    %211 = vector.shape_cast %210 : vector<1x16x16xf32> to vector<16x16xf32>
    %cst_205 = arith.constant dense<0.000000e+00> : vector<16x16xf32>
    %212 = tpu.matmul %211, %209, %cst_205 {dimension_numbers = #tpu.dot_dimension_numbers<[1], [0], [0], [1], [0, 0, 1, 1], [], []>} : vector<16x16xf32>, vector<16x16xf32>, vector<16x16xf32> -> vector<16x16xf32>
    %213 = arith.addf %206, %212 : vector<16x16xf32>
    %c10_206 = arith.constant 10 : index
    %c0_207 = arith.constant 0 : index
    %c0_208 = arith.constant 0 : index
    %214 = vector.load %arg7[%c10_206, %c0_207, %c0_208] : memref<16x64x16xf32, #tpu.memory_space<vmem>>, vector<1x64x16xf32>
    %215 = vector.shape_cast %214 : vector<1x64x16xf32> to vector<64x16xf32>
    %cst_209 = arith.constant dense<0.000000e+00> : vector<16x16xf32>
    %216 = tpu.matmul %142, %215, %cst_209 {dimension_numbers = #tpu.dot_dimension_numbers<[1], [0], [0], [1], [0, 0, 1, 1], [], []>} : vector<16x64xf32>, vector<64x16xf32>, vector<16x16xf32> -> vector<16x16xf32>
    %c10_210 = arith.constant 10 : index
    %c0_211 = arith.constant 0 : index
    %c0_212 = arith.constant 0 : index
    %217 = vector.load %arg5[%c10_210, %c0_211, %c0_212] : memref<16x16x16xf32, #tpu.memory_space<vmem>>, vector<1x16x16xf32>
    %218 = vector.shape_cast %217 : vector<1x16x16xf32> to vector<16x16xf32>
    %cst_213 = arith.constant dense<0.000000e+00> : vector<16x16xf32>
    %219 = tpu.matmul %218, %216, %cst_213 {dimension_numbers = #tpu.dot_dimension_numbers<[1], [0], [0], [1], [0, 0, 1, 1], [], []>} : vector<16x16xf32>, vector<16x16xf32>, vector<16x16xf32> -> vector<16x16xf32>
    %220 = arith.addf %213, %219 : vector<16x16xf32>
    %c11_214 = arith.constant 11 : index
    %c0_215 = arith.constant 0 : index
    %c0_216 = arith.constant 0 : index
    %221 = vector.load %arg7[%c11_214, %c0_215, %c0_216] : memref<16x64x16xf32, #tpu.memory_space<vmem>>, vector<1x64x16xf32>
    %222 = vector.shape_cast %221 : vector<1x64x16xf32> to vector<64x16xf32>
    %cst_217 = arith.constant dense<0.000000e+00> : vector<16x16xf32>
    %223 = tpu.matmul %142, %222, %cst_217 {dimension_numbers = #tpu.dot_dimension_numbers<[1], [0], [0], [1], [0, 0, 1, 1], [], []>} : vector<16x64xf32>, vector<64x16xf32>, vector<16x16xf32> -> vector<16x16xf32>
    %c11_218 = arith.constant 11 : index
    %c0_219 = arith.constant 0 : index
    %c0_220 = arith.constant 0 : index
    %224 = vector.load %arg5[%c11_218, %c0_219, %c0_220] : memref<16x16x16xf32, #tpu.memory_space<vmem>>, vector<1x16x16xf32>
    %225 = vector.shape_cast %224 : vector<1x16x16xf32> to vector<16x16xf32>
    %cst_221 = arith.constant dense<0.000000e+00> : vector<16x16xf32>
    %226 = tpu.matmul %225, %223, %cst_221 {dimension_numbers = #tpu.dot_dimension_numbers<[1], [0], [0], [1], [0, 0, 1, 1], [], []>} : vector<16x16xf32>, vector<16x16xf32>, vector<16x16xf32> -> vector<16x16xf32>
    %227 = arith.addf %220, %226 : vector<16x16xf32>
    %c12_222 = arith.constant 12 : index
    %c0_223 = arith.constant 0 : index
    %c0_224 = arith.constant 0 : index
    %228 = vector.load %arg7[%c12_222, %c0_223, %c0_224] : memref<16x64x16xf32, #tpu.memory_space<vmem>>, vector<1x64x16xf32>
    %229 = vector.shape_cast %228 : vector<1x64x16xf32> to vector<64x16xf32>
    %cst_225 = arith.constant dense<0.000000e+00> : vector<16x16xf32>
    %230 = tpu.matmul %142, %229, %cst_225 {dimension_numbers = #tpu.dot_dimension_numbers<[1], [0], [0], [1], [0, 0, 1, 1], [], []>} : vector<16x64xf32>, vector<64x16xf32>, vector<16x16xf32> -> vector<16x16xf32>
    %c12_226 = arith.constant 12 : index
    %c0_227 = arith.constant 0 : index
    %c0_228 = arith.constant 0 : index
    %231 = vector.load %arg5[%c12_226, %c0_227, %c0_228] : memref<16x16x16xf32, #tpu.memory_space<vmem>>, vector<1x16x16xf32>
    %232 = vector.shape_cast %231 : vector<1x16x16xf32> to vector<16x16xf32>
    %cst_229 = arith.constant dense<0.000000e+00> : vector<16x16xf32>
    %233 = tpu.matmul %232, %230, %cst_229 {dimension_numbers = #tpu.dot_dimension_numbers<[1], [0], [0], [1], [0, 0, 1, 1], [], []>} : vector<16x16xf32>, vector<16x16xf32>, vector<16x16xf32> -> vector<16x16xf32>
    %234 = arith.addf %227, %233 : vector<16x16xf32>
    %c13_230 = arith.constant 13 : index
    %c0_231 = arith.constant 0 : index
    %c0_232 = arith.constant 0 : index
    %235 = vector.load %arg7[%c13_230, %c0_231, %c0_232] : memref<16x64x16xf32, #tpu.memory_space<vmem>>, vector<1x64x16xf32>
    %236 = vector.shape_cast %235 : vector<1x64x16xf32> to vector<64x16xf32>
    %cst_233 = arith.constant dense<0.000000e+00> : vector<16x16xf32>
    %237 = tpu.matmul %142, %236, %cst_233 {dimension_numbers = #tpu.dot_dimension_numbers<[1], [0], [0], [1], [0, 0, 1, 1], [], []>} : vector<16x64xf32>, vector<64x16xf32>, vector<16x16xf32> -> vector<16x16xf32>
    %c13_234 = arith.constant 13 : index
    %c0_235 = arith.constant 0 : index
    %c0_236 = arith.constant 0 : index
    %238 = vector.load %arg5[%c13_234, %c0_235, %c0_236] : memref<16x16x16xf32, #tpu.memory_space<vmem>>, vector<1x16x16xf32>
    %239 = vector.shape_cast %238 : vector<1x16x16xf32> to vector<16x16xf32>
    %cst_237 = arith.constant dense<0.000000e+00> : vector<16x16xf32>
    %240 = tpu.matmul %239, %237, %cst_237 {dimension_numbers = #tpu.dot_dimension_numbers<[1], [0], [0], [1], [0, 0, 1, 1], [], []>} : vector<16x16xf32>, vector<16x16xf32>, vector<16x16xf32> -> vector<16x16xf32>
    %241 = arith.addf %234, %240 : vector<16x16xf32>
    %c14_238 = arith.constant 14 : index
    %c0_239 = arith.constant 0 : index
    %c0_240 = arith.constant 0 : index
    %242 = vector.load %arg7[%c14_238, %c0_239, %c0_240] : memref<16x64x16xf32, #tpu.memory_space<vmem>>, vector<1x64x16xf32>
    %243 = vector.shape_cast %242 : vector<1x64x16xf32> to vector<64x16xf32>
    %cst_241 = arith.constant dense<0.000000e+00> : vector<16x16xf32>
    %244 = tpu.matmul %142, %243, %cst_241 {dimension_numbers = #tpu.dot_dimension_numbers<[1], [0], [0], [1], [0, 0, 1, 1], [], []>} : vector<16x64xf32>, vector<64x16xf32>, vector<16x16xf32> -> vector<16x16xf32>
    %c14_242 = arith.constant 14 : index
    %c0_243 = arith.constant 0 : index
    %c0_244 = arith.constant 0 : index
    %245 = vector.load %arg5[%c14_242, %c0_243, %c0_244] : memref<16x16x16xf32, #tpu.memory_space<vmem>>, vector<1x16x16xf32>
    %246 = vector.shape_cast %245 : vector<1x16x16xf32> to vector<16x16xf32>
    %cst_245 = arith.constant dense<0.000000e+00> : vector<16x16xf32>
    %247 = tpu.matmul %246, %244, %cst_245 {dimension_numbers = #tpu.dot_dimension_numbers<[1], [0], [0], [1], [0, 0, 1, 1], [], []>} : vector<16x16xf32>, vector<16x16xf32>, vector<16x16xf32> -> vector<16x16xf32>
    %248 = arith.addf %241, %247 : vector<16x16xf32>
    %c15_246 = arith.constant 15 : index
    %c0_247 = arith.constant 0 : index
    %c0_248 = arith.constant 0 : index
    %249 = vector.load %arg7[%c15_246, %c0_247, %c0_248] : memref<16x64x16xf32, #tpu.memory_space<vmem>>, vector<1x64x16xf32>
    %250 = vector.shape_cast %249 : vector<1x64x16xf32> to vector<64x16xf32>
    %cst_249 = arith.constant dense<0.000000e+00> : vector<16x16xf32>
    %251 = tpu.matmul %142, %250, %cst_249 {dimension_numbers = #tpu.dot_dimension_numbers<[1], [0], [0], [1], [0, 0, 1, 1], [], []>} : vector<16x64xf32>, vector<64x16xf32>, vector<16x16xf32> -> vector<16x16xf32>
    %c15_250 = arith.constant 15 : index
    %c0_251 = arith.constant 0 : index
    %c0_252 = arith.constant 0 : index
    %252 = vector.load %arg5[%c15_250, %c0_251, %c0_252] : memref<16x16x16xf32, #tpu.memory_space<vmem>>, vector<1x16x16xf32>
    %253 = vector.shape_cast %252 : vector<1x16x16xf32> to vector<16x16xf32>
    %cst_253 = arith.constant dense<0.000000e+00> : vector<16x16xf32>
    %254 = tpu.matmul %253, %251, %cst_253 {dimension_numbers = #tpu.dot_dimension_numbers<[1], [0], [0], [1], [0, 0, 1, 1], [], []>} : vector<16x16xf32>, vector<16x16xf32>, vector<16x16xf32> -> vector<16x16xf32>
    %255 = arith.addf %248, %254 : vector<16x16xf32>
    %c0_254 = arith.constant 0 : index
    %c0_255 = arith.constant 0 : index
    %256 = vector.load %arg6[%c0_254, %c0_255] : memref<16x1xf32, #tpu.memory_space<vmem>>, vector<16x1xf32>
    %257 = vector.broadcast %256 : vector<16x1xf32> to vector<16x16xf32>
    %258 = arith.addf %255, %257 : vector<16x16xf32>
    %cst_256 = arith.constant dense<0.000000e+00> : vector<16xf32>
    %259 = vector.multi_reduction <add>, %258, %cst_256 [1] : vector<16x16xf32> to vector<16xf32>
    %260 = vector.shape_cast %259 : vector<16xf32> to vector<16x1xf32>
    %cst_257 = arith.constant 6.250000e-02 : f32
    %261 = vector.broadcast %cst_257 : f32 to vector<16x1xf32>
    %262 = arith.mulf %260, %261 : vector<16x1xf32>
    %263 = arith.mulf %258, %258 : vector<16x16xf32>
    %cst_258 = arith.constant dense<0.000000e+00> : vector<16xf32>
    %264 = vector.multi_reduction <add>, %263, %cst_258 [1] : vector<16x16xf32> to vector<16xf32>
    %265 = vector.shape_cast %264 : vector<16xf32> to vector<16x1xf32>
    %cst_259 = arith.constant 6.250000e-02 : f32
    %266 = vector.broadcast %cst_259 : f32 to vector<16x1xf32>
    %267 = arith.mulf %265, %266 : vector<16x1xf32>
    %268 = arith.mulf %262, %262 : vector<16x1xf32>
    %269 = arith.subf %267, %268 : vector<16x1xf32>
    %cst_260 = arith.constant 0.000000e+00 : f32
    %270 = vector.broadcast %cst_260 : f32 to vector<16x1xf32>
    %271 = arith.maximumf %269, %270 : vector<16x1xf32>
    %272 = vector.broadcast %262 : vector<16x1xf32> to vector<16x16xf32>
    %273 = arith.subf %258, %272 : vector<16x16xf32>
    %cst_261 = arith.constant 9.99999974E-6 : f32
    %274 = vector.broadcast %cst_261 : f32 to vector<16x1xf32>
    %275 = arith.addf %271, %274 : vector<16x1xf32>
    %276 = math.rsqrt %275 : vector<16x1xf32>
    %277 = vector.broadcast %276 : vector<16x1xf32> to vector<16x16xf32>
    %278 = arith.mulf %273, %277 : vector<16x16xf32>
    %279 = arith.negf %278 : vector<16x16xf32>
    %280 = math.exp %279 : vector<16x16xf32>
    %cst_262 = arith.constant 1.000000e+00 : f32
    %281 = vector.broadcast %cst_262 : f32 to vector<16x16xf32>
    %282 = arith.addf %281, %280 : vector<16x16xf32>
    %283 = arith.divf %281, %282 : vector<16x16xf32>
    %c0_263 = arith.constant 0 : index
    %c0_264 = arith.constant 0 : index
    %c0_265 = arith.constant 0 : index
    %284 = vector.load %arg8[%c0_263, %c0_264, %c0_265] : memref<1x16x16xf32, #tpu.memory_space<vmem>>, vector<1x16x16xf32>
    %285 = vector.shape_cast %284 : vector<1x16x16xf32> to vector<16x16xf32>
    %286 = vector.shape_cast %283 : vector<16x16xf32> to vector<1x16x16xf32>
    tpu.vector_store %arg8[%c0_263, %c0_264, %c0_265], %286 {strides = array<i32>} : memref<1x16x16xf32, #tpu.memory_space<vmem>>, vector<1x16x16xf32>,
    return
  }
  func.func @transform_0(%arg0: i32) -> (i32, i32, i32) {
    %c0_i32 = arith.constant 0 : i32
    %c0_i32_0 = arith.constant 0 : i32
    %c0_i32_1 = arith.constant 0 : i32
    return %arg0, %c0_i32, %c0_i32_0 : i32, i32, i32
  }
  func.func @transform_1(%arg0: i32) -> (i32, i32, i32) {
    %c0_i32 = arith.constant 0 : i32
    %c0_i32_0 = arith.constant 0 : i32
    %c0_i32_1 = arith.constant 0 : i32
    %c0_i32_2 = arith.constant 0 : i32
    return %c0_i32, %c0_i32_0, %c0_i32_1 : i32, i32, i32
  }
  func.func @transform_2(%arg0: i32) -> (i32, i32) {
    %c0_i32 = arith.constant 0 : i32
    %c0_i32_0 = arith.constant 0 : i32
    %c0_i32_1 = arith.constant 0 : i32
    return %c0_i32, %c0_i32_0 : i32, i32
  }
  func.func @transform_3(%arg0: i32) -> (i32, i32, i32) {
    %c0_i32 = arith.constant 0 : i32
    %c0_i32_0 = arith.constant 0 : i32
    %c0_i32_1 = arith.constant 0 : i32
    %c0_i32_2 = arith.constant 0 : i32
    return %c0_i32, %c0_i32_0, %c0_i32_1 : i32, i32, i32
  }
  func.func @transform_4(%arg0: i32) -> (i32, i32, i32) {
    %c0_i32 = arith.constant 0 : i32
    %c0_i32_0 = arith.constant 0 : i32
    %c0_i32_1 = arith.constant 0 : i32
    %c0_i32_2 = arith.constant 0 : i32
    return %c0_i32, %c0_i32_0, %c0_i32_1 : i32, i32, i32
  }
  func.func @transform_5(%arg0: i32) -> (i32, i32) {
    %c0_i32 = arith.constant 0 : i32
    %c0_i32_0 = arith.constant 0 : i32
    %c0_i32_1 = arith.constant 0 : i32
    return %c0_i32, %c0_i32_0 : i32, i32
  }
  func.func @transform_6(%arg0: i32) -> (i32, i32, i32) {
    %c0_i32 = arith.constant 0 : i32
    %c0_i32_0 = arith.constant 0 : i32
    %c0_i32_1 = arith.constant 0 : i32
    %c0_i32_2 = arith.constant 0 : i32
    return %c0_i32, %c0_i32_0, %c0_i32_1 : i32, i32, i32
  }
  func.func @transform_7(%arg0: i32) -> (i32, i32, i32) {
    %c0_i32 = arith.constant 0 : i32
    %c0_i32_0 = arith.constant 0 : i32
    %c0_i32_1 = arith.constant 0 : i32
    return %arg0, %c0_i32, %c0_i32_0 : i32, i32, i32
  }
}

</mosaic_0001>

<bundles_post_ra>
// kernel: discriminator_forward.2
= control target key start
LH: loop header
LB: loop body
LE: loop exit
PB: predicated region body
PF: predicated region fallthrough
CT: control target
= control target key end

     0   :  { %s2019_s12 = smov 0   ;;  %s2021_s13 = smov 0   ;;  %s2621_s0 = inlined_call_operand.vmem [shape: f32[2,2048,256], index: 0, kind: input, shape index: {}]   ;;  %s2622_s1 = inlined_call_operand.vmem [shape: f32[8,2048], index: 1, kind: input, shape index: {}]   ;;  %s2623_s2 = inlined_call_operand.vmem [shape: f32[8,1], index: 2, kind: input, shape index: {}]   ;;  %s2624_s3 = inlined_call_operand.vmem [shape: f32[2,8,256], index: 3, kind: output, shape index: {}]  }
   0x1   :  { %s2023_s14 = smov 0  }
   0x2 LB: > { %s25_s15 = sadd.s32 1, %s1992_s13  ;;  %p1411_p0 = scmp.ge.s32.totalorder %s1996_s14, 1  ;;  %s1996_s14 = sphi %s2023_s14, %s13_s14   ;;  %s1992_s13 = sphi %s2021_s13, %s2626_s13   ;;  %s1988_s12 = sphi %s2019_s12, %s2625_s12  }
   0x3   : > { %p27_p1 = scmp.ge.s32.totalorder %s25_s15, 2  ;;  %p158_p2 = scmp.lt.s32.totalorder %s1996_s14, 3 }
   0x5   : > { %s2628_s15 = smov (%p27_p1, %s25_s15), 0  ;;  %p159_p3 = pnand %p1411_p0, %p158_p2 }
   0x6   : > { %p191_p4 = scmp.lt.s32.totalorder (!%p159_p3), %s1988_s12, 1  ;;  %v211_v0 = vld [vmem:[%s2622_s1 + $0x8] sm:$0xff] (!%p159_p3) }
   0x7   : > { %162 = sbr.rel (%p159_p3) target bundleno = 497 (0x1f1), region = 32  ;;  %v219_v1 = vld [vmem:[%s2622_s1 + $0x48] sm:$0xff] (!%p159_p3)  ;;  %808 = vmatprep.mubr.f32.mxu1 (!%p159_p3), %v211_v0 }
   0x8   : > { %1092 = vmatprep.mubr.f32.mxu0 (!%p159_p3), %v219_v1 }
   0xe   : > { %s2630_s12 = smov (!%p191_p4, %s1988_s12), 1 }
   0xf   : > { %s1418_s20 = sshll.u32 %s2630_s12, 12 }
  0x10   : > { %s2049_s23 = scalar_lea.vmem %s2621_s0, %s1418_s20 }
  0x11   : > { %v227_v2 = vld [vmem:[%s2049_s23 + $0x8] sm:$0xff]  ;;  %v229_v3 = vld [vmem:[%s2049_s23 + $0x18] sm:$0xff]  ;;  %v226_v7 = vld [vmem:[%s2049_s23] sm:$0xff] }
  0x12   : > { %v483_v4 = vld [vmem:[%s2049_s23 + $0x808] sm:$0xff]  ;;  %v1420_v5 = vpack.c.bf16 %v229_v3, %v227_v2  ;;  %v485_v6 = vld [vmem:[%s2049_s23 + $0x818] sm:$0xff]  ;;  %v228_v8 = vld [vmem:[%s2049_s23 + $0x10] sm:$0xff] }
  0x13   : > { %v1676_v9 = vpack.c.bf16 %v485_v6, %v483_v4  ;;  %v1422_v10 = vpack.c.bf16 %v228_v8, %v226_v7  ;;  %v482_v11 = vld [vmem:[%s2049_s23 + $0x800] sm:$0xff]  ;;  %v484_v12 = vld [vmem:[%s2049_s23 + $0x810] sm:$0xff]  ;;  %v231_v13 = vld [vmem:[%s2049_s23 + $0x28] sm:$0xff] }
  0x14   : > { %1421 = vmatprep.subr.bf16.mxu1 %v1420_v5  ;;  %v1678_v14 = vpack.c.bf16 %v484_v12, %v482_v11  ;;  %v233_v15 = vld [vmem:[%s2049_s23 + $0x38] sm:$0xff]  ;;  %v487_v16 = vld [vmem:[%s2049_s23 + $0x828] sm:$0xff]  ;;  %v230_v20 = vld [vmem:[%s2049_s23 + $0x20] sm:$0xff] }
  0x15   : > { %v489_v17 = vld [vmem:[%s2049_s23 + $0x838] sm:$0xff]  ;;  %1677 = vmatprep.subr.bf16.mxu0 %v1676_v9  ;;  %1423 = vmatpush1.bf16.msra.mxu1 %v1422_v10  ;;  %v1424_v18 = vpack.c.bf16 %v233_v15, %v231_v13  ;;  %v232_v21 = vld [vmem:[%s2049_s23 + $0x30] sm:$0xff]  ;;  %v486_v22 = vld [vmem:[%s2049_s23 + $0x820] sm:$0xff] }
  0x16   : > { %v1680_v19 = vpack.c.bf16 %v489_v17, %v487_v16  ;;  %1679 = vmatpush1.bf16.msra.mxu0 %v1678_v14  ;;  %v1426_v23 = vpack.c.bf16 %v232_v21, %v230_v20  ;;  %v488_v24 = vld [vmem:[%s2049_s23 + $0x830] sm:$0xff]  ;;  %v235_v25 = vld [vmem:[%s2049_s23 + $0x48] sm:$0xff]  ;;  %v237_v26 = vld [vmem:[%s2049_s23 + $0x58] sm:$0xff] }
  0x17   : > { %1425 = vmatprep.subr.bf16.mxu1 %v1424_v18  ;;  %v1682_v27 = vpack.c.bf16 %v488_v24, %v486_v22  ;;  %v1428_v28 = vpack.c.bf16 %v237_v26, %v235_v25  ;;  %v491_v29 = vld [vmem:[%s2049_s23 + $0x848] sm:$0xff]  ;;  %v493_v30 = vld [vmem:[%s2049_s23 + $0x858] sm:$0xff]  ;;  %v234_v31 = vld [vmem:[%s2049_s23 + $0x40] sm:$0xff] }
  0x18   : > { %1681 = vmatprep.subr.bf16.mxu0 %v1680_v19  ;;  %v1684_v32 = vpack.c.bf16 %v493_v30, %v491_v29  ;;  %v236_v33 = vld [vmem:[%s2049_s23 + $0x50] sm:$0xff]  ;;  %v490_v34 = vld [vmem:[%s2049_s23 + $0x840] sm:$0xff]  ;;  %v239_v37 = vld [vmem:[%s2049_s23 + $0x68] sm:$0xff] }
  0x19   : > { %v492_v35 = vld [vmem:[%s2049_s23 + $0x850] sm:$0xff]  ;;  %1427 = vmatpush1.bf16.msra.mxu1 %v1426_v23  ;;  %v1430_v36 = vpack.c.bf16 %v236_v33, %v234_v31  ;;  %v241_v38 = vld [vmem:[%s2049_s23 + $0x78] sm:$0xff]  ;;  %v495_v39 = vld [vmem:[%s2049_s23 + $0x868] sm:$0xff] }
  0x1a   : > { %1683 = vmatpush1.bf16.msra.mxu0 %v1682_v27  ;;  %1429 = vmatprep.subr.bf16.mxu1 %v1428_v28  ;;  %v1686_v40 = vpack.c.bf16 %v492_v35, %v490_v34  ;;  %v1432_v41 = vpack.c.bf16 %v241_v38, %v239_v37  ;;  %v497_v42 = vld [vmem:[%s2049_s23 + $0x878] sm:$0xff]  ;;  %v238_v43 = vld [vmem:[%s2049_s23 + $0x60] sm:$0xff]  ;;  %v240_v44 = vld [vmem:[%s2049_s23 + $0x70] sm:$0xff] }
  0x1b   : > { %1685 = vmatprep.subr.bf16.mxu0 %v1684_v32  ;;  %v1688_v45 = vpack.c.bf16 %v497_v42, %v495_v39  ;;  %v494_v46 = vld [vmem:[%s2049_s23 + $0x860] sm:$0xff]  ;;  %v496_v47 = vld [vmem:[%s2049_s23 + $0x870] sm:$0xff]  ;;  %v243_v48 = vld [vmem:[%s2049_s23 + $0x88] sm:$0xff]  ;;  %v1434_v52 = vpack.c.bf16 %v240_v44, %v238_v43 }
  0x1c   : > { %v245_v49 = vld [vmem:[%s2049_s23 + $0x98] sm:$0xff]  ;;  %v499_v50 = vld [vmem:[%s2049_s23 + $0x888] sm:$0xff]  ;;  %v1690_v53 = vpack.c.bf16 %v496_v47, %v494_v46  ;;  %v242_v55 = vld [vmem:[%s2049_s23 + $0x80] sm:$0xff] }
  0x1d   : > { %v501_v51 = vld [vmem:[%s2049_s23 + $0x898] sm:$0xff]  ;;  %1431 = vmatpush1.bf16.msra.mxu1 %v1430_v36  ;;  %v1436_v54 = vpack.c.bf16 %v245_v49, %v243_v48  ;;  %v244_v56 = vld [vmem:[%s2049_s23 + $0x90] sm:$0xff]  ;;  %v498_v57 = vld [vmem:[%s2049_s23 + $0x880] sm:$0xff] }
  0x1e   : > { %1687 = vmatpush1.bf16.msra.mxu0 %v1686_v40  ;;  %1433 = vmatprep.subr.bf16.mxu1 %v1432_v41  ;;  %v1692_v58 = vpack.c.bf16 %v501_v51, %v499_v50  ;;  %v500_v59 = vld [vmem:[%s2049_s23 + $0x890] sm:$0xff]  ;;  %v247_v60 = vld [vmem:[%s2049_s23 + $0xa8] sm:$0xff]  ;;  %v249_v61 = vld [vmem:[%s2049_s23 + $0xb8] sm:$0xff]  ;;  %v1438_v0 = vpack.c.bf16 %v244_v56, %v242_v55 }
  0x1f   : > { %1689 = vmatprep.subr.bf16.mxu0 %v1688_v45  ;;  %v503_v62 = vld [vmem:[%s2049_s23 + $0x8a8] sm:$0xff]  ;;  %v505_v63 = vld [vmem:[%s2049_s23 + $0x8b8] sm:$0xff]  ;;  %v1694_v1 = vpack.c.bf16 %v500_v59, %v498_v57  ;;  %v1440_v2 = vpack.c.bf16 %v249_v61, %v247_v60  ;;  %v246_v3 = vld [vmem:[%s2049_s23 + $0xa0] sm:$0xff] }
  0x20   : > { %v248_v4 = vld [vmem:[%s2049_s23 + $0xb0] sm:$0xff]  ;;  %v502_v5 = vld [vmem:[%s2049_s23 + $0x8a0] sm:$0xff]  ;;  %v1696_v6 = vpack.c.bf16 %v505_v63, %v503_v62  ;;  %v251_v8 = vld [vmem:[%s2049_s23 + $0xc8] sm:$0xff] }
  0x21   : > { %1435 = vmatpush1.bf16.msra.mxu1 %v1434_v52  ;;  %v504_v7 = vld [vmem:[%s2049_s23 + $0x8b0] sm:$0xff]  ;;  %v253_v9 = vld [vmem:[%s2049_s23 + $0xd8] sm:$0xff]  ;;  %v507_v10 = vld [vmem:[%s2049_s23 + $0x8c8] sm:$0xff]  ;;  %v1442_v12 = vpack.c.bf16 %v248_v4, %v246_v3 }
  0x22   : > { %1691 = vmatpush1.bf16.msra.mxu0 %v1690_v53  ;;  %1437 = vmatprep.subr.bf16.mxu1 %v1436_v54  ;;  %v509_v11 = vld [vmem:[%s2049_s23 + $0x8d8] sm:$0xff]  ;;  %v1698_v13 = vpack.c.bf16 %v504_v7, %v502_v5  ;;  %v1444_v14 = vpack.c.bf16 %v253_v9, %v251_v8  ;;  %v250_v15 = vld [vmem:[%s2049_s23 + $0xc0] sm:$0xff]  ;;  %v252_v16 = vld [vmem:[%s2049_s23 + $0xd0] sm:$0xff] }
  0x23   : > { %1693 = vmatprep.subr.bf16.mxu0 %v1692_v58  ;;  %v506_v17 = vld [vmem:[%s2049_s23 + $0x8c0] sm:$0xff]  ;;  %v1700_v18 = vpack.c.bf16 %v509_v11, %v507_v10  ;;  %v508_v19 = vld [vmem:[%s2049_s23 + $0x8d0] sm:$0xff]  ;;  %v255_v20 = vld [vmem:[%s2049_s23 + $0xe8] sm:$0xff]  ;;  %v1446_v24 = vpack.c.bf16 %v252_v16, %v250_v15 }
  0x24   : > { %v257_v21 = vld [vmem:[%s2049_s23 + $0xf8] sm:$0xff]  ;;  %v511_v22 = vld [vmem:[%s2049_s23 + $0x8e8] sm:$0xff]  ;;  %v1702_v25 = vpack.c.bf16 %v508_v19, %v506_v17  ;;  %v254_v27 = vld [vmem:[%s2049_s23 + $0xe0] sm:$0xff] }
  0x25   : > { %1439 = vmatpush1.bf16.msra.mxu1 %v1438_v0  ;;  %v513_v23 = vld [vmem:[%s2049_s23 + $0x8f8] sm:$0xff]  ;;  %v1448_v26 = vpack.c.bf16 %v257_v21, %v255_v20  ;;  %v256_v28 = vld [vmem:[%s2049_s23 + $0xf0] sm:$0xff]  ;;  %v510_v29 = vld [vmem:[%s2049_s23 + $0x8e0] sm:$0xff] }
  0x26   : > { %1695 = vmatpush1.bf16.msra.mxu0 %v1694_v1  ;;  %1441 = vmatprep.subr.bf16.mxu1 %v1440_v2  ;;  %v1704_v30 = vpack.c.bf16 %v513_v23, %v511_v22  ;;  %v512_v31 = vld [vmem:[%s2049_s23 + $0x8f0] sm:$0xff]  ;;  %v259_v32 = vld [vmem:[%s2049_s23 + $0x108] sm:$0xff]  ;;  %v261_v33 = vld [vmem:[%s2049_s23 + $0x118] sm:$0xff]  ;;  %v1450_v36 = vpack.c.bf16 %v256_v28, %v254_v27 }
  0x27   : > { %1697 = vmatprep.subr.bf16.mxu0 %v1696_v6  ;;  %v515_v34 = vld [vmem:[%s2049_s23 + $0x908] sm:$0xff]  ;;  %v517_v35 = vld [vmem:[%s2049_s23 + $0x918] sm:$0xff]  ;;  %v1706_v37 = vpack.c.bf16 %v512_v31, %v510_v29  ;;  %v1452_v38 = vpack.c.bf16 %v261_v33, %v259_v32  ;;  %v258_v39 = vld [vmem:[%s2049_s23 + $0x100] sm:$0xff] }
  0x28   : > { %v260_v40 = vld [vmem:[%s2049_s23 + $0x110] sm:$0xff]  ;;  %v514_v41 = vld [vmem:[%s2049_s23 + $0x900] sm:$0xff]  ;;  %v1708_v42 = vpack.c.bf16 %v517_v35, %v515_v34  ;;  %v263_v44 = vld [vmem:[%s2049_s23 + $0x128] sm:$0xff] }
  0x29   : > { %1443 = vmatpush1.bf16.msra.mxu1 %v1442_v12  ;;  %v516_v43 = vld [vmem:[%s2049_s23 + $0x910] sm:$0xff]  ;;  %v265_v45 = vld [vmem:[%s2049_s23 + $0x138] sm:$0xff]  ;;  %v519_v46 = vld [vmem:[%s2049_s23 + $0x928] sm:$0xff]  ;;  %v1454_v48 = vpack.c.bf16 %v260_v40, %v258_v39 }
  0x2a   : > { %1699 = vmatpush1.bf16.msra.mxu0 %v1698_v13  ;;  %1445 = vmatprep.subr.bf16.mxu1 %v1444_v14  ;;  %v521_v47 = vld [vmem:[%s2049_s23 + $0x938] sm:$0xff]  ;;  %v1710_v49 = vpack.c.bf16 %v516_v43, %v514_v41  ;;  %v1456_v50 = vpack.c.bf16 %v265_v45, %v263_v44  ;;  %v262_v51 = vld [vmem:[%s2049_s23 + $0x120] sm:$0xff]  ;;  %v264_v52 = vld [vmem:[%s2049_s23 + $0x130] sm:$0xff] }
  0x2b   : > { %1701 = vmatprep.subr.bf16.mxu0 %v1700_v18  ;;  %v518_v53 = vld [vmem:[%s2049_s23 + $0x920] sm:$0xff]  ;;  %v1712_v54 = vpack.c.bf16 %v521_v47, %v519_v46  ;;  %v520_v55 = vld [vmem:[%s2049_s23 + $0x930] sm:$0xff]  ;;  %v267_v56 = vld [vmem:[%s2049_s23 + $0x148] sm:$0xff]  ;;  %v1458_v60 = vpack.c.bf16 %v264_v52, %v262_v51 }
  0x2c   : > { %v269_v57 = vld [vmem:[%s2049_s23 + $0x158] sm:$0xff]  ;;  %v523_v58 = vld [vmem:[%s2049_s23 + $0x948] sm:$0xff]  ;;  %v1714_v61 = vpack.c.bf16 %v520_v55, %v518_v53  ;;  %v266_v63 = vld [vmem:[%s2049_s23 + $0x140] sm:$0xff] }
  0x2d   : > { %1447 = vmatpush1.bf16.msra.mxu1 %v1446_v24  ;;  %v525_v59 = vld [vmem:[%s2049_s23 + $0x958] sm:$0xff]  ;;  %v1460_v62 = vpack.c.bf16 %v269_v57, %v267_v56  ;;  %v268_v0 = vld [vmem:[%s2049_s23 + $0x150] sm:$0xff]  ;;  %v522_v1 = vld [vmem:[%s2049_s23 + $0x940] sm:$0xff] }
  0x2e   : > { %1703 = vmatpush1.bf16.msra.mxu0 %v1702_v25  ;;  %1449 = vmatprep.subr.bf16.mxu1 %v1448_v26  ;;  %v1716_v2 = vpack.c.bf16 %v525_v59, %v523_v58  ;;  %v524_v3 = vld [vmem:[%s2049_s23 + $0x950] sm:$0xff]  ;;  %v271_v4 = vld [vmem:[%s2049_s23 + $0x168] sm:$0xff]  ;;  %v273_v5 = vld [vmem:[%s2049_s23 + $0x178] sm:$0xff]  ;;  %v1462_v8 = vpack.c.bf16 %v268_v0, %v266_v63 }
  0x2f   : > { %1705 = vmatprep.subr.bf16.mxu0 %v1704_v30  ;;  %v527_v6 = vld [vmem:[%s2049_s23 + $0x968] sm:$0xff]  ;;  %v529_v7 = vld [vmem:[%s2049_s23 + $0x978] sm:$0xff]  ;;  %v1718_v9 = vpack.c.bf16 %v524_v3, %v522_v1  ;;  %v1464_v10 = vpack.c.bf16 %v273_v5, %v271_v4  ;;  %v270_v11 = vld [vmem:[%s2049_s23 + $0x160] sm:$0xff] }
  0x30   : > { %v272_v12 = vld [vmem:[%s2049_s23 + $0x170] sm:$0xff]  ;;  %v526_v13 = vld [vmem:[%s2049_s23 + $0x960] sm:$0xff]  ;;  %v1720_v14 = vpack.c.bf16 %v529_v7, %v527_v6  ;;  %v275_v16 = vld [vmem:[%s2049_s23 + $0x188] sm:$0xff] }
  0x31   : > { %1451 = vmatpush1.bf16.msra.mxu1 %v1450_v36  ;;  %v528_v15 = vld [vmem:[%s2049_s23 + $0x970] sm:$0xff]  ;;  %v277_v17 = vld [vmem:[%s2049_s23 + $0x198] sm:$0xff]  ;;  %v531_v18 = vld [vmem:[%s2049_s23 + $0x988] sm:$0xff]  ;;  %v1466_v20 = vpack.c.bf16 %v272_v12, %v270_v11 }
  0x32   : > { %1707 = vmatpush1.bf16.msra.mxu0 %v1706_v37  ;;  %1453 = vmatprep.subr.bf16.mxu1 %v1452_v38  ;;  %v533_v19 = vld [vmem:[%s2049_s23 + $0x998] sm:$0xff]  ;;  %v1722_v21 = vpack.c.bf16 %v528_v15, %v526_v13  ;;  %v1468_v22 = vpack.c.bf16 %v277_v17, %v275_v16  ;;  %v274_v23 = vld [vmem:[%s2049_s23 + $0x180] sm:$0xff]  ;;  %v276_v24 = vld [vmem:[%s2049_s23 + $0x190] sm:$0xff] }
  0x33   : > { %1709 = vmatprep.subr.bf16.mxu0 %v1708_v42  ;;  %v530_v25 = vld [vmem:[%s2049_s23 + $0x980] sm:$0xff]  ;;  %v1724_v26 = vpack.c.bf16 %v533_v19, %v531_v18  ;;  %v532_v27 = vld [vmem:[%s2049_s23 + $0x990] sm:$0xff]  ;;  %v279_v28 = vld [vmem:[%s2049_s23 + $0x1a8] sm:$0xff]  ;;  %v1470_v32 = vpack.c.bf16 %v276_v24, %v274_v23 }
  0x34   : > { %v281_v29 = vld [vmem:[%s2049_s23 + $0x1b8] sm:$0xff]  ;;  %v535_v30 = vld [vmem:[%s2049_s23 + $0x9a8] sm:$0xff]  ;;  %v1726_v33 = vpack.c.bf16 %v532_v27, %v530_v25  ;;  %v278_v35 = vld [vmem:[%s2049_s23 + $0x1a0] sm:$0xff] }
  0x35   : > { %1455 = vmatpush1.bf16.msra.mxu1 %v1454_v48  ;;  %v537_v31 = vld [vmem:[%s2049_s23 + $0x9b8] sm:$0xff]  ;;  %v1472_v34 = vpack.c.bf16 %v281_v29, %v279_v28  ;;  %v280_v36 = vld [vmem:[%s2049_s23 + $0x1b0] sm:$0xff]  ;;  %v534_v37 = vld [vmem:[%s2049_s23 + $0x9a0] sm:$0xff] }
  0x36   : > { %1711 = vmatpush1.bf16.msra.mxu0 %v1710_v49  ;;  %1457 = vmatprep.subr.bf16.mxu1 %v1456_v50  ;;  %v1728_v38 = vpack.c.bf16 %v537_v31, %v535_v30  ;;  %v536_v39 = vld [vmem:[%s2049_s23 + $0x9b0] sm:$0xff]  ;;  %v283_v40 = vld [vmem:[%s2049_s23 + $0x1c8] sm:$0xff]  ;;  %v285_v41 = vld [vmem:[%s2049_s23 + $0x1d8] sm:$0xff]  ;;  %v1474_v44 = vpack.c.bf16 %v280_v36, %v278_v35 }
  0x37   : > { %1713 = vmatprep.subr.bf16.mxu0 %v1712_v54  ;;  %v539_v42 = vld [vmem:[%s2049_s23 + $0x9c8] sm:$0xff]  ;;  %v541_v43 = vld [vmem:[%s2049_s23 + $0x9d8] sm:$0xff]  ;;  %v1730_v45 = vpack.c.bf16 %v536_v39, %v534_v37  ;;  %v1476_v46 = vpack.c.bf16 %v285_v41, %v283_v40  ;;  %v282_v47 = vld [vmem:[%s2049_s23 + $0x1c0] sm:$0xff] }
  0x38   : > { %v284_v48 = vld [vmem:[%s2049_s23 + $0x1d0] sm:$0xff]  ;;  %v538_v49 = vld [vmem:[%s2049_s23 + $0x9c0] sm:$0xff]  ;;  %v1732_v50 = vpack.c.bf16 %v541_v43, %v539_v42  ;;  %v287_v52 = vld [vmem:[%s2049_s23 + $0x1e8] sm:$0xff] }
  0x39   : > { %1459 = vmatpush1.bf16.msra.mxu1 %v1458_v60  ;;  %v540_v51 = vld [vmem:[%s2049_s23 + $0x9d0] sm:$0xff]  ;;  %v289_v53 = vld [vmem:[%s2049_s23 + $0x1f8] sm:$0xff]  ;;  %v543_v54 = vld [vmem:[%s2049_s23 + $0x9e8] sm:$0xff]  ;;  %v1478_v56 = vpack.c.bf16 %v284_v48, %v282_v47 }
  0x3a   : > { %1715 = vmatpush1.bf16.msra.mxu0 %v1714_v61  ;;  %1461 = vmatprep.subr.bf16.mxu1 %v1460_v62  ;;  %v545_v55 = vld [vmem:[%s2049_s23 + $0x9f8] sm:$0xff]  ;;  %v1734_v57 = vpack.c.bf16 %v540_v51, %v538_v49  ;;  %v1480_v58 = vpack.c.bf16 %v289_v53, %v287_v52  ;;  %v286_v59 = vld [vmem:[%s2049_s23 + $0x1e0] sm:$0xff]  ;;  %v288_v60 = vld [vmem:[%s2049_s23 + $0x1f0] sm:$0xff] }
  0x3b   : > { %1717 = vmatprep.subr.bf16.mxu0 %v1716_v2  ;;  %v542_v61 = vld [vmem:[%s2049_s23 + $0x9e0] sm:$0xff]  ;;  %v1736_v62 = vpack.c.bf16 %v545_v55, %v543_v54  ;;  %v544_v63 = vld [vmem:[%s2049_s23 + $0x9f0] sm:$0xff]  ;;  %v291_v0 = vld [vmem:[%s2049_s23 + $0x208] sm:$0xff]  ;;  %v1482_v4 = vpack.c.bf16 %v288_v60, %v286_v59 }
  0x3c   : > { %v293_v1 = vld [vmem:[%s2049_s23 + $0x218] sm:$0xff]  ;;  %v547_v2 = vld [vmem:[%s2049_s23 + $0xa08] sm:$0xff]  ;;  %v1738_v5 = vpack.c.bf16 %v544_v63, %v542_v61  ;;  %v290_v7 = vld [vmem:[%s2049_s23 + $0x200] sm:$0xff] }
  0x3d   : > { %1463 = vmatpush1.bf16.msra.mxu1 %v1462_v8  ;;  %v549_v3 = vld [vmem:[%s2049_s23 + $0xa18] sm:$0xff]  ;;  %v1484_v6 = vpack.c.bf16 %v293_v1, %v291_v0  ;;  %v292_v8 = vld [vmem:[%s2049_s23 + $0x210] sm:$0xff]  ;;  %v295_v12 = vld [vmem:[%s2049_s23 + $0x228] sm:$0xff] }
  0x3e   : > { %1719 = vmatpush1.bf16.msra.mxu0 %v1718_v9  ;;  %1465 = vmatprep.subr.bf16.mxu1 %v1464_v10  ;;  %v546_v9 = vld [vmem:[%s2049_s23 + $0xa00] sm:$0xff]  ;;  %v1740_v10 = vpack.c.bf16 %v549_v3, %v547_v2  ;;  %v548_v11 = vld [vmem:[%s2049_s23 + $0xa10] sm:$0xff]  ;;  %v297_v13 = vld [vmem:[%s2049_s23 + $0x238] sm:$0xff]  ;;  %v1486_v17 = vpack.c.bf16 %v292_v8, %v290_v7 }
  0x3f   : > { %1721 = vmatprep.subr.bf16.mxu0 %v1720_v14  ;;  %v551_v14 = vld [vmem:[%s2049_s23 + $0xa28] sm:$0xff]  ;;  %v553_v15 = vld [vmem:[%s2049_s23 + $0xa38] sm:$0xff]  ;;  %v210_v16 = vld [vmem:[%s2622_s1] sm:$0xff]  ;;  %v1742_v19 = vpack.c.bf16 %v548_v11, %v546_v9 }
  0x40   : > { %v218_v18 = vld [vmem:[%s2622_s1 + $0x40] sm:$0xff]  ;;  %v1744_v24 = vpack.c.bf16 %v553_v15, %v551_v14  ;;  %v552_v25 = vld [vmem:[%s2049_s23 + $0xa30] sm:$0xff]  ;;  %v301_v27 = vld [vmem:[%s2049_s23 + $0x258] sm:$0xff] }
  0x41   : > { %1467 = vmatpush1.bf16.msra.mxu1 %v1466_v20  ;;  %v1488_v20 = vpack.c.bf16 %v297_v13, %v295_v12  ;;  %v550_v23 = vld [vmem:[%s2049_s23 + $0xa20] sm:$0xff]  ;;  %v555_v28 = vld [vmem:[%s2049_s23 + $0xa48] sm:$0xff]  ;;  %v557_v29 = vld [vmem:[%s2049_s23 + $0xa58] sm:$0xff] }
  0x42   : > { %1723 = vmatpush1.bf16.msra.mxu0 %v1722_v21  ;;  %1469 = vmatprep.subr.bf16.mxu1 %v1468_v22  ;;  %v294_v21 = vld [vmem:[%s2049_s23 + $0x220] sm:$0xff]  ;;  %v296_v22 = vld [vmem:[%s2049_s23 + $0x230] sm:$0xff]  ;;  %v1746_v31 = vpack.c.bf16 %v552_v25, %v550_v23  ;;  %v1748_v36 = vpack.c.bf16 %v557_v29, %v555_v28  ;;  %v305_v39 = vld [vmem:[%s2049_s23 + $0x278] sm:$0xff] }
  0x43   : > { %1725 = vmatprep.subr.bf16.mxu0 %v1724_v26  ;;  %v299_v26 = vld [vmem:[%s2049_s23 + $0x248] sm:$0xff]  ;;  %v1490_v30 = vpack.c.bf16 %v296_v22, %v294_v21  ;;  %v554_v35 = vld [vmem:[%s2049_s23 + $0xa40] sm:$0xff]  ;;  %v556_v37 = vld [vmem:[%s2049_s23 + $0xa50] sm:$0xff] }
  0x44   : > { %v559_v40 = vld [vmem:[%s2049_s23 + $0xa68] sm:$0xff]  ;;  %v561_v41 = vld [vmem:[%s2049_s23 + $0xa78] sm:$0xff]  ;;  %v1750_v43 = vpack.c.bf16 %v556_v37, %v554_v35  ;;  %v558_v47 = vld [vmem:[%s2049_s23 + $0xa60] sm:$0xff] }
  0x45   : > { %1471 = vmatpush1.bf16.msra.mxu1 %v1470_v32  ;;  %v1492_v32 = vpack.c.bf16 %v301_v27, %v299_v26  ;;  %v1752_v48 = vpack.c.bf16 %v561_v41, %v559_v40  ;;  %v560_v49 = vld [vmem:[%s2049_s23 + $0xa70] sm:$0xff]  ;;  %v309_v51 = vld [vmem:[%s2049_s23 + $0x298] sm:$0xff]  ;;  %v563_v52 = vld [vmem:[%s2049_s23 + $0xa88] sm:$0xff] }
  0x46   : > { %1727 = vmatpush1.bf16.msra.mxu0 %v1726_v33  ;;  %1473 = vmatprep.subr.bf16.mxu1 %v1472_v34  ;;  %v298_v33 = vld [vmem:[%s2049_s23 + $0x240] sm:$0xff]  ;;  %v300_v34 = vld [vmem:[%s2049_s23 + $0x250] sm:$0xff]  ;;  %v565_v53 = vld [vmem:[%s2049_s23 + $0xa98] sm:$0xff]  ;;  %v1754_v55 = vpack.c.bf16 %v560_v49, %v558_v47 }
  0x47   : > { %1729 = vmatprep.subr.bf16.mxu0 %v1728_v38  ;;  %v303_v38 = vld [vmem:[%s2049_s23 + $0x268] sm:$0xff]  ;;  %v1494_v42 = vpack.c.bf16 %v300_v34, %v298_v33  ;;  %v562_v59 = vld [vmem:[%s2049_s23 + $0xa80] sm:$0xff]  ;;  %v1756_v60 = vpack.c.bf16 %v565_v53, %v563_v52  ;;  %v564_v61 = vld [vmem:[%s2049_s23 + $0xa90] sm:$0xff] }
  0x48   : > { %v313_v63 = vld [vmem:[%s2049_s23 + $0x2b8] sm:$0xff]  ;;  %v567_v0 = vld [vmem:[%s2049_s23 + $0xaa8] sm:$0xff]  ;;  %v1758_v3 = vpack.c.bf16 %v564_v61, %v562_v59  ;;  %v566_v7 = vld [vmem:[%s2049_s23 + $0xaa0] sm:$0xff] }
  0x49   : > { %1475 = vmatpush1.bf16.msra.mxu1 %v1474_v44  ;;  %v1496_v44 = vpack.c.bf16 %v305_v39, %v303_v38  ;;  %v569_v1 = vld [vmem:[%s2049_s23 + $0xab8] sm:$0xff]  ;;  %v568_v9 = vld [vmem:[%s2049_s23 + $0xab0] sm:$0xff]  ;;  %v571_v12 = vld [vmem:[%s2049_s23 + $0xac8] sm:$0xff] }
  0x4a   : > { %1731 = vmatpush1.bf16.msra.mxu0 %v1730_v45  ;;  %1477 = vmatprep.subr.bf16.mxu1 %v1476_v46  ;;  %v302_v45 = vld [vmem:[%s2049_s23 + $0x260] sm:$0xff]  ;;  %v304_v46 = vld [vmem:[%s2049_s23 + $0x270] sm:$0xff]  ;;  %v1760_v8 = vpack.c.bf16 %v569_v1, %v567_v0  ;;  %v317_v11 = vld [vmem:[%s2049_s23 + $0x2d8] sm:$0xff] }
  0x4b   : > { %1733 = vmatprep.subr.bf16.mxu0 %v1732_v50  ;;  %v307_v50 = vld [vmem:[%s2049_s23 + $0x288] sm:$0xff]  ;;  %v1498_v54 = vpack.c.bf16 %v304_v46, %v302_v45  ;;  %v573_v13 = vld [vmem:[%s2049_s23 + $0xad8] sm:$0xff]  ;;  %v314_v15 = vld [vmem:[%s2049_s23 + $0x2c0] sm:$0xff] }
  0x4c   : > { %v213_v21 = vld [vmem:[%s2622_s1 + $0x18] sm:$0xff]  ;;  %v1764_v22 = vpack.c.bf16 %v573_v13, %v571_v12  ;;  %v319_v23 = vld [vmem:[%s2049_s23 + $0x2e8] sm:$0xff]  ;;  %v574_v33 = vld [vmem:[%s2049_s23 + $0xae0] sm:$0xff] }
  0x4d   : > { %1479 = vmatpush1.bf16.msra.mxu1 %v1478_v56  ;;  %v1500_v56 = vpack.c.bf16 %v309_v51, %v307_v50  ;;  %v221_v25 = vld [vmem:[%s2622_s1 + $0x58] sm:$0xff]  ;;  %v575_v26 = vld [vmem:[%s2049_s23 + $0xae8] sm:$0xff]  ;;  %v576_v35 = vld [vmem:[%s2049_s23 + $0xaf0] sm:$0xff] }
  0x4e   : > { %1735 = vmatpush1.bf16.msra.mxu0 %v1734_v57  ;;  %1481 = vmatprep.subr.bf16.mxu1 %v1480_v58  ;;  %v306_v57 = vld [vmem:[%s2049_s23 + $0x280] sm:$0xff]  ;;  %v308_v58 = vld [vmem:[%s2049_s23 + $0x290] sm:$0xff]  ;;  %v577_v27 = vld [vmem:[%s2049_s23 + $0xaf8] sm:$0xff]  ;;  %v1770_v41 = vpack.c.bf16 %v576_v35, %v574_v33 }
  0x4f   : > { %1737 = vmatprep.subr.bf16.mxu0 %v1736_v62  ;;  %v311_v62 = vld [vmem:[%s2049_s23 + $0x2a8] sm:$0xff]  ;;  %v1502_v2 = vpack.c.bf16 %v308_v58, %v306_v57  ;;  %v1768_v34 = vpack.c.bf16 %v577_v27, %v575_v26  ;;  %v325_v37 = vld [vmem:[%s2049_s23 + $0x318] sm:$0xff]  ;;  %v578_v45 = vld [vmem:[%s2049_s23 + $0xb00] sm:$0xff] }
  0x50   : > { %v579_v38 = vld [vmem:[%s2049_s23 + $0xb08] sm:$0xff]  ;;  %v581_v39 = vld [vmem:[%s2049_s23 + $0xb18] sm:$0xff]  ;;  %v580_v47 = vld [vmem:[%s2049_s23 + $0xb10] sm:$0xff] }
  0x51   : > { %1483 = vmatpush1.bf16.msra.mxu1 %v1482_v4  ;;  %v1504_v4 = vpack.c.bf16 %v313_v63, %v311_v62  ;;  %v1772_v46 = vpack.c.bf16 %v581_v39, %v579_v38  ;;  %v329_v49 = vld [vmem:[%s2049_s23 + $0x338] sm:$0xff]  ;;  %v583_v50 = vld [vmem:[%s2049_s23 + $0xb28] sm:$0xff]  ;;  %v1774_v53 = vpack.c.bf16 %v580_v47, %v578_v45  ;;  %v582_v57 = vld [vmem:[%s2049_s23 + $0xb20] sm:$0xff] }
  0x52   : > { %1739 = vmatpush1.bf16.msra.mxu0 %v1738_v5  ;;  %1485 = vmatprep.subr.bf16.mxu1 %v1484_v6  ;;  %v310_v5 = vld [vmem:[%s2049_s23 + $0x2a0] sm:$0xff]  ;;  %v312_v6 = vld [vmem:[%s2049_s23 + $0x2b0] sm:$0xff]  ;;  %v585_v51 = vld [vmem:[%s2049_s23 + $0xb38] sm:$0xff] }
  0x53   : > { %1741 = vmatprep.subr.bf16.mxu0 %v1740_v10  ;;  %v315_v10 = vld [vmem:[%s2049_s23 + $0x2c8] sm:$0xff]  ;;  %v1506_v14 = vpack.c.bf16 %v312_v6, %v310_v5  ;;  %v1776_v58 = vpack.c.bf16 %v585_v51, %v583_v50  ;;  %v584_v59 = vld [vmem:[%s2049_s23 + $0xb30] sm:$0xff]  ;;  %v333_v61 = vld [vmem:[%s2049_s23 + $0x358] sm:$0xff] }
  0x54   : > { %809 = vmatmul.mubr.f32.vlgmr.msra.gmra.mrb[0].mxu1 %v210_v16  ;;  %v316_v16 = vld [vmem:[%s2049_s23 + $0x2d0] sm:$0xff]  ;;  %v587_v62 = vld [vmem:[%s2049_s23 + $0xb48] sm:$0xff]  ;;  %v589_v63 = vld [vmem:[%s2049_s23 + $0xb58] sm:$0xff]  ;;  %v1778_v1 = vpack.c.bf16 %v584_v59, %v582_v57 }
  0x55   : > { %1487 = vmatpush1.bf16.msra.mxu1 %v1486_v17  ;;  %1093 = vmatmul.mubr.f32.vlgmr.msra.gmra.mrb[0].mxu0 %v218_v18  ;;  %v1762_v17 = vpack.c.bf16 %v568_v9, %v566_v7  ;;  %v1508_v18 = vpack.c.bf16 %v317_v11, %v315_v10  ;;  %v1510_v28 = vpack.c.bf16 %v316_v16, %v314_v15  ;;  %v586_v5 = vld [vmem:[%s2049_s23 + $0xb40] sm:$0xff]  ;;  %v588_v7 = vld [vmem:[%s2049_s23 + $0xb50] sm:$0xff]  ;;  %v337_v9 = vld [vmem:[%s2049_s23 + $0x378] sm:$0xff] }
  0x56   : > { %1743 = vmatpush1.bf16.msra.mxu0 %v1742_v19  ;;  %1489 = vmatprep.subr.bf16.mxu1 %v1488_v20  ;;  %v570_v19 = vld [vmem:[%s2049_s23 + $0xac0] sm:$0xff]  ;;  %v572_v20 = vld [vmem:[%s2049_s23 + $0xad0] sm:$0xff]  ;;  %v1780_v6 = vpack.c.bf16 %v589_v63, %v587_v62  ;;  %v591_v10 = vld [vmem:[%s2049_s23 + $0xb68] sm:$0xff]  ;;  %v1782_v13 = vpack.c.bf16 %v588_v7, %v586_v5 }
  0x57   : > { %1745 = vmatprep.subr.bf16.mxu0 %v1744_v24  ;;  %v321_v24 = vld [vmem:[%s2049_s23 + $0x2f8] sm:$0xff]  ;;  %879 = vmatprep.mubr.f32.mxu1 %v213_v21  ;;  %v1766_v29 = vpack.c.bf16 %v572_v20, %v570_v19  ;;  %v334_v15 = vld [vmem:[%s2049_s23 + $0x360] sm:$0xff]  ;;  %v336_v16 = vld [vmem:[%s2049_s23 + $0x370] sm:$0xff] }
  0x58   : > { %1163 = vmatprep.mubr.f32.mxu0 %v221_v25  ;;  %v593_v11 = vld [vmem:[%s2049_s23 + $0xb78] sm:$0xff]  ;;  %v592_v19 = vld [vmem:[%s2049_s23 + $0xb70] sm:$0xff]  ;;  %v339_v20 = vld [vmem:[%s2049_s23 + $0x388] sm:$0xff] }
  0x59   : > { %1491 = vmatpush1.bf16.msra.mxu1 %v1490_v30  ;;  %v1512_v30 = vpack.c.bf16 %v321_v24, %v319_v23  ;;  %v341_v21 = vld [vmem:[%s2049_s23 + $0x398] sm:$0xff]  ;;  %v1530_v24 = vpack.c.bf16 %v336_v16, %v334_v15  ;;  %v338_v27 = vld [vmem:[%s2049_s23 + $0x380] sm:$0xff]  ;;  %v612_v15 = vld [vmem:[%s2049_s23 + $0xc10] sm:$0xff] }
  0x5a   : > { %1747 = vmatpush1.bf16.msra.mxu0 %v1746_v31  ;;  %1493 = vmatprep.subr.bf16.mxu1 %v1492_v32  ;;  %v318_v31 = vld [vmem:[%s2049_s23 + $0x2e0] sm:$0xff]  ;;  %v320_v32 = vld [vmem:[%s2049_s23 + $0x2f0] sm:$0xff]  ;;  %v597_v23 = vld [vmem:[%s2049_s23 + $0xb98] sm:$0xff]  ;;  %v1532_v26 = vpack.c.bf16 %v341_v21, %v339_v20 }
  0x5b   : > { %1749 = vmatprep.subr.bf16.mxu0 %v1748_v36  ;;  %v323_v36 = vld [vmem:[%s2049_s23 + $0x308] sm:$0xff]  ;;  %v1514_v40 = vpack.c.bf16 %v320_v32, %v318_v31  ;;  %v596_v31 = vld [vmem:[%s2049_s23 + $0xb90] sm:$0xff]  ;;  %v345_v33 = vld [vmem:[%s2049_s23 + $0x3b8] sm:$0xff] }
  0x5c   : > { %v343_v32 = vld [vmem:[%s2049_s23 + $0x3a8] sm:$0xff]  ;;  %v601_v35 = vld [vmem:[%s2049_s23 + $0xbb8] sm:$0xff]  ;;  %v342_v39 = vld [vmem:[%s2049_s23 + $0x3a0] sm:$0xff] }
  0x5d   : > { %1495 = vmatpush1.bf16.msra.mxu1 %v1494_v42  ;;  %v1516_v42 = vpack.c.bf16 %v325_v37, %v323_v36  ;;  %v1536_v38 = vpack.c.bf16 %v345_v33, %v343_v32  ;;  %v349_v45 = vld [vmem:[%s2049_s23 + $0x3d8] sm:$0xff]  ;;  %v346_v51 = vld [vmem:[%s2049_s23 + $0x3c0] sm:$0xff]  ;;  %v359_v16 = vld [vmem:[%s2049_s23 + $0x428] sm:$0xff] }
  0x5e   : > { %1751 = vmatpush1.bf16.msra.mxu0 %v1750_v43  ;;  %1497 = vmatprep.subr.bf16.mxu1 %v1496_v44  ;;  %v322_v43 = vld [vmem:[%s2049_s23 + $0x300] sm:$0xff]  ;;  %v324_v44 = vld [vmem:[%s2049_s23 + $0x310] sm:$0xff]  ;;  %v605_v47 = vld [vmem:[%s2049_s23 + $0xbd8] sm:$0xff] }
  0x5f   : > { %1753 = vmatprep.subr.bf16.mxu0 %v1752_v48  ;;  %v327_v48 = vld [vmem:[%s2049_s23 + $0x328] sm:$0xff]  ;;  %v1518_v52 = vpack.c.bf16 %v324_v44, %v322_v43  ;;  %v600_v43 = vld [vmem:[%s2049_s23 + $0xbb0] sm:$0xff]  ;;  %v353_v57 = vld [vmem:[%s2049_s23 + $0x3f8] sm:$0xff] }
  0x60   : > { %v347_v44 = vld [vmem:[%s2049_s23 + $0x3c8] sm:$0xff]  ;;  %v609_v59 = vld [vmem:[%s2049_s23 + $0xbf8] sm:$0xff]  ;;  %v350_v63 = vld [vmem:[%s2049_s23 + $0x3e0] sm:$0xff] }
  0x61   : > { %1499 = vmatpush1.bf16.msra.mxu1 %v1498_v54  ;;  %v1520_v54 = vpack.c.bf16 %v329_v49, %v327_v48  ;;  %v1540_v50 = vpack.c.bf16 %v349_v45, %v347_v44  ;;  %v357_v5 = vld [vmem:[%s2049_s23 + $0x418] sm:$0xff]  ;;  %v212_v20 = vld [vmem:[%s2622_s1 + $0x10] sm:$0xff]  ;;  %v619_v32 = vld [vmem:[%s2049_s23 + $0xc48] sm:$0xff] }
  0x62   : > { %1755 = vmatpush1.bf16.msra.mxu0 %v1754_v55  ;;  %1501 = vmatprep.subr.bf16.mxu1 %v1500_v56  ;;  %v326_v55 = vld [vmem:[%s2049_s23 + $0x320] sm:$0xff]  ;;  %v328_v56 = vld [vmem:[%s2049_s23 + $0x330] sm:$0xff]  ;;  %v613_v7 = vld [vmem:[%s2049_s23 + $0xc18] sm:$0xff] }
  0x63   : > { %1757 = vmatprep.subr.bf16.mxu0 %v1756_v60  ;;  %v331_v60 = vld [vmem:[%s2049_s23 + $0x348] sm:$0xff]  ;;  %v1522_v0 = vpack.c.bf16 %v328_v56, %v326_v55  ;;  %v604_v55 = vld [vmem:[%s2049_s23 + $0xbd0] sm:$0xff]  ;;  %v621_v33 = vld [vmem:[%s2049_s23 + $0xc58] sm:$0xff] }
  0x64   : > { %v351_v56 = vld [vmem:[%s2049_s23 + $0x3e8] sm:$0xff]  ;;  %v369_v45 = vld [vmem:[%s2049_s23 + $0x478] sm:$0xff] }
  0x65   : > { %1503 = vmatpush1.bf16.msra.mxu1 %v1502_v2  ;;  %v1524_v2 = vpack.c.bf16 %v333_v61, %v331_v60  ;;  %v1544_v62 = vpack.c.bf16 %v353_v57, %v351_v56  ;;  %v367_v44 = vld [vmem:[%s2049_s23 + $0x468] sm:$0xff]  ;;  %v624_v56 = vld [vmem:[%s2049_s23 + $0xc70] sm:$0xff] }
  0x66   : > { %1759 = vmatpush1.bf16.msra.mxu0 %v1758_v3  ;;  %1505 = vmatprep.subr.bf16.mxu1 %v1504_v4  ;;  %v330_v3 = vld [vmem:[%s2049_s23 + $0x340] sm:$0xff]  ;;  %v332_v4 = vld [vmem:[%s2049_s23 + $0x350] sm:$0xff]  ;;  %v371_v57 = vld [vmem:[%s2049_s23 + $0x488] sm:$0xff] }
  0x67   : > { %1761 = vmatprep.subr.bf16.mxu0 %v1760_v8  ;;  %v335_v8 = vld [vmem:[%s2049_s23 + $0x368] sm:$0xff]  ;;  %v1526_v12 = vpack.c.bf16 %v332_v4, %v330_v3  ;;  %v608_v3 = vld [vmem:[%s2049_s23 + $0xbf0] sm:$0xff] }
  0x68   : > { %v355_v4 = vld [vmem:[%s2049_s23 + $0x408] sm:$0xff] }
  0x69   : > { %1507 = vmatpush1.bf16.msra.mxu1 %v1506_v14  ;;  %v1528_v14 = vpack.c.bf16 %v337_v9, %v335_v8 }
  0x6a   : > { %1763 = vmatpush1.bf16.msra.mxu0 %v1762_v17  ;;  %1509 = vmatprep.subr.bf16.mxu1 %v1508_v18  ;;  %v590_v17 = vld [vmem:[%s2049_s23 + $0xb60] sm:$0xff]  ;;  %v1784_v18 = vpack.c.bf16 %v593_v11, %v591_v10  ;;  %v1548_v10 = vpack.c.bf16 %v357_v5, %v355_v4  ;;  %v628_v4 = vld [vmem:[%s2049_s23 + $0xc90] sm:$0xff]  ;;  %v375_v5 = vld [vmem:[%s2049_s23 + $0x4a8] sm:$0xff] }
  0x6b   : > { %1765 = vmatprep.subr.bf16.mxu0 %v1764_v22  ;;  %v595_v22 = vld [vmem:[%s2049_s23 + $0xb88] sm:$0xff]  ;;  %v1786_v25 = vpack.c.bf16 %v592_v19, %v590_v17  ;;  %v354_v11 = vld [vmem:[%s2049_s23 + $0x400] sm:$0xff]  ;;  %v361_v17 = vld [vmem:[%s2049_s23 + $0x438] sm:$0xff] }
  0x6c   : > { %v617_v19 = vld [vmem:[%s2049_s23 + $0xc38] sm:$0xff] }
  0x6d   : > { %1511 = vmatpush1.bf16.msra.mxu1 %v1510_v28  ;;  %v340_v28 = vld [vmem:[%s2049_s23 + $0x390] sm:$0xff] }
  0x6e   : > { %1767 = vmatpush1.bf16.msra.mxu0 %v1766_v29  ;;  %1513 = vmatprep.subr.bf16.mxu1 %v1512_v30  ;;  %v594_v29 = vld [vmem:[%s2049_s23 + $0xb80] sm:$0xff]  ;;  %v1788_v30 = vpack.c.bf16 %v597_v23, %v595_v22  ;;  %v1534_v36 = vpack.c.bf16 %v340_v28, %v338_v27  ;;  %v220_v22 = vld [vmem:[%s2622_s1 + $0x50] sm:$0xff] }
  0x6f   : > { %1769 = vmatprep.subr.bf16.mxu0 %v1768_v34  ;;  %v599_v34 = vld [vmem:[%s2049_s23 + $0xba8] sm:$0xff]  ;;  %v1790_v37 = vpack.c.bf16 %v596_v31, %v594_v29  ;;  %v614_v27 = vld [vmem:[%s2049_s23 + $0xc20] sm:$0xff]  ;;  %v616_v29 = vld [vmem:[%s2049_s23 + $0xc30] sm:$0xff] }
  0x70   : > { %v365_v31 = vld [vmem:[%s2049_s23 + $0x458] sm:$0xff] }
  0x71   : > { %1515 = vmatpush1.bf16.msra.mxu1 %v1514_v40  ;;  %v344_v40 = vld [vmem:[%s2049_s23 + $0x3b0] sm:$0xff] }
  0x72   : > { %1771 = vmatpush1.bf16.msra.mxu0 %v1770_v41  ;;  %1517 = vmatprep.subr.bf16.mxu1 %v1516_v42  ;;  %v598_v41 = vld [vmem:[%s2049_s23 + $0xba0] sm:$0xff]  ;;  %v1792_v42 = vpack.c.bf16 %v601_v35, %v599_v34  ;;  %v1538_v48 = vpack.c.bf16 %v344_v40, %v342_v39  ;;  %v215_v34 = vld [vmem:[%s2622_s1 + $0x28] sm:$0xff]  ;;  %v364_v40 = vld [vmem:[%s2049_s23 + $0x450] sm:$0xff] }
  0x73   : > { %1773 = vmatprep.subr.bf16.mxu0 %v1772_v46  ;;  %v603_v46 = vld [vmem:[%s2049_s23 + $0xbc8] sm:$0xff]  ;;  %v1794_v49 = vpack.c.bf16 %v600_v43, %v598_v41  ;;  %v362_v39 = vld [vmem:[%s2049_s23 + $0x440] sm:$0xff]  ;;  %v620_v43 = vld [vmem:[%s2049_s23 + $0xc50] sm:$0xff] }
  0x74   : > { %v618_v41 = vld [vmem:[%s2049_s23 + $0xc40] sm:$0xff] }
  0x75   : > { %1519 = vmatpush1.bf16.msra.mxu1 %v1518_v52  ;;  %v348_v52 = vld [vmem:[%s2049_s23 + $0x3d0] sm:$0xff] }
  0x76   : > { %1775 = vmatpush1.bf16.msra.mxu0 %v1774_v53  ;;  %1521 = vmatprep.subr.bf16.mxu1 %v1520_v54  ;;  %v602_v53 = vld [vmem:[%s2049_s23 + $0xbc0] sm:$0xff]  ;;  %v1796_v54 = vpack.c.bf16 %v605_v47, %v603_v46  ;;  %v1542_v60 = vpack.c.bf16 %v348_v52, %v346_v51  ;;  %v623_v46 = vld [vmem:[%s2049_s23 + $0xc68] sm:$0xff]  ;;  %v625_v47 = vld [vmem:[%s2049_s23 + $0xc78] sm:$0xff]  ;;  %v1560_v51 = vpack.c.bf16 %v369_v45, %v367_v44 }
  0x77   : > { %1777 = vmatprep.subr.bf16.mxu0 %v1776_v58  ;;  %v607_v58 = vld [vmem:[%s2049_s23 + $0xbe8] sm:$0xff]  ;;  %v1798_v61 = vpack.c.bf16 %v604_v55, %v602_v53  ;;  %v366_v52 = vld [vmem:[%s2049_s23 + $0x460] sm:$0xff]  ;;  %v368_v53 = vld [vmem:[%s2049_s23 + $0x470] sm:$0xff]  ;;  %v1816_v55 = vpack.c.bf16 %v625_v47, %v623_v46 }
  0x78   : > { %v645_v44 = vld [vmem:[%s2049_s23 + $0xd18] sm:$0xff] }
  0x79   : > { %1523 = vmatpush1.bf16.msra.mxu1 %v1522_v0  ;;  %v352_v0 = vld [vmem:[%s2049_s23 + $0x3f0] sm:$0xff] }
  0x7a   : > { %1779 = vmatpush1.bf16.msra.mxu0 %v1778_v1  ;;  %1525 = vmatprep.subr.bf16.mxu1 %v1524_v2  ;;  %v606_v1 = vld [vmem:[%s2049_s23 + $0xbe0] sm:$0xff]  ;;  %v1800_v2 = vpack.c.bf16 %v609_v59, %v607_v58  ;;  %v1546_v8 = vpack.c.bf16 %v352_v0, %v350_v63  ;;  %v373_v58 = vld [vmem:[%s2049_s23 + $0x498] sm:$0xff]  ;;  %v627_v59 = vld [vmem:[%s2049_s23 + $0xc88] sm:$0xff] }
  0x7b   : > { %1781 = vmatprep.subr.bf16.mxu0 %v1780_v6  ;;  %v611_v6 = vld [vmem:[%s2049_s23 + $0xc08] sm:$0xff]  ;;  %v1802_v9 = vpack.c.bf16 %v608_v3, %v606_v1  ;;  %v1564_v63 = vpack.c.bf16 %v373_v58, %v371_v57  ;;  %v370_v0 = vld [vmem:[%s2049_s23 + $0x480] sm:$0xff]  ;;  %v372_v1 = vld [vmem:[%s2049_s23 + $0x490] sm:$0xff] }
  0x7d   : > { %1527 = vmatpush1.bf16.msra.mxu1 %v1526_v12  ;;  %v356_v12 = vld [vmem:[%s2049_s23 + $0x410] sm:$0xff] }
  0x7e   : > { %1783 = vmatpush1.bf16.msra.mxu0 %v1782_v13  ;;  %1529 = vmatprep.subr.bf16.mxu1 %v1528_v14  ;;  %v610_v13 = vld [vmem:[%s2049_s23 + $0xc00] sm:$0xff]  ;;  %v1804_v14 = vpack.c.bf16 %v613_v7, %v611_v6  ;;  %v1550_v21 = vpack.c.bf16 %v356_v12, %v354_v11  ;;  %v377_v6 = vld [vmem:[%s2049_s23 + $0x4b8] sm:$0xff]  ;;  %v631_v7 = vld [vmem:[%s2049_s23 + $0xca8] sm:$0xff] }
  0x7f   : > { %1785 = vmatprep.subr.bf16.mxu0 %v1784_v18  ;;  %v615_v18 = vld [vmem:[%s2049_s23 + $0xc28] sm:$0xff]  ;;  %v1806_v23 = vpack.c.bf16 %v612_v15, %v610_v13  ;;  %v1568_v11 = vpack.c.bf16 %v377_v6, %v375_v5  ;;  %v374_v12 = vld [vmem:[%s2049_s23 + $0x4a0] sm:$0xff]  ;;  %v376_v13 = vld [vmem:[%s2049_s23 + $0x4b0] sm:$0xff] }
  0x80   : > { %v1808_v28 = vpack.c.bf16 %v617_v19, %v615_v18  ;;  %v381_v18 = vld [vmem:[%s2049_s23 + $0x4d8] sm:$0xff]  ;;  %v635_v19 = vld [vmem:[%s2049_s23 + $0xcc8] sm:$0xff] }
  0x81   : > { %1531 = vmatpush1.bf16.msra.mxu1 %v1530_v24  ;;  %v1552_v24 = vpack.c.bf16 %v361_v17, %v359_v16  ;;  %v632_v16 = vld [vmem:[%s2049_s23 + $0xcb0] sm:$0xff]  ;;  %v379_v17 = vld [vmem:[%s2049_s23 + $0x4c8] sm:$0xff] }
  0x82   : > { %1787 = vmatpush1.bf16.msra.mxu0 %v1786_v25  ;;  %1533 = vmatprep.subr.bf16.mxu1 %v1532_v26  ;;  %v358_v25 = vld [vmem:[%s2049_s23 + $0x420] sm:$0xff]  ;;  %v360_v26 = vld [vmem:[%s2049_s23 + $0x430] sm:$0xff] }
  0x83   : > { %1789 = vmatprep.subr.bf16.mxu0 %v1788_v30  ;;  %v363_v30 = vld [vmem:[%s2049_s23 + $0x448] sm:$0xff]  ;;  %v1554_v35 = vpack.c.bf16 %v360_v26, %v358_v25  ;;  %v380_v25 = vld [vmem:[%s2049_s23 + $0x4d0] sm:$0xff]  ;;  %v634_v26 = vld [vmem:[%s2049_s23 + $0xcc0] sm:$0xff] }
  0x85   : > { %1535 = vmatpush1.bf16.msra.mxu1 %v1534_v36  ;;  %v223_v36 = vld [vmem:[%s2622_s1 + $0x68] sm:$0xff] }
  0x86   : > { %1791 = vmatpush1.bf16.msra.mxu0 %v1790_v37  ;;  %1537 = vmatprep.subr.bf16.mxu1 %v1536_v38  ;;  %v1810_v37 = vpack.c.bf16 %v616_v29, %v614_v27  ;;  %v1556_v38 = vpack.c.bf16 %v365_v31, %v363_v30  ;;  %v383_v29 = vld [vmem:[%s2049_s23 + $0x4e8] sm:$0xff]  ;;  %v385_v30 = vld [vmem:[%s2049_s23 + $0x4f8] sm:$0xff] }
  0x87   : > { %1793 = vmatprep.subr.bf16.mxu0 %v1792_v42  ;;  %v1812_v42 = vpack.c.bf16 %v621_v33, %v619_v32  ;;  %v639_v31 = vld [vmem:[%s2049_s23 + $0xce8] sm:$0xff]  ;;  %v641_v32 = vld [vmem:[%s2049_s23 + $0xcf8] sm:$0xff] }
  0x89   : > { %1539 = vmatpush1.bf16.msra.mxu1 %v1538_v48  ;;  %v1998_v48 = vmov 0  }
  0x8a   : > { %1795 = vmatpush1.bf16.msra.mxu0 %v1794_v49  ;;  %1541 = vmatprep.subr.bf16.mxu1 %v1540_v50  ;;  %v1558_v49 = vpack.c.bf16 %v364_v40, %v362_v39  ;;  %v1814_v50 = vpack.c.bf16 %v620_v43, %v618_v41  ;;  %v1832_v39 = vpack.c.bf16 %v641_v32, %v639_v31  ;;  %v640_v40 = vld [vmem:[%s2049_s23 + $0xcf0] sm:$0xff]  ;;  %v387_v41 = vld [vmem:[%s2049_s23 + $0x508] sm:$0xff] }
  0x8b   : > { %1797 = vmatprep.subr.bf16.mxu0 %v1796_v54  ;;  %1973 = vset.pattern.permute.xlu0 %v1998_v48  ;;  %v622_v54 = vld [vmem:[%s2049_s23 + $0xc60] sm:$0xff]  ;;  %v643_v43 = vld [vmem:[%s2049_s23 + $0xd08] sm:$0xff] }
  0x8c   : > { %v386_v48 = vld [vmem:[%s2049_s23 + $0x500] sm:$0xff] }
  0x8d   : > { %1543 = vmatpush1.bf16.msra.mxu1 %v1542_v60  ;;  %v629_v60 = vld [vmem:[%s2049_s23 + $0xc98] sm:$0xff] }
  0x8e   : > { %1799 = vmatpush1.bf16.msra.mxu0 %v1798_v61  ;;  %1545 = vmatprep.subr.bf16.mxu1 %v1544_v62  ;;  %v1562_v61 = vpack.c.bf16 %v368_v53, %v366_v52  ;;  %v1818_v62 = vpack.c.bf16 %v624_v56, %v622_v54  ;;  %v1820_v3 = vpack.c.bf16 %v629_v60, %v627_v59  ;;  %v644_v52 = vld [vmem:[%s2049_s23 + $0xd10] sm:$0xff]  ;;  %v391_v53 = vld [vmem:[%s2049_s23 + $0x528] sm:$0xff]  ;;  %v393_v54 = vld [vmem:[%s2049_s23 + $0x538] sm:$0xff] }
  0x8f   : > { %1801 = vmatprep.subr.bf16.mxu0 %v1800_v2  ;;  %v626_v2 = vld [vmem:[%s2049_s23 + $0xc80] sm:$0xff]  ;;  %v649_v56 = vld [vmem:[%s2049_s23 + $0xd38] sm:$0xff]  ;;  %v1584_v59 = vpack.c.bf16 %v393_v54, %v391_v53 }
  0x90   : > { %v390_v60 = vld [vmem:[%s2049_s23 + $0x520] sm:$0xff]  ;;  %v669_v53 = vld [vmem:[%s2049_s23 + $0xdd8] sm:$0xff] }
  0x91   : > { %1547 = vmatpush1.bf16.msra.mxu1 %v1546_v8  ;;  %v633_v8 = vld [vmem:[%s2049_s23 + $0xcb8] sm:$0xff] }
  0x92   : > { %1803 = vmatpush1.bf16.msra.mxu0 %v1802_v9  ;;  %1549 = vmatprep.subr.bf16.mxu1 %v1548_v10  ;;  %v1566_v9 = vpack.c.bf16 %v372_v1, %v370_v0  ;;  %v1822_v10 = vpack.c.bf16 %v628_v4, %v626_v2  ;;  %v1824_v15 = vpack.c.bf16 %v633_v8, %v631_v7  ;;  %v648_v0 = vld [vmem:[%s2049_s23 + $0xd30] sm:$0xff]  ;;  %v395_v1 = vld [vmem:[%s2049_s23 + $0x548] sm:$0xff]  ;;  %v397_v2 = vld [vmem:[%s2049_s23 + $0x558] sm:$0xff] }
  0x93   : > { %1805 = vmatprep.subr.bf16.mxu0 %v1804_v14  ;;  %v630_v14 = vld [vmem:[%s2049_s23 + $0xca0] sm:$0xff]  ;;  %v653_v4 = vld [vmem:[%s2049_s23 + $0xd58] sm:$0xff]  ;;  %v1588_v7 = vpack.c.bf16 %v397_v2, %v395_v1 }
  0x94   : > { %880 = vmatmul.mubr.f32.vlgmr.msra.gmra.mrb[0].mxu1 %v212_v20  ;;  %v637_v20 = vld [vmem:[%s2049_s23 + $0xcd8] sm:$0xff]  ;;  %v394_v8 = vld [vmem:[%s2049_s23 + $0x540] sm:$0xff] }
  0x95   : > { %1551 = vmatpush1.bf16.msra.mxu1 %v1550_v21  ;;  %1164 = vmatmul.mubr.f32.vlgmr.msra.gmra.mrb[0].mxu0 %v220_v22  ;;  %v1570_v21 = vpack.c.bf16 %v376_v13, %v374_v12  ;;  %v1826_v22 = vpack.c.bf16 %v632_v16, %v630_v14  ;;  %v1828_v27 = vpack.c.bf16 %v637_v20, %v635_v19  ;;  %v652_v12 = vld [vmem:[%s2049_s23 + $0xd50] sm:$0xff]  ;;  %v399_v13 = vld [vmem:[%s2049_s23 + $0x568] sm:$0xff]  ;;  %v401_v14 = vld [vmem:[%s2049_s23 + $0x578] sm:$0xff] }
  0x96   : > { %1807 = vmatpush1.bf16.msra.mxu0 %v1806_v23  ;;  %1553 = vmatprep.subr.bf16.mxu1 %v1552_v24  ;;  %v1572_v23 = vpack.c.bf16 %v381_v18, %v379_v17  ;;  %v378_v24 = vld [vmem:[%s2049_s23 + $0x4c0] sm:$0xff]  ;;  %v657_v16 = vld [vmem:[%s2049_s23 + $0xd78] sm:$0xff]  ;;  %v1592_v19 = vpack.c.bf16 %v401_v14, %v399_v13 }
  0x97   : > { %1809 = vmatprep.subr.bf16.mxu0 %v1808_v28  ;;  %950 = vmatprep.mubr.f32.mxu1 %v215_v34  ;;  %v636_v28 = vld [vmem:[%s2049_s23 + $0xcd0] sm:$0xff]  ;;  %v1574_v33 = vpack.c.bf16 %v380_v25, %v378_v24  ;;  %v398_v20 = vld [vmem:[%s2049_s23 + $0x560] sm:$0xff]  ;;  %v403_v25 = vld [vmem:[%s2049_s23 + $0x588] sm:$0xff] }
  0x98   : > { %1234 = vmatprep.mubr.f32.mxu0 %v223_v36  ;;  %v1830_v34 = vpack.c.bf16 %v636_v28, %v634_v26  ;;  %v382_v36 = vld [vmem:[%s2049_s23 + $0x4e0] sm:$0xff]  ;;  %v656_v24 = vld [vmem:[%s2049_s23 + $0xd70] sm:$0xff]  ;;  %v405_v26 = vld [vmem:[%s2049_s23 + $0x598] sm:$0xff] }
  0x99   : > { %1555 = vmatpush1.bf16.msra.mxu1 %v1554_v35  ;;  %v1576_v35 = vpack.c.bf16 %v385_v30, %v383_v29  ;;  %v661_v28 = vld [vmem:[%s2049_s23 + $0xd98] sm:$0xff]  ;;  %v402_v30 = vld [vmem:[%s2049_s23 + $0x580] sm:$0xff]  ;;  %v1596_v32 = vpack.c.bf16 %v405_v26, %v403_v25 }
  0x9a   : > { %1811 = vmatpush1.bf16.msra.mxu0 %v1810_v37  ;;  %1557 = vmatprep.subr.bf16.mxu1 %v1556_v38  ;;  %v384_v37 = vld [vmem:[%s2049_s23 + $0x4f0] sm:$0xff]  ;;  %v638_v38 = vld [vmem:[%s2049_s23 + $0xce0] sm:$0xff]  ;;  %v673_v1 = vld [vmem:[%s2049_s23 + $0xdf8] sm:$0xff] }
  0x9b   : > { %1813 = vmatprep.subr.bf16.mxu0 %v1812_v42  ;;  %v389_v42 = vld [vmem:[%s2049_s23 + $0x518] sm:$0xff]  ;;  %v1578_v45 = vpack.c.bf16 %v384_v37, %v382_v36  ;;  %v1834_v46 = vpack.c.bf16 %v640_v40, %v638_v38  ;;  %v407_v37 = vld [vmem:[%s2049_s23 + $0x5a8] sm:$0xff]  ;;  %v214_v26 = vld [vmem:[%s2622_s1 + $0x20] sm:$0xff] }
  0x9c   : > { %v1580_v47 = vpack.c.bf16 %v389_v42, %v387_v41  ;;  %v409_v38 = vld [vmem:[%s2049_s23 + $0x5b8] sm:$0xff]  ;;  %v663_v40 = vld [vmem:[%s2049_s23 + $0xda8] sm:$0xff] }
  0x9d   : > { %1559 = vmatpush1.bf16.msra.mxu1 %v1558_v49  ;;  %v388_v49 = vld [vmem:[%s2049_s23 + $0x510] sm:$0xff]  ;;  %v665_v41 = vld [vmem:[%s2049_s23 + $0xdb8] sm:$0xff] }
  0x9e   : > { %1815 = vmatpush1.bf16.msra.mxu0 %v1814_v50  ;;  %1561 = vmatprep.subr.bf16.mxu1 %v1560_v51  ;;  %v642_v50 = vld [vmem:[%s2049_s23 + $0xd00] sm:$0xff]  ;;  %v1836_v51 = vpack.c.bf16 %v645_v44, %v643_v43  ;;  %v1582_v57 = vpack.c.bf16 %v388_v49, %v386_v48  ;;  %v1600_v44 = vpack.c.bf16 %v409_v38, %v407_v37  ;;  %v664_v49 = vld [vmem:[%s2049_s23 + $0xdb0] sm:$0xff]  ;;  %v677_v13 = vld [vmem:[%s2049_s23 + $0xe18] sm:$0xff] }
  0x9f   : > { %1817 = vmatprep.subr.bf16.mxu0 %v1816_v55  ;;  %v647_v55 = vld [vmem:[%s2049_s23 + $0xd28] sm:$0xff]  ;;  %v1838_v58 = vpack.c.bf16 %v644_v52, %v642_v50  ;;  %v1856_v48 = vpack.c.bf16 %v665_v41, %v663_v40  ;;  %v681_v25 = vld [vmem:[%s2049_s23 + $0xe38] sm:$0xff] }
  0xa0   : > { %v411_v50 = vld [vmem:[%s2049_s23 + $0x5c8] sm:$0xff]  ;;  %v429_v37 = vld [vmem:[%s2049_s23 + $0x658] sm:$0xff] }
  0xa1   : > { %1563 = vmatpush1.bf16.msra.mxu1 %v1562_v61  ;;  %v392_v61 = vld [vmem:[%s2049_s23 + $0x530] sm:$0xff]  ;;  %v667_v52 = vld [vmem:[%s2049_s23 + $0xdc8] sm:$0xff]  ;;  %v217_v40 = vld [vmem:[%s2622_s1 + $0x38] sm:$0xff] }
  0xa2   : > { %1819 = vmatpush1.bf16.msra.mxu0 %v1818_v62  ;;  %1565 = vmatprep.subr.bf16.mxu1 %v1564_v63  ;;  %v646_v62 = vld [vmem:[%s2049_s23 + $0xd20] sm:$0xff]  ;;  %v1840_v63 = vpack.c.bf16 %v649_v56, %v647_v55  ;;  %v1586_v5 = vpack.c.bf16 %v392_v61, %v390_v60  ;;  %v1860_v60 = vpack.c.bf16 %v669_v53, %v667_v52  ;;  %v668_v61 = vld [vmem:[%s2049_s23 + $0xdd0] sm:$0xff]  ;;  %v683_v38 = vld [vmem:[%s2049_s23 + $0xe48] sm:$0xff] }
  0xa3   : > { %1821 = vmatprep.subr.bf16.mxu0 %v1820_v3  ;;  %v651_v3 = vld [vmem:[%s2049_s23 + $0xd48] sm:$0xff]  ;;  %v1842_v6 = vpack.c.bf16 %v648_v0, %v646_v62  ;;  %v689_v53 = vld [vmem:[%s2049_s23 + $0xe78] sm:$0xff] }
  0xa4   : > { %v415_v62 = vld [vmem:[%s2049_s23 + $0x5e8] sm:$0xff] }
  0xa5   : > { %1567 = vmatpush1.bf16.msra.mxu1 %v1566_v9  ;;  %v396_v9 = vld [vmem:[%s2049_s23 + $0x550] sm:$0xff]  ;;  %v671_v0 = vld [vmem:[%s2049_s23 + $0xde8] sm:$0xff] }
  0xa6   : > { %1823 = vmatpush1.bf16.msra.mxu0 %v1822_v10  ;;  %1569 = vmatprep.subr.bf16.mxu1 %v1568_v11  ;;  %v650_v10 = vld [vmem:[%s2049_s23 + $0xd40] sm:$0xff]  ;;  %v1844_v11 = vpack.c.bf16 %v653_v4, %v651_v3  ;;  %v1590_v17 = vpack.c.bf16 %v396_v9, %v394_v8  ;;  %v1864_v8 = vpack.c.bf16 %v673_v1, %v671_v0  ;;  %v672_v9 = vld [vmem:[%s2049_s23 + $0xdf0] sm:$0xff]  ;;  %v687_v52 = vld [vmem:[%s2049_s23 + $0xe68] sm:$0xff] }
  0xa7   : > { %1825 = vmatprep.subr.bf16.mxu0 %v1824_v15  ;;  %v655_v15 = vld [vmem:[%s2049_s23 + $0xd68] sm:$0xff]  ;;  %v1846_v18 = vpack.c.bf16 %v652_v12, %v650_v10  ;;  %v693_v1 = vld [vmem:[%s2049_s23 + $0xe98] sm:$0xff] }
  0xa8   : > { %v419_v10 = vld [vmem:[%s2049_s23 + $0x608] sm:$0xff] }
  0xa9   : > { %1571 = vmatpush1.bf16.msra.mxu1 %v1570_v21  ;;  %v400_v21 = vld [vmem:[%s2049_s23 + $0x570] sm:$0xff]  ;;  %v675_v12 = vld [vmem:[%s2049_s23 + $0xe08] sm:$0xff] }
  0xaa   : > { %1827 = vmatpush1.bf16.msra.mxu0 %v1826_v22  ;;  %1573 = vmatprep.subr.bf16.mxu1 %v1572_v23  ;;  %v654_v22 = vld [vmem:[%s2049_s23 + $0xd60] sm:$0xff]  ;;  %v1848_v23 = vpack.c.bf16 %v657_v16, %v655_v15  ;;  %v1594_v29 = vpack.c.bf16 %v400_v21, %v398_v20  ;;  %v1868_v20 = vpack.c.bf16 %v677_v13, %v675_v12  ;;  %v676_v21 = vld [vmem:[%s2049_s23 + $0xe10] sm:$0xff]  ;;  %v691_v0 = vld [vmem:[%s2049_s23 + $0xe88] sm:$0xff] }
  0xab   : > { %1829 = vmatprep.subr.bf16.mxu0 %v1828_v27  ;;  %v659_v27 = vld [vmem:[%s2049_s23 + $0xd88] sm:$0xff]  ;;  %v1850_v31 = vpack.c.bf16 %v656_v24, %v654_v22  ;;  %v697_v13 = vld [vmem:[%s2049_s23 + $0xeb8] sm:$0xff] }
  0xac   : > { %v1852_v36 = vpack.c.bf16 %v661_v28, %v659_v27  ;;  %v423_v22 = vld [vmem:[%s2049_s23 + $0x628] sm:$0xff]  ;;  %v222_v28 = vld [vmem:[%s2622_s1 + $0x60] sm:$0xff] }
  0xad   : > { %1575 = vmatpush1.bf16.msra.mxu1 %v1574_v33  ;;  %v404_v33 = vld [vmem:[%s2049_s23 + $0x590] sm:$0xff]  ;;  %v679_v24 = vld [vmem:[%s2049_s23 + $0xe28] sm:$0xff] }
  0xae   : > { %1831 = vmatpush1.bf16.msra.mxu0 %v1830_v34  ;;  %1577 = vmatprep.subr.bf16.mxu1 %v1576_v35  ;;  %v658_v34 = vld [vmem:[%s2049_s23 + $0xd80] sm:$0xff]  ;;  %v660_v35 = vld [vmem:[%s2049_s23 + $0xd90] sm:$0xff]  ;;  %v1598_v42 = vpack.c.bf16 %v404_v33, %v402_v30  ;;  %v695_v12 = vld [vmem:[%s2049_s23 + $0xea8] sm:$0xff] }
  0xaf   : > { %1833 = vmatprep.subr.bf16.mxu0 %v1832_v39  ;;  %v738_v39 = vld [vmem:[%s2623_s2] sm:$0xff]  ;;  %v1854_v43 = vpack.c.bf16 %v660_v35, %v658_v34  ;;  %v1872_v34 = vpack.c.bf16 %v681_v25, %v679_v24  ;;  %v680_v35 = vld [vmem:[%s2049_s23 + $0xe30] sm:$0xff]  ;;  %v699_v24 = vld [vmem:[%s2049_s23 + $0xec8] sm:$0xff] }
  0xb0   : > { %741 = vperm.xlu0 %1973, %v738_v39   ;;  %v678_v33 = vld [vmem:[%s2049_s23 + $0xe20] sm:$0xff]  ;;  %v685_v39 = vld [vmem:[%s2049_s23 + $0xe58] sm:$0xff] }
  0xb1   : > { %1579 = vmatpush1.bf16.msra.mxu1 %v1578_v45  ;;  %v406_v45 = vld [vmem:[%s2049_s23 + $0x5a0] sm:$0xff]  ;;  %v701_v25 = vld [vmem:[%s2049_s23 + $0xed8] sm:$0xff] }
  0xb2   : > { %1835 = vmatpush1.bf16.msra.mxu0 %v1834_v46  ;;  %1581 = vmatprep.subr.bf16.mxu1 %v1580_v47  ;;  %v408_v46 = vld [vmem:[%s2049_s23 + $0x5b0] sm:$0xff]  ;;  %v662_v47 = vld [vmem:[%s2049_s23 + $0xda0] sm:$0xff] }
  0xb3   : > { %1837 = vmatprep.subr.bf16.mxu0 %v1836_v51  ;;  %v413_v51 = vld [vmem:[%s2049_s23 + $0x5d8] sm:$0xff]  ;;  %v1602_v54 = vpack.c.bf16 %v408_v46, %v406_v45  ;;  %v1858_v55 = vpack.c.bf16 %v664_v49, %v662_v47  ;;  %v426_v45 = vld [vmem:[%s2049_s23 + $0x640] sm:$0xff]  ;;  %v428_v46 = vld [vmem:[%s2049_s23 + $0x650] sm:$0xff] }
  0xb4   : > { %v1604_v56 = vpack.c.bf16 %v413_v51, %v411_v50  ;;  %v682_v47 = vld [vmem:[%s2049_s23 + $0xe40] sm:$0xff]  ;;  %v684_v49 = vld [vmem:[%s2049_s23 + $0xe50] sm:$0xff]  ;;  %v431_v50 = vld [vmem:[%s2049_s23 + $0x668] sm:$0xff] }
  0xb5   : > { %1583 = vmatpush1.bf16.msra.mxu1 %v1582_v57  ;;  %v410_v57 = vld [vmem:[%s2049_s23 + $0x5c0] sm:$0xff]  ;;  %v433_v51 = vld [vmem:[%s2049_s23 + $0x678] sm:$0xff] }
  0xb6   : > { %1839 = vmatpush1.bf16.msra.mxu0 %v1838_v58  ;;  %1585 = vmatprep.subr.bf16.mxu1 %v1584_v59  ;;  %v412_v58 = vld [vmem:[%s2049_s23 + $0x5d0] sm:$0xff]  ;;  %v666_v59 = vld [vmem:[%s2049_s23 + $0xdc0] sm:$0xff] }
  0xb7   : > { %1841 = vmatprep.subr.bf16.mxu0 %v1840_v63  ;;  %v417_v63 = vld [vmem:[%s2049_s23 + $0x5f8] sm:$0xff]  ;;  %v1606_v2 = vpack.c.bf16 %v412_v58, %v410_v57  ;;  %v1862_v3 = vpack.c.bf16 %v668_v61, %v666_v59  ;;  %v430_v57 = vld [vmem:[%s2049_s23 + $0x660] sm:$0xff]  ;;  %v432_v58 = vld [vmem:[%s2049_s23 + $0x670] sm:$0xff] }
  0xb8   : > { %v1608_v4 = vpack.c.bf16 %v417_v63, %v415_v62  ;;  %v686_v59 = vld [vmem:[%s2049_s23 + $0xe60] sm:$0xff]  ;;  %v688_v61 = vld [vmem:[%s2049_s23 + $0xe70] sm:$0xff]  ;;  %v435_v62 = vld [vmem:[%s2049_s23 + $0x688] sm:$0xff] }
  0xb9   : > { %1587 = vmatpush1.bf16.msra.mxu1 %v1586_v5  ;;  %v414_v5 = vld [vmem:[%s2049_s23 + $0x5e0] sm:$0xff]  ;;  %v437_v63 = vld [vmem:[%s2049_s23 + $0x698] sm:$0xff] }
  0xba   : > { %1843 = vmatpush1.bf16.msra.mxu0 %v1842_v6  ;;  %1589 = vmatprep.subr.bf16.mxu1 %v1588_v7  ;;  %v416_v6 = vld [vmem:[%s2049_s23 + $0x5f0] sm:$0xff]  ;;  %v670_v7 = vld [vmem:[%s2049_s23 + $0xde0] sm:$0xff] }
  0xbb   : > { %1845 = vmatprep.subr.bf16.mxu0 %v1844_v11  ;;  %v421_v11 = vld [vmem:[%s2049_s23 + $0x618] sm:$0xff]  ;;  %v1610_v14 = vpack.c.bf16 %v416_v6, %v414_v5  ;;  %v1866_v15 = vpack.c.bf16 %v672_v9, %v670_v7  ;;  %v434_v5 = vld [vmem:[%s2049_s23 + $0x680] sm:$0xff]  ;;  %v436_v6 = vld [vmem:[%s2049_s23 + $0x690] sm:$0xff] }
  0xbc   : > { %v1612_v16 = vpack.c.bf16 %v421_v11, %v419_v10  ;;  %v690_v7 = vld [vmem:[%s2049_s23 + $0xe80] sm:$0xff]  ;;  %v692_v9 = vld [vmem:[%s2049_s23 + $0xe90] sm:$0xff]  ;;  %v439_v10 = vld [vmem:[%s2049_s23 + $0x6a8] sm:$0xff] }
  0xbd   : > { %1591 = vmatpush1.bf16.msra.mxu1 %v1590_v17  ;;  %v418_v17 = vld [vmem:[%s2049_s23 + $0x600] sm:$0xff]  ;;  %v441_v11 = vld [vmem:[%s2049_s23 + $0x6b8] sm:$0xff] }
  0xbe   : > { %1847 = vmatpush1.bf16.msra.mxu0 %v1846_v18  ;;  %1593 = vmatprep.subr.bf16.mxu1 %v1592_v19  ;;  %v420_v18 = vld [vmem:[%s2049_s23 + $0x610] sm:$0xff]  ;;  %v674_v19 = vld [vmem:[%s2049_s23 + $0xe00] sm:$0xff] }
  0xbf   : > { %1849 = vmatprep.subr.bf16.mxu0 %v1848_v23  ;;  %v425_v23 = vld [vmem:[%s2049_s23 + $0x638] sm:$0xff]  ;;  %v1614_v27 = vpack.c.bf16 %v420_v18, %v418_v17  ;;  %v438_v17 = vld [vmem:[%s2049_s23 + $0x6a0] sm:$0xff]  ;;  %v440_v18 = vld [vmem:[%s2049_s23 + $0x6b0] sm:$0xff] }
  0xc0   : > { %v1616_v30 = vpack.c.bf16 %v425_v23, %v423_v22  ;;  %v443_v22 = vld [vmem:[%s2049_s23 + $0x6c8] sm:$0xff]  ;;  %v445_v23 = vld [vmem:[%s2049_s23 + $0x6d8] sm:$0xff] }
  0xc1   : > { %1595 = vmatpush1.bf16.msra.mxu1 %v1594_v29  ;;  %v1870_v29 = vpack.c.bf16 %v676_v21, %v674_v19  ;;  %v694_v19 = vld [vmem:[%s2049_s23 + $0xea0] sm:$0xff]  ;;  %v696_v21 = vld [vmem:[%s2049_s23 + $0xeb0] sm:$0xff] }
  0xc2   : > { %1851 = vmatpush1.bf16.msra.mxu0 %v1850_v31  ;;  %1597 = vmatprep.subr.bf16.mxu1 %v1596_v32  ;;  %v422_v31 = vld [vmem:[%s2049_s23 + $0x620] sm:$0xff]  ;;  %v424_v32 = vld [vmem:[%s2049_s23 + $0x630] sm:$0xff] }
  0xc3   : > { %1853 = vmatprep.subr.bf16.mxu0 %v1852_v36  ;;  %v427_v36 = vld [vmem:[%s2049_s23 + $0x648] sm:$0xff]  ;;  %v1618_v41 = vpack.c.bf16 %v424_v32, %v422_v31  ;;  %v698_v31 = vld [vmem:[%s2049_s23 + $0xec0] sm:$0xff]  ;;  %v1892_v32 = vpack.c.bf16 %v701_v25, %v699_v24 }
  0xc4   : > { %v462_v25 = vld [vmem:[%s2049_s23 + $0x760] sm:$0xff] }
  0xc5   : > { %1599 = vmatpush1.bf16.msra.mxu1 %v1598_v42  ;;  %v225_v42 = vld [vmem:[%s2622_s1 + $0x78] sm:$0xff] }
  0xc6   : > { %1855 = vmatpush1.bf16.msra.mxu0 %v1854_v43  ;;  %1601 = vmatprep.subr.bf16.mxu1 %v1600_v44  ;;  %v1874_v43 = vpack.c.bf16 %v680_v35, %v678_v33  ;;  %v1620_v44 = vpack.c.bf16 %v429_v37, %v427_v36  ;;  %v700_v33 = vld [vmem:[%s2049_s23 + $0xed0] sm:$0xff]  ;;  %v449_v35 = vld [vmem:[%s2049_s23 + $0x6f8] sm:$0xff]  ;;  %v703_v36 = vld [vmem:[%s2049_s23 + $0xee8] sm:$0xff] }
  0xc7   : > { %1857 = vmatprep.subr.bf16.mxu0 %v1856_v48  ;;  %v1876_v48 = vpack.c.bf16 %v685_v39, %v683_v38  ;;  %v705_v37 = vld [vmem:[%s2049_s23 + $0xef8] sm:$0xff]  ;;  %v1894_v39 = vpack.c.bf16 %v700_v33, %v698_v31 }
  0xc8   : > { %v469_v31 = vld [vmem:[%s2049_s23 + $0x798] sm:$0xff] }
  0xc9   : > { %1603 = vmatpush1.bf16.msra.mxu1 %v1602_v54  ;;  %v1622_v54 = vpack.c.bf16 %v428_v46, %v426_v45  ;;  %v704_v45 = vld [vmem:[%s2049_s23 + $0xef0] sm:$0xff]  ;;  %v451_v46 = vld [vmem:[%s2049_s23 + $0x708] sm:$0xff]  ;;  %v725_v33 = vld [vmem:[%s2049_s23 + $0xf98] sm:$0xff] }
  0xca   : > { %1859 = vmatpush1.bf16.msra.mxu0 %v1858_v55  ;;  %1605 = vmatprep.subr.bf16.mxu1 %v1604_v56  ;;  %v1878_v55 = vpack.c.bf16 %v684_v49, %v682_v47  ;;  %v1624_v56 = vpack.c.bf16 %v433_v51, %v431_v50  ;;  %v453_v47 = vld [vmem:[%s2049_s23 + $0x718] sm:$0xff] }
  0xcb   : > { %1861 = vmatprep.subr.bf16.mxu0 %v1860_v60  ;;  %v1880_v60 = vpack.c.bf16 %v689_v53, %v687_v52  ;;  %v709_v49 = vld [vmem:[%s2049_s23 + $0xf18] sm:$0xff]  ;;  %v1644_v52 = vpack.c.bf16 %v453_v47, %v451_v46  ;;  %v450_v53 = vld [vmem:[%s2049_s23 + $0x700] sm:$0xff] }
  0xcd   : > { %1607 = vmatpush1.bf16.msra.mxu1 %v1606_v2  ;;  %v1626_v2 = vpack.c.bf16 %v432_v58, %v430_v57  ;;  %v708_v57 = vld [vmem:[%s2049_s23 + $0xf10] sm:$0xff]  ;;  %v455_v58 = vld [vmem:[%s2049_s23 + $0x728] sm:$0xff] }
  0xce   : > { %1863 = vmatpush1.bf16.msra.mxu0 %v1862_v3  ;;  %1609 = vmatprep.subr.bf16.mxu1 %v1608_v4  ;;  %v1882_v3 = vpack.c.bf16 %v688_v61, %v686_v59  ;;  %v1628_v4 = vpack.c.bf16 %v437_v63, %v435_v62  ;;  %v457_v59 = vld [vmem:[%s2049_s23 + $0x738] sm:$0xff] }
  0xcf   : > { %1865 = vmatprep.subr.bf16.mxu0 %v1864_v8  ;;  %v1884_v8 = vpack.c.bf16 %v693_v1, %v691_v0  ;;  %v713_v61 = vld [vmem:[%s2049_s23 + $0xf38] sm:$0xff]  ;;  %v1648_v0 = vpack.c.bf16 %v457_v59, %v455_v58  ;;  %v454_v1 = vld [vmem:[%s2049_s23 + $0x720] sm:$0xff] }
  0xd1   : > { %1611 = vmatpush1.bf16.msra.mxu1 %v1610_v14  ;;  %v1630_v14 = vpack.c.bf16 %v436_v6, %v434_v5  ;;  %v712_v5 = vld [vmem:[%s2049_s23 + $0xf30] sm:$0xff]  ;;  %v459_v6 = vld [vmem:[%s2049_s23 + $0x748] sm:$0xff] }
  0xd2   : > { %1867 = vmatpush1.bf16.msra.mxu0 %v1866_v15  ;;  %1613 = vmatprep.subr.bf16.mxu1 %v1612_v16  ;;  %v1886_v15 = vpack.c.bf16 %v692_v9, %v690_v7  ;;  %v1632_v16 = vpack.c.bf16 %v441_v11, %v439_v10  ;;  %v461_v7 = vld [vmem:[%s2049_s23 + $0x758] sm:$0xff] }
  0xd3   : > { %1869 = vmatprep.subr.bf16.mxu0 %v1868_v20  ;;  %v1888_v20 = vpack.c.bf16 %v697_v13, %v695_v12  ;;  %v717_v9 = vld [vmem:[%s2049_s23 + $0xf58] sm:$0xff]  ;;  %v1652_v12 = vpack.c.bf16 %v461_v7, %v459_v6  ;;  %v458_v13 = vld [vmem:[%s2049_s23 + $0x740] sm:$0xff] }
  0xd4   : > { %951 = vmatmul.mubr.f32.vlgmr.msra.gmra.mrb[0].mxu1 %v214_v26  ;;  %v1634_v26 = vpack.c.bf16 %v440_v18, %v438_v17  ;;  %v716_v17 = vld [vmem:[%s2049_s23 + $0xf50] sm:$0xff]  ;;  %v463_v18 = vld [vmem:[%s2049_s23 + $0x768] sm:$0xff] }
  0xd5   : > { %1615 = vmatpush1.bf16.msra.mxu1 %v1614_v27  ;;  %1235 = vmatmul.mubr.f32.vlgmr.msra.gmra.mrb[0].mxu0 %v222_v28  ;;  %v1890_v27 = vpack.c.bf16 %v696_v21, %v694_v19  ;;  %v1636_v28 = vpack.c.bf16 %v445_v23, %v443_v22  ;;  %v465_v19 = vld [vmem:[%s2049_s23 + $0x778] sm:$0xff] }
  0xd6   : > { %1871 = vmatpush1.bf16.msra.mxu0 %v1870_v29  ;;  %1617 = vmatprep.subr.bf16.mxu1 %v1616_v30  ;;  %v442_v29 = vld [vmem:[%s2049_s23 + $0x6c0] sm:$0xff]  ;;  %v444_v30 = vld [vmem:[%s2049_s23 + $0x6d0] sm:$0xff]  ;;  %v721_v21 = vld [vmem:[%s2049_s23 + $0xf78] sm:$0xff]  ;;  %v1656_v24 = vpack.c.bf16 %v465_v19, %v463_v18 }
  0xd7   : > { %1873 = vmatprep.subr.bf16.mxu0 %v1872_v34  ;;  %1021 = vmatprep.mubr.f32.mxu1 %v217_v40  ;;  %v447_v34 = vld [vmem:[%s2049_s23 + $0x6e8] sm:$0xff]  ;;  %v1638_v38 = vpack.c.bf16 %v444_v30, %v442_v29  ;;  %v720_v29 = vld [vmem:[%s2049_s23 + $0xf70] sm:$0xff] }
  0xd8   : > { %1305 = vmatprep.mubr.f32.mxu0 %v225_v42  ;;  %v1640_v40 = vpack.c.bf16 %v449_v35, %v447_v34  ;;  %v448_v42 = vld [vmem:[%s2049_s23 + $0x6f0] sm:$0xff]  ;;  %v467_v30 = vld [vmem:[%s2049_s23 + $0x788] sm:$0xff] }
  0xd9   : > { %1619 = vmatpush1.bf16.msra.mxu1 %v1618_v41  ;;  %v446_v41 = vld [vmem:[%s2049_s23 + $0x6e0] sm:$0xff] }
  0xda   : > { %1875 = vmatpush1.bf16.msra.mxu0 %v1874_v43  ;;  %1621 = vmatprep.subr.bf16.mxu1 %v1620_v44  ;;  %v702_v43 = vld [vmem:[%s2049_s23 + $0xee0] sm:$0xff]  ;;  %v1896_v44 = vpack.c.bf16 %v705_v37, %v703_v36  ;;  %v1642_v50 = vpack.c.bf16 %v448_v42, %v446_v41  ;;  %v1660_v36 = vpack.c.bf16 %v469_v31, %v467_v30  ;;  %v724_v41 = vld [vmem:[%s2049_s23 + $0xf90] sm:$0xff]  ;;  %v471_v42 = vld [vmem:[%s2049_s23 + $0x7a8] sm:$0xff] }
  0xdb   : > { %1877 = vmatprep.subr.bf16.mxu0 %v1876_v48  ;;  %v707_v48 = vld [vmem:[%s2049_s23 + $0xf08] sm:$0xff]  ;;  %v1898_v51 = vpack.c.bf16 %v704_v45, %v702_v43  ;;  %v466_v37 = vld [vmem:[%s2049_s23 + $0x780] sm:$0xff]  ;;  %v473_v43 = vld [vmem:[%s2049_s23 + $0x7b8] sm:$0xff] }
  0xdc   : > { %v729_v45 = vld [vmem:[%s2049_s23 + $0xfb8] sm:$0xff] }
  0xdd   : > { %1623 = vmatpush1.bf16.msra.mxu1 %v1622_v54  ;;  %v452_v54 = vld [vmem:[%s2049_s23 + $0x710] sm:$0xff] }
  0xde   : > { %1879 = vmatpush1.bf16.msra.mxu0 %v1878_v55  ;;  %1625 = vmatprep.subr.bf16.mxu1 %v1624_v56  ;;  %v706_v55 = vld [vmem:[%s2049_s23 + $0xf00] sm:$0xff]  ;;  %v1900_v56 = vpack.c.bf16 %v709_v49, %v707_v48  ;;  %v1646_v62 = vpack.c.bf16 %v452_v54, %v450_v53  ;;  %v1664_v48 = vpack.c.bf16 %v473_v43, %v471_v42  ;;  %v728_v53 = vld [vmem:[%s2049_s23 + $0xfb0] sm:$0xff]  ;;  %v475_v54 = vld [vmem:[%s2049_s23 + $0x7c8] sm:$0xff] }
  0xdf   : > { %1881 = vmatprep.subr.bf16.mxu0 %v1880_v60  ;;  %v711_v60 = vld [vmem:[%s2049_s23 + $0xf28] sm:$0xff]  ;;  %v1902_v63 = vpack.c.bf16 %v708_v57, %v706_v55  ;;  %v470_v49 = vld [vmem:[%s2049_s23 + $0x7a0] sm:$0xff]  ;;  %v477_v55 = vld [vmem:[%s2049_s23 + $0x7d8] sm:$0xff] }
  0xe0   : > { %v733_v57 = vld [vmem:[%s2049_s23 + $0xfd8] sm:$0xff] }
  0xe1   : > { %1627 = vmatpush1.bf16.msra.mxu1 %v1626_v2  ;;  %v456_v2 = vld [vmem:[%s2049_s23 + $0x730] sm:$0xff] }
  0xe2   : > { %1883 = vmatpush1.bf16.msra.mxu0 %v1882_v3  ;;  %1629 = vmatprep.subr.bf16.mxu1 %v1628_v4  ;;  %v710_v3 = vld [vmem:[%s2049_s23 + $0xf20] sm:$0xff]  ;;  %v1904_v4 = vpack.c.bf16 %v713_v61, %v711_v60  ;;  %v1650_v10 = vpack.c.bf16 %v456_v2, %v454_v1  ;;  %v1668_v60 = vpack.c.bf16 %v477_v55, %v475_v54  ;;  %v732_v1 = vld [vmem:[%s2049_s23 + $0xfd0] sm:$0xff]  ;;  %v479_v2 = vld [vmem:[%s2049_s23 + $0x7e8] sm:$0xff] }
  0xe3   : > { %1885 = vmatprep.subr.bf16.mxu0 %v1884_v8  ;;  %v715_v8 = vld [vmem:[%s2049_s23 + $0xf48] sm:$0xff]  ;;  %v1906_v11 = vpack.c.bf16 %v712_v5, %v710_v3  ;;  %v474_v61 = vld [vmem:[%s2049_s23 + $0x7c0] sm:$0xff]  ;;  %v481_v3 = vld [vmem:[%s2049_s23 + $0x7f8] sm:$0xff] }
  0xe4   : > { %v737_v5 = vld [vmem:[%s2049_s23 + $0xff8] sm:$0xff] }
  0xe5   : > { %1631 = vmatpush1.bf16.msra.mxu1 %v1630_v14  ;;  %v460_v14 = vld [vmem:[%s2049_s23 + $0x750] sm:$0xff] }
  0xe6   : > { %1887 = vmatpush1.bf16.msra.mxu0 %v1886_v15  ;;  %1633 = vmatprep.subr.bf16.mxu1 %v1632_v16  ;;  %v714_v15 = vld [vmem:[%s2049_s23 + $0xf40] sm:$0xff]  ;;  %v1908_v16 = vpack.c.bf16 %v717_v9, %v715_v8  ;;  %v1654_v22 = vpack.c.bf16 %v460_v14, %v458_v13  ;;  %v1672_v8 = vpack.c.bf16 %v481_v3, %v479_v2  ;;  %v736_v13 = vld [vmem:[%s2049_s23 + $0xff0] sm:$0xff] }
  0xe7   : > { %1889 = vmatprep.subr.bf16.mxu0 %v1888_v20  ;;  %v719_v20 = vld [vmem:[%s2049_s23 + $0xf68] sm:$0xff]  ;;  %v1910_v23 = vpack.c.bf16 %v716_v17, %v714_v15  ;;  %v478_v9 = vld [vmem:[%s2049_s23 + $0x7e0] sm:$0xff]  ;;  %v224_v17 = vld [vmem:[%s2622_s1 + $0x70] sm:$0xff] }
  0xe9   : > { %1635 = vmatpush1.bf16.msra.mxu1 %v1634_v26  ;;  %v464_v26 = vld [vmem:[%s2049_s23 + $0x770] sm:$0xff] }
  0xea   : > { %1891 = vmatpush1.bf16.msra.mxu0 %v1890_v27  ;;  %1637 = vmatprep.subr.bf16.mxu1 %v1636_v28  ;;  %v718_v27 = vld [vmem:[%s2049_s23 + $0xf60] sm:$0xff]  ;;  %v1912_v28 = vpack.c.bf16 %v721_v21, %v719_v20  ;;  %v1658_v34 = vpack.c.bf16 %v464_v26, %v462_v25 }
  0xeb   : > { %1893 = vmatprep.subr.bf16.mxu0 %v1892_v32  ;;  %v723_v32 = vld [vmem:[%s2049_s23 + $0xf88] sm:$0xff]  ;;  %v1914_v35 = vpack.c.bf16 %v720_v29, %v718_v27 }
  0xed   : > { %1639 = vmatpush1.bf16.msra.mxu1 %v1638_v38  ;;  %v468_v38 = vld [vmem:[%s2049_s23 + $0x790] sm:$0xff] }
  0xee   : > { %1895 = vmatpush1.bf16.msra.mxu0 %v1894_v39  ;;  %1641 = vmatprep.subr.bf16.mxu1 %v1640_v40  ;;  %v722_v39 = vld [vmem:[%s2049_s23 + $0xf80] sm:$0xff]  ;;  %v1916_v40 = vpack.c.bf16 %v725_v33, %v723_v32  ;;  %v1662_v46 = vpack.c.bf16 %v468_v38, %v466_v37 }
  0xef   : > { %1897 = vmatprep.subr.bf16.mxu0 %v1896_v44  ;;  %v727_v44 = vld [vmem:[%s2049_s23 + $0xfa8] sm:$0xff]  ;;  %v1918_v47 = vpack.c.bf16 %v724_v41, %v722_v39 }
  0xf1   : > { %1643 = vmatpush1.bf16.msra.mxu1 %v1642_v50  ;;  %v472_v50 = vld [vmem:[%s2049_s23 + $0x7b0] sm:$0xff] }
  0xf2   : > { %1899 = vmatpush1.bf16.msra.mxu0 %v1898_v51  ;;  %1645 = vmatprep.subr.bf16.mxu1 %v1644_v52  ;;  %v726_v51 = vld [vmem:[%s2049_s23 + $0xfa0] sm:$0xff]  ;;  %v1920_v52 = vpack.c.bf16 %v729_v45, %v727_v44  ;;  %v1666_v58 = vpack.c.bf16 %v472_v50, %v470_v49 }
  0xf3   : > { %1901 = vmatprep.subr.bf16.mxu0 %v1900_v56  ;;  %v731_v56 = vld [vmem:[%s2049_s23 + $0xfc8] sm:$0xff]  ;;  %v1922_v59 = vpack.c.bf16 %v728_v53, %v726_v51 }
  0xf5   : > { %1647 = vmatpush1.bf16.msra.mxu1 %v1646_v62  ;;  %v476_v62 = vld [vmem:[%s2049_s23 + $0x7d0] sm:$0xff] }
  0xf6   : > { %1903 = vmatpush1.bf16.msra.mxu0 %v1902_v63  ;;  %1649 = vmatprep.subr.bf16.mxu1 %v1648_v0  ;;  %v730_v63 = vld [vmem:[%s2049_s23 + $0xfc0] sm:$0xff]  ;;  %v1924_v0 = vpack.c.bf16 %v733_v57, %v731_v56  ;;  %v1670_v6 = vpack.c.bf16 %v476_v62, %v474_v61 }
  0xf7   : > { %1905 = vmatprep.subr.bf16.mxu0 %v1904_v4  ;;  %v735_v4 = vld [vmem:[%s2049_s23 + $0xfe8] sm:$0xff]  ;;  %v1926_v7 = vpack.c.bf16 %v732_v1, %v730_v63 }
  0xf9   : > { %1651 = vmatpush1.bf16.msra.mxu1 %v1650_v10  ;;  %v480_v10 = vld [vmem:[%s2049_s23 + $0x7f0] sm:$0xff] }
  0xfa   : > { %1907 = vmatpush1.bf16.msra.mxu0 %v1906_v11  ;;  %1653 = vmatprep.subr.bf16.mxu1 %v1652_v12  ;;  %v1928_v11 = vpack.c.bf16 %v737_v5, %v735_v4  ;;  %v734_v12 = vld [vmem:[%s2049_s23 + $0xfe0] sm:$0xff]  ;;  %v1674_v14 = vpack.c.bf16 %v480_v10, %v478_v9  ;;  %s1419_s23 = sshll.u32 %s2630_s12, 4 }
  0xfb   : > { %1909 = vmatprep.subr.bf16.mxu0 %v1908_v16  ;;  %v1930_v15 = vpack.c.bf16 %v736_v13, %v734_v12  ;;  %v216_v16 = vld [vmem:[%s2622_s1 + $0x30] sm:$0xff]  ;;  %s208_s7 = scalar_lea.vmem %s2624_s3, %s1419_s23 }
  0xfd   : > { %1655 = vmatpush1.bf16.msra.mxu1 %v1654_v22 }
  0xfe   : > { %1911 = vmatpush1.bf16.msra.mxu0 %v1910_v23  ;;  %1657 = vmatprep.subr.bf16.mxu1 %v1656_v24 }
  0xff   : > { %1913 = vmatprep.subr.bf16.mxu0 %v1912_v28 }
 0x101   : > { %1659 = vmatpush1.bf16.msra.mxu1 %v1658_v34 }
 0x102   : > { %1915 = vmatpush1.bf16.msra.mxu0 %v1914_v35  ;;  %1661 = vmatprep.subr.bf16.mxu1 %v1660_v36 }
 0x103   : > { %1917 = vmatprep.subr.bf16.mxu0 %v1916_v40 }
 0x105   : > { %1663 = vmatpush1.bf16.msra.mxu1 %v1662_v46 }
 0x106   : > { %1919 = vmatpush1.bf16.msra.mxu0 %v1918_v47  ;;  %1665 = vmatprep.subr.bf16.mxu1 %v1664_v48 }
 0x107   : > { %1921 = vmatprep.subr.bf16.mxu0 %v1920_v52 }
 0x109   : > { %1667 = vmatpush1.bf16.msra.mxu1 %v1666_v58 }
 0x10a   : > { %1923 = vmatpush1.bf16.msra.mxu0 %v1922_v59  ;;  %1669 = vmatprep.subr.bf16.mxu1 %v1668_v60 }
 0x10b   : > { %1925 = vmatprep.subr.bf16.mxu0 %v1924_v0 }
 0x10d   : > { %1671 = vmatpush1.bf16.msra.mxu1 %v1670_v6 }
 0x10e   : > { %1927 = vmatpush1.bf16.msra.mxu0 %v1926_v7  ;;  %1673 = vmatprep.subr.bf16.mxu1 %v1672_v8 }
 0x10f   : > { %1929 = vmatprep.subr.bf16.mxu0 %v1928_v11 }
 0x111   : > { %1675 = vmatpush1.bf16.msra.mxu1 %v1674_v14 }
 0x112   : > { %1931 = vmatpush1.bf16.msra.mxu0 %v1930_v15 }
 0x114   : > { %1022 = vmatmul.mubr.f32.vlgmr.msra.gmra.mrb[0].mxu1 %v216_v16 }
 0x115   : > { %1306 = vmatmul.mubr.f32.vlgmr.msra.gmra.mrb[0].mxu0 %v224_v17 }
 0x12f   : > { %v742_v18 = vpop.permute.xlu0 %741 }
 0x1e7   : > { %v1023_v19 = vpop.f32.mrb[0].mxu1 }
 0x1e8   : > { %v1932_v20 = vadd.f32 %v1023_v19, %v742_v18  ;;  %v1307_v21 = vpop.f32.mrb[0].mxu0  ;;  %v1025_v22 = vpop.f32.mrb[1].mxu1 }
 0x1e9   : > { %v1934_v23 = vadd.f32 %v1025_v22, %v742_v18  ;;  %v1309_v24 = vpop.f32.mrb[1].mxu0 }
 0x1ea   : > { %v1933_v25 = vadd.f32 %v1932_v20, %v1307_v21 }
 0x1eb   : > { %v1935_v26 = vadd.f32 %v1934_v23, %v1309_v24 }
 0x1ec   : > { %vm1312_vm0 = vcmp.gt.f32.partialorder %v1933_v25, 0.0  ;;  %v1314_v27 = vmul.f32 0.2, %v1933_v25 }
 0x1ed   : > { %vm1313_vm1 = vcmp.gt.f32.partialorder %v1935_v26, 0.0  ;;  %v1315_v28 = vmul.f32 0.2, %v1935_v26 }
 0x1ee   : > { %v1316_v29 = vsel %vm1312_vm0, %v1933_v25, %v1314_v27 }
 0x1ef   : > { %1318 = vst [vmem:[%s208_s7] sm:$0xff] %v1316_v29  ;;  %v1317_v30 = vsel %vm1313_vm1, %v1935_v26, %v1315_v28 }
 0x1f0   : > { %1319 = vst [vmem:[%s208_s7 + $0x8] sm:$0xff] %v1317_v30 }
 0x1f1 PF: > { %s13_s14 = sadd.s32 1, %s1996_s14   ;;  %s2625_s12 = smov %s1992_s13 }
 0x1f2   : > { %p10_p5 = scmp.ge.s32.totalorder %s13_s14, 4   ;;  %s2626_s13 = smov %s2628_s15 }
 0x1f4   :  { %12 = sbr.rel (!%p10_p5) target bundleno = 2 (0x2), region = 62 }

// kernel: discriminator_forward.3
= control target key start
LH: loop header
LB: loop body
LE: loop exit
PB: predicated region body
PF: predicated region fallthrough
CT: control target
= control target key end

     0   :  { %s9260_s24 = smov 0   ;;  %s11662_s0 = inlined_call_operand.vmem [shape: f32[2,8,256], index: 0, kind: input, shape index: {}]   ;;  %s11663_s1 = inlined_call_operand.vmem [shape: f32[16,16,8], index: 1, kind: input, shape index: {}]   ;;  %s11664_s2 = inlined_call_operand.vmem [shape: f32[16,1], index: 2, kind: input, shape index: {}]   ;;  %s11665_s3 = inlined_call_operand.vmem [shape: f32[16,256,64], index: 3, kind: input, shape index: {}]   ;;  %s11666_s4 = inlined_call_operand.vmem [shape: f32[16,16,16], index: 4, kind: input, shape index: {}]   ;;  %s11667_s5 = inlined_call_operand.vmem [shape: f32[16,1], index: 5, kind: input, shape index: {}]   ;;  %s11668_s6 = inlined_call_operand.vmem [shape: f32[16,64,16], index: 6, kind: input, shape index: {}]   ;;  %s11669_s7 = inlined_call_operand.vmem [shape: f32[2,16,16], index: 7, kind: output, shape index: {}]  }
   0x1 LB: > { %s6189_s25 = sadd.s32 4294967295, %s9217_s24   ;;  %p6193_p0 = scmp.ge.s32.totalorder %s9217_s24, 1  ;;  %s9217_s24 = sphi %s9260_s24, %s17_s24  }
   0x2   : > { %p237_p1 = scmp.lt.s32.totalorder %s9217_s24, 3 }
   0x4   : > { %p238_p2 = pnand %p6193_p0, %p237_p1 }
   0x5   : > { %v6214_v0 = vld [vmem:[%s11665_s3 + $0x180] sm:$0xff] (!%p238_p2)  ;;  %v6215_v1 = vld [vmem:[%s11665_s3 + $0x188] sm:$0xff] (!%p238_p2)  ;;  %p9277_p3 = scmp.lt.s32.totalorder (!%p238_p2), %s6189_s25, 1  ;;  %v6216_v5 = vld [vmem:[%s11665_s3 + $0x190] sm:$0xff] (!%p238_p2)  ;;  %vm491_vm0 = vcmask (!%p238_p2), 64512   ;;  %vm3314_vm1 = vcmask (!%p238_p2), 523264  }
   0x6   : > { %241 = sbr.rel (%p238_p2) target bundleno = 4115 (0x1013), region = 48  ;;  %v6198_v2 = vld [vmem:[%s11665_s3 + $0x100] sm:$0xff] (!%p238_p2)  ;;  %v8320_v3 = vpack.c.bf16 (!%p238_p2), %v6215_v1, %v6214_v0  ;;  %v6199_v4 = vld [vmem:[%s11665_s3 + $0x108] sm:$0xff] (!%p238_p2)  ;;  %v6217_v6 = vld [vmem:[%s11665_s3 + $0x198] sm:$0xff] (!%p238_p2)  ;;  %vm3531_vm4 = vcmask (!%p238_p2), 130048  }
   0x7   : > { %v8322_v7 = vpack.c.bf16 (!%p238_p2), %v6199_v4, %v6198_v2  ;;  %v8324_v8 = vpack.c.bf16 (!%p238_p2), %v6217_v6, %v6216_v5  ;;  %v6200_v9 = vld [vmem:[%s11665_s3 + $0x110] sm:$0xff] (!%p238_p2)  ;;  %v6201_v10 = vld [vmem:[%s11665_s3 + $0x118] sm:$0xff] (!%p238_p2)  ;;  %v6218_v11 = vld [vmem:[%s11665_s3 + $0x1a0] sm:$0xff] (!%p238_p2) }
   0x8   : > { %8321 = vmatprep.subr.bf16.mxu1 (!%p238_p2), %v8320_v3  ;;  %v6219_v12 = vld [vmem:[%s11665_s3 + $0x1a8] sm:$0xff] (!%p238_p2)  ;;  %v8326_v13 = vpack.c.bf16 (!%p238_p2), %v6201_v10, %v6200_v9  ;;  %v6202_v15 = vld [vmem:[%s11665_s3 + $0x120] sm:$0xff] (!%p238_p2)  ;;  %v6220_v17 = vld [vmem:[%s11665_s3 + $0x1b0] sm:$0xff] (!%p238_p2) }
   0x9   : > { %8323 = vmatpush3.bf16.msra.mxu1 (!%p238_p2), %v8322_v7  ;;  %v8328_v14 = vpack.c.bf16 (!%p238_p2), %v6219_v12, %v6218_v11  ;;  %v6203_v16 = vld [vmem:[%s11665_s3 + $0x128] sm:$0xff] (!%p238_p2)  ;;  %v6221_v18 = vld [vmem:[%s11665_s3 + $0x1b8] sm:$0xff] (!%p238_p2)  ;;  %v297_v20 = vld [vmem:[%s11665_s3 + $0x80] sm:$0xff] (!%p238_p2) }
   0xa   : > { %8325 = vmatprep.subr.bf16.mxu1 (!%p238_p2), %v8324_v8  ;;  %v8330_v19 = vpack.c.bf16 (!%p238_p2), %v6203_v16, %v6202_v15  ;;  %v298_v21 = vld [vmem:[%s11665_s3 + $0x88] sm:$0xff] (!%p238_p2)  ;;  %v281_v22 = vld [vmem:[%s11665_s3] sm:$0xff] (!%p238_p2)  ;;  %v8332_v23 = vpack.c.bf16 (!%p238_p2), %v6221_v18, %v6220_v17  ;;  %v6204_v24 = vld [vmem:[%s11665_s3 + $0x130] sm:$0xff] (!%p238_p2) }
   0xb   : > { %v6205_v25 = vld [vmem:[%s11665_s3 + $0x138] sm:$0xff] (!%p238_p2)  ;;  %v8288_v26 = vpack.c.bf16 (!%p238_p2), %v298_v21, %v297_v20  ;;  %v282_v27 = vld [vmem:[%s11665_s3 + $0x8] sm:$0xff] (!%p238_p2)  ;;  %v6222_v28 = vld [vmem:[%s11665_s3 + $0x1c0] sm:$0xff] (!%p238_p2) }
   0xc   : > { %v6223_v29 = vld [vmem:[%s11665_s3 + $0x1c8] sm:$0xff] (!%p238_p2)  ;;  %v8290_v30 = vpack.c.bf16 (!%p238_p2), %v282_v27, %v281_v22  ;;  %v299_v31 = vld [vmem:[%s11665_s3 + $0x90] sm:$0xff] (!%p238_p2)  ;;  %v300_v32 = vld [vmem:[%s11665_s3 + $0x98] sm:$0xff] (!%p238_p2)  ;;  %v8334_v35 = vpack.c.bf16 (!%p238_p2), %v6205_v25, %v6204_v24 }
   0xd   : > { %s11672_s25 = smov (!%p9277_p3, %s6189_s25), 1  ;;  %8327 = vmatpush3.bf16.msra.mxu1 %v8326_v13  ;;  %8289 = vmatprep.subr.bf16.mxu0 %v8288_v26  ;;  %v283_v33 = vld [vmem:[%s11665_s3 + $0x10] sm:$0xff]  ;;  %v284_v34 = vld [vmem:[%s11665_s3 + $0x18] sm:$0xff]  ;;  %v6206_v36 = vld [vmem:[%s11665_s3 + $0x140] sm:$0xff]  ;;  %v8292_v39 = vpack.c.bf16 %v300_v32, %v299_v31  ;;  %v8336_v41 = vpack.c.bf16 %v6223_v29, %v6222_v28 }
   0xe   : > { %s6958_s17 = sshll.u32 %s11672_s25, 4  ;;  %8329 = vmatprep.subr.bf16.mxu1 %v8328_v14  ;;  %v6207_v37 = vld [vmem:[%s11665_s3 + $0x148] sm:$0xff]  ;;  %v6224_v38 = vld [vmem:[%s11665_s3 + $0x1d0] sm:$0xff]  ;;  %8291 = vmatpush3.bf16.msra.mxu0 %v8290_v30  ;;  %v8294_v40 = vpack.c.bf16 %v284_v34, %v283_v33  ;;  %v6225_v42 = vld [vmem:[%s11665_s3 + $0x1d8] sm:$0xff] }
   0xf   : > { %s9360_s18 = scalar_lea.vmem %s11662_s0, %s6958_s17  ;;  %v301_v43 = vld [vmem:[%s11665_s3 + $0xa0] sm:$0xff]  ;;  %v302_v44 = vld [vmem:[%s11665_s3 + $0xa8] sm:$0xff]  ;;  %8293 = vmatprep.subr.bf16.mxu0 %v8292_v39  ;;  %v8338_v49 = vpack.c.bf16 %v6207_v37, %v6206_v36  ;;  %v6208_v50 = vld [vmem:[%s11665_s3 + $0x150] sm:$0xff]  ;;  %v8340_v54 = vpack.c.bf16 %v6225_v42, %v6224_v38  ;;  %s278_s19 = scalar_lea.vmem %s11669_s7, %s6958_s17 }
  0x10   : > { %v8296_v45 = vpack.c.bf16 %v302_v44, %v301_v43  ;;  %v285_v46 = vld [vmem:[%s11665_s3 + $0x20] sm:$0xff]  ;;  %v286_v47 = vld [vmem:[%s11665_s3 + $0x28] sm:$0xff]  ;;  %v6209_v51 = vld [vmem:[%s11665_s3 + $0x158] sm:$0xff] }
  0x11   : > { %8331 = vmatpush3.bf16.msra.mxu1 %v8330_v19  ;;  %v9387_v48 = vld [vmem:[%s9360_s18 + $0x8] sm:$0xff]  ;;  %v8298_v52 = vpack.c.bf16 %v286_v47, %v285_v46  ;;  %v303_v53 = vld [vmem:[%s11665_s3 + $0xb0] sm:$0xff]  ;;  %v304_v55 = vld [vmem:[%s11665_s3 + $0xb8] sm:$0xff]  ;;  %v8342_v63 = vpack.c.bf16 %v6209_v51, %v6208_v50 }
  0x12   : > { %8333 = vmatprep.subr.bf16.mxu1 %v8332_v23  ;;  %482 = vmatprep.mubr.f32.mxu1 %v9387_v48  ;;  %v287_v56 = vld [vmem:[%s11665_s3 + $0x30] sm:$0xff]  ;;  %v288_v57 = vld [vmem:[%s11665_s3 + $0x38] sm:$0xff]  ;;  %v6226_v58 = vld [vmem:[%s11665_s3 + $0x1e0] sm:$0xff]  ;;  %v8300_v60 = vpack.c.bf16 %v304_v55, %v303_v53 }
  0x13   : > { %377 = vmatprep.mubr.f32.mxu0 %v9387_v48  ;;  %8295 = vmatpush3.bf16.msra.mxu0 %v8294_v40  ;;  %v6227_v59 = vld [vmem:[%s11665_s3 + $0x1e8] sm:$0xff]  ;;  %v305_v61 = vld [vmem:[%s11665_s3 + $0xc0] sm:$0xff]  ;;  %v8302_v2 = vpack.c.bf16 %v288_v57, %v287_v56  ;;  %v6228_v4 = vld [vmem:[%s11665_s3 + $0x1f0] sm:$0xff] }
  0x14   : > { %8297 = vmatprep.subr.bf16.mxu0 %v8296_v45  ;;  %v306_v62 = vld [vmem:[%s11665_s3 + $0xc8] sm:$0xff]  ;;  %v6210_v0 = vld [vmem:[%s11665_s3 + $0x160] sm:$0xff]  ;;  %v8344_v3 = vpack.c.bf16 %v6227_v59, %v6226_v58  ;;  %v6229_v8 = vld [vmem:[%s11665_s3 + $0x1f8] sm:$0xff] }
  0x15   : > { %8335 = vmatpush3.bf16.msra.mxu1 %v8334_v35  ;;  %v6211_v1 = vld [vmem:[%s11665_s3 + $0x168] sm:$0xff]  ;;  %v8304_v5 = vpack.c.bf16 %v306_v62, %v305_v61  ;;  %v289_v6 = vld [vmem:[%s11665_s3 + $0x40] sm:$0xff]  ;;  %v307_v9 = vld [vmem:[%s11665_s3 + $0xd0] sm:$0xff]  ;;  %v8348_v15 = vpack.c.bf16 %v6229_v8, %v6228_v4 }
  0x16   : > { %8337 = vmatprep.subr.bf16.mxu1 %v8336_v41  ;;  %v290_v7 = vld [vmem:[%s11665_s3 + $0x48] sm:$0xff]  ;;  %v308_v10 = vld [vmem:[%s11665_s3 + $0xd8] sm:$0xff]  ;;  %v8346_v11 = vpack.c.bf16 %v6211_v1, %v6210_v0  ;;  %v6212_v12 = vld [vmem:[%s11665_s3 + $0x170] sm:$0xff] }
  0x17   : > { %8299 = vmatpush3.bf16.msra.mxu0 %v8298_v52  ;;  %v6213_v13 = vld [vmem:[%s11665_s3 + $0x178] sm:$0xff]  ;;  %v8306_v14 = vpack.c.bf16 %v290_v7, %v289_v6  ;;  %v6252_v16 = vld [vmem:[%s11665_s3 + $0x280] sm:$0xff]  ;;  %v8308_v17 = vpack.c.bf16 %v308_v10, %v307_v9  ;;  %v291_v18 = vld [vmem:[%s11665_s3 + $0x50] sm:$0xff] }
  0x18   : > { %8301 = vmatprep.subr.bf16.mxu0 %v8300_v60  ;;  %v292_v19 = vld [vmem:[%s11665_s3 + $0x58] sm:$0xff]  ;;  %v6253_v20 = vld [vmem:[%s11665_s3 + $0x288] sm:$0xff]  ;;  %v309_v21 = vld [vmem:[%s11665_s3 + $0xe0] sm:$0xff]  ;;  %v8350_v23 = vpack.c.bf16 %v6213_v13, %v6212_v12 }
  0x19   : > { %8339 = vmatpush3.bf16.msra.mxu1 %v8338_v49  ;;  %v310_v22 = vld [vmem:[%s11665_s3 + $0xe8] sm:$0xff]  ;;  %v6236_v24 = vld [vmem:[%s11665_s3 + $0x200] sm:$0xff]  ;;  %v8310_v26 = vpack.c.bf16 %v292_v19, %v291_v18  ;;  %v8352_v27 = vpack.c.bf16 %v6253_v20, %v6252_v16  ;;  %v6254_v28 = vld [vmem:[%s11665_s3 + $0x290] sm:$0xff] }
  0x1a   : > { %8341 = vmatprep.subr.bf16.mxu1 %v8340_v54  ;;  %v6237_v25 = vld [vmem:[%s11665_s3 + $0x208] sm:$0xff]  ;;  %v8312_v29 = vpack.c.bf16 %v310_v22, %v309_v21  ;;  %v293_v30 = vld [vmem:[%s11665_s3 + $0x60] sm:$0xff]  ;;  %v6255_v32 = vld [vmem:[%s11665_s3 + $0x298] sm:$0xff] }
  0x1b   : > { %8303 = vmatpush3.bf16.msra.mxu0 %v8302_v2  ;;  %v294_v31 = vld [vmem:[%s11665_s3 + $0x68] sm:$0xff]  ;;  %v311_v33 = vld [vmem:[%s11665_s3 + $0xf0] sm:$0xff]  ;;  %v312_v34 = vld [vmem:[%s11665_s3 + $0xf8] sm:$0xff]  ;;  %v8354_v36 = vpack.c.bf16 %v6237_v25, %v6236_v24  ;;  %v8356_v39 = vpack.c.bf16 %v6255_v32, %v6254_v28 }
  0x1c   : > { %8305 = vmatprep.subr.bf16.mxu0 %v8304_v5  ;;  %v9494_v35 = vld [vmem:[%s9360_s18] sm:$0xff]  ;;  %v6238_v37 = vld [vmem:[%s11665_s3 + $0x210] sm:$0xff]  ;;  %v8314_v38 = vpack.c.bf16 %v294_v31, %v293_v30  ;;  %v6239_v40 = vld [vmem:[%s11665_s3 + $0x218] sm:$0xff]  ;;  %v8316_v41 = vpack.c.bf16 %v312_v34, %v311_v33 }
  0x1d   : > { %8343 = vmatpush3.bf16.msra.mxu1 %v8342_v63  ;;  %v295_v42 = vld [vmem:[%s11665_s3 + $0x70] sm:$0xff]  ;;  %v296_v43 = vld [vmem:[%s11665_s3 + $0x78] sm:$0xff]  ;;  %v6256_v44 = vld [vmem:[%s11665_s3 + $0x2a0] sm:$0xff]  ;;  %v8358_v46 = vpack.c.bf16 %v6239_v40, %v6238_v37 }
  0x1e   : > { %8345 = vmatprep.subr.bf16.mxu1 %v8344_v3  ;;  %v6257_v45 = vld [vmem:[%s11665_s3 + $0x2a8] sm:$0xff]  ;;  %v8318_v47 = vpack.c.bf16 %v296_v43, %v295_v42  ;;  %v6240_v50 = vld [vmem:[%s11665_s3 + $0x220] sm:$0xff]  ;;  %v6258_v52 = vld [vmem:[%s11665_s3 + $0x2b0] sm:$0xff] }
  0x1f   : > { %8307 = vmatpush3.bf16.msra.mxu0 %v8306_v14  ;;  %v8360_v49 = vpack.c.bf16 %v6257_v45, %v6256_v44  ;;  %v6241_v51 = vld [vmem:[%s11665_s3 + $0x228] sm:$0xff]  ;;  %v6259_v53 = vld [vmem:[%s11665_s3 + $0x2b8] sm:$0xff]  ;;  %v6242_v56 = vld [vmem:[%s11665_s3 + $0x230] sm:$0xff] }
  0x20   : > { %8309 = vmatprep.subr.bf16.mxu0 %v8308_v17  ;;  %v8362_v54 = vpack.c.bf16 %v6241_v51, %v6240_v50  ;;  %v8364_v55 = vpack.c.bf16 %v6259_v53, %v6258_v52  ;;  %v6243_v57 = vld [vmem:[%s11665_s3 + $0x238] sm:$0xff]  ;;  %v6260_v58 = vld [vmem:[%s11665_s3 + $0x2c0] sm:$0xff]  ;;  %v6261_v59 = vld [vmem:[%s11665_s3 + $0x2c8] sm:$0xff] }
  0x21   : > { %8347 = vmatpush3.bf16.msra.mxu1 %v8346_v11  ;;  %v8366_v60 = vpack.c.bf16 %v6243_v57, %v6242_v56  ;;  %v8368_v61 = vpack.c.bf16 %v6261_v59, %v6260_v58  ;;  %v6244_v62 = vld [vmem:[%s11665_s3 + $0x240] sm:$0xff]  ;;  %v6245_v63 = vld [vmem:[%s11665_s3 + $0x248] sm:$0xff]  ;;  %v6262_v0 = vld [vmem:[%s11665_s3 + $0x2d0] sm:$0xff] }
  0x22   : > { %8349 = vmatprep.subr.bf16.mxu1 %v8348_v15  ;;  %v6263_v1 = vld [vmem:[%s11665_s3 + $0x2d8] sm:$0xff]  ;;  %v8370_v2 = vpack.c.bf16 %v6245_v63, %v6244_v62  ;;  %v6246_v4 = vld [vmem:[%s11665_s3 + $0x250] sm:$0xff]  ;;  %v6264_v6 = vld [vmem:[%s11665_s3 + $0x2e0] sm:$0xff] }
  0x23   : > { %8311 = vmatpush3.bf16.msra.mxu0 %v8310_v26  ;;  %v8372_v3 = vpack.c.bf16 %v6263_v1, %v6262_v0  ;;  %v6247_v5 = vld [vmem:[%s11665_s3 + $0x258] sm:$0xff]  ;;  %v6265_v7 = vld [vmem:[%s11665_s3 + $0x2e8] sm:$0xff]  ;;  %v6248_v10 = vld [vmem:[%s11665_s3 + $0x260] sm:$0xff] }
  0x24   : > { %8313 = vmatprep.subr.bf16.mxu0 %v8312_v29  ;;  %v8374_v8 = vpack.c.bf16 %v6247_v5, %v6246_v4  ;;  %v8376_v9 = vpack.c.bf16 %v6265_v7, %v6264_v6  ;;  %v6249_v11 = vld [vmem:[%s11665_s3 + $0x268] sm:$0xff]  ;;  %v6266_v12 = vld [vmem:[%s11665_s3 + $0x2f0] sm:$0xff]  ;;  %v6267_v13 = vld [vmem:[%s11665_s3 + $0x2f8] sm:$0xff] }
  0x25   : > { %8351 = vmatpush3.bf16.msra.mxu1 %v8350_v23  ;;  %v8378_v14 = vpack.c.bf16 %v6249_v11, %v6248_v10  ;;  %v8380_v15 = vpack.c.bf16 %v6267_v13, %v6266_v12  ;;  %v6250_v16 = vld [vmem:[%s11665_s3 + $0x270] sm:$0xff]  ;;  %v6251_v17 = vld [vmem:[%s11665_s3 + $0x278] sm:$0xff]  ;;  %v6324_v20 = vld [vmem:[%s11665_s3 + $0x480] sm:$0xff] }
  0x26   : > { %8353 = vmatprep.subr.bf16.mxu1 %v8352_v27  ;;  %v8382_v18 = vpack.c.bf16 %v6251_v17, %v6250_v16  ;;  %v6230_v19 = vld [vmem:[%s11663_s1 + $0x10] sm:$0xff]  ;;  %v6325_v21 = vld [vmem:[%s11665_s3 + $0x488] sm:$0xff]  ;;  %v6308_v22 = vld [vmem:[%s11665_s3 + $0x400] sm:$0xff] }
  0x27   : > { %8315 = vmatpush3.bf16.msra.mxu0 %v8314_v38  ;;  %v6309_v23 = vld [vmem:[%s11665_s3 + $0x408] sm:$0xff]  ;;  %v8416_v24 = vpack.c.bf16 %v6325_v21, %v6324_v20  ;;  %v6326_v26 = vld [vmem:[%s11665_s3 + $0x490] sm:$0xff]  ;;  %v6327_v27 = vld [vmem:[%s11665_s3 + $0x498] sm:$0xff] }
  0x28   : > { %483 = vmatmul.mubr.f32.vlgmr.msra.gmra.mrb[0].mxu1 %v9494_v35  ;;  %8317 = vmatprep.subr.bf16.mxu0 %v8316_v41  ;;  %v8418_v25 = vpack.c.bf16 %v6309_v23, %v6308_v22  ;;  %v6310_v28 = vld [vmem:[%s11665_s3 + $0x410] sm:$0xff]  ;;  %v6311_v29 = vld [vmem:[%s11665_s3 + $0x418] sm:$0xff]  ;;  %v8420_v30 = vpack.c.bf16 %v6327_v27, %v6326_v26  ;;  %v6328_v32 = vld [vmem:[%s11665_s3 + $0x4a0] sm:$0xff] }
  0x29   : > { %8355 = vmatpush3.bf16.msra.mxu1 %v8354_v36  ;;  %751 = vmatprep.mubr.f32.mxu1 %v9387_v48  ;;  %v8422_v31 = vpack.c.bf16 %v6311_v29, %v6310_v28  ;;  %v6329_v33 = vld [vmem:[%s11665_s3 + $0x4a8] sm:$0xff]  ;;  %v6312_v34 = vld [vmem:[%s11665_s3 + $0x420] sm:$0xff]  ;;  %v6331_v40 = vld [vmem:[%s11665_s3 + $0x4b8] sm:$0xff] }
  0x2a   : > { %8357 = vmatprep.subr.bf16.mxu1 %v8356_v39  ;;  %v6313_v36 = vld [vmem:[%s11665_s3 + $0x428] sm:$0xff]  ;;  %v8424_v37 = vpack.c.bf16 %v6329_v33, %v6328_v32  ;;  %v6330_v39 = vld [vmem:[%s11665_s3 + $0x4b0] sm:$0xff]  ;;  %v6315_v42 = vld [vmem:[%s11665_s3 + $0x438] sm:$0xff] }
  0x2b   : > { %8319 = vmatpush3.bf16.msra.mxu0 %v8318_v47  ;;  %v8426_v38 = vpack.c.bf16 %v6313_v36, %v6312_v34  ;;  %v6314_v41 = vld [vmem:[%s11665_s3 + $0x430] sm:$0xff]  ;;  %v8428_v43 = vpack.c.bf16 %v6331_v40, %v6330_v39  ;;  %v6332_v45 = vld [vmem:[%s11665_s3 + $0x4c0] sm:$0xff]  ;;  %v6335_v53 = vld [vmem:[%s11665_s3 + $0x4d8] sm:$0xff] }
  0x2c   : > { %v8430_v44 = vpack.c.bf16 %v6315_v42, %v6314_v41  ;;  %v6316_v47 = vld [vmem:[%s11665_s3 + $0x440] sm:$0xff]  ;;  %v6334_v52 = vld [vmem:[%s11665_s3 + $0x4d0] sm:$0xff]  ;;  %v6337_v59 = vld [vmem:[%s11665_s3 + $0x4e8] sm:$0xff] }
  0x2d   : > { %8359 = vmatpush3.bf16.msra.mxu1 %v8358_v46  ;;  %v6333_v46 = vld [vmem:[%s11665_s3 + $0x4c8] sm:$0xff]  ;;  %v8436_v56 = vpack.c.bf16 %v6335_v53, %v6334_v52  ;;  %v6336_v58 = vld [vmem:[%s11665_s3 + $0x4e0] sm:$0xff]  ;;  %v6338_v0 = vld [vmem:[%s11665_s3 + $0x4f0] sm:$0xff] }
  0x2e   : > { %8361 = vmatprep.subr.bf16.mxu1 %v8360_v49  ;;  %378 = vmatmul.mubr.f32.vlgmr.msra.gmra.mrb[0].mxu0 %v9494_v35  ;;  %v6317_v49 = vld [vmem:[%s11665_s3 + $0x448] sm:$0xff]  ;;  %v8432_v50 = vpack.c.bf16 %v6333_v46, %v6332_v45  ;;  %v8440_v62 = vpack.c.bf16 %v6337_v59, %v6336_v58  ;;  %v6339_v1 = vld [vmem:[%s11665_s3 + $0x4f8] sm:$0xff]  ;;  %v383_v10 = vld [vmem:[%s11663_s1] sm:$0xff] }
  0x2f   : > { %7794 = vmatprep.mubr.msk.f32.mxu0 %vm491_vm0, %v6230_v19  ;;  %v8434_v51 = vpack.c.bf16 %v6317_v49, %v6316_v47  ;;  %v6323_v4 = vld [vmem:[%s11665_s3 + $0x478] sm:$0xff]  ;;  %v6288_v16 = vld [vmem:[%s11665_s3 + $0x380] sm:$0xff]  ;;  %v6289_v17 = vld [vmem:[%s11665_s3 + $0x388] sm:$0xff] }
  0x30   : > { %v6272_v19 = vld [vmem:[%s11665_s3 + $0x300] sm:$0xff]  ;;  %v6273_v20 = vld [vmem:[%s11665_s3 + $0x308] sm:$0xff]  ;;  %v6290_v22 = vld [vmem:[%s11665_s3 + $0x390] sm:$0xff] }
  0x31   : > { %8363 = vmatpush3.bf16.msra.mxu1 %v8362_v54  ;;  %v6318_v54 = vld [vmem:[%s11665_s3 + $0x450] sm:$0xff]  ;;  %v6291_v23 = vld [vmem:[%s11665_s3 + $0x398] sm:$0xff]  ;;  %v6269_v26 = vld [vmem:[%s11663_s1 + $0x28] sm:$0xff]  ;;  %v8386_v27 = vpack.c.bf16 %v6273_v20, %v6272_v19 }
  0x32   : > { %8365 = vmatprep.subr.bf16.mxu1 %v8364_v55  ;;  %v6319_v55 = vld [vmem:[%s11665_s3 + $0x458] sm:$0xff]  ;;  %v8388_v28 = vpack.c.bf16 %v6291_v23, %v6290_v22  ;;  %v6274_v29 = vld [vmem:[%s11665_s3 + $0x310] sm:$0xff]  ;;  %v6293_v32 = vld [vmem:[%s11665_s3 + $0x3a8] sm:$0xff] }
  0x33   : > { %v8438_v57 = vpack.c.bf16 %v6319_v55, %v6318_v54  ;;  %v6276_v36 = vld [vmem:[%s11665_s3 + $0x320] sm:$0xff]  ;;  %v6295_v39 = vld [vmem:[%s11665_s3 + $0x3b8] sm:$0xff]  ;;  %v6278_v42 = vld [vmem:[%s11665_s3 + $0x330] sm:$0xff] }
  0x34   : > { %v6297_v45 = vld [vmem:[%s11665_s3 + $0x3c8] sm:$0xff]  ;;  %v6280_v49 = vld [vmem:[%s11665_s3 + $0x340] sm:$0xff]  ;;  %v6299_v52 = vld [vmem:[%s11665_s3 + $0x3d8] sm:$0xff] }
  0x35   : > { %8367 = vmatpush3.bf16.msra.mxu1 %v8366_v60  ;;  %v6320_v60 = vld [vmem:[%s11665_s3 + $0x460] sm:$0xff]  ;;  %v6282_v55 = vld [vmem:[%s11665_s3 + $0x350] sm:$0xff]  ;;  %v6301_v58 = vld [vmem:[%s11665_s3 + $0x3e8] sm:$0xff] }
  0x36   : > { %8369 = vmatprep.subr.bf16.mxu1 %v8368_v61  ;;  %v6321_v61 = vld [vmem:[%s11665_s3 + $0x468] sm:$0xff]  ;;  %v6383_v19 = vld [vmem:[%s11665_s3 + $0x618] sm:$0xff]  ;;  %v6400_v22 = vld [vmem:[%s11665_s3 + $0x6a0] sm:$0xff] }
  0x37   : > { %v8442_v63 = vpack.c.bf16 %v6321_v61, %v6320_v60  ;;  %v6284_v61 = vld [vmem:[%s11665_s3 + $0x360] sm:$0xff]  ;;  %v6401_v23 = vld [vmem:[%s11665_s3 + $0x6a8] sm:$0xff] }
  0x39   : > { %8371 = vmatpush3.bf16.msra.mxu1 %v8370_v2  ;;  %v8444_v2 = vpack.c.bf16 %v6339_v1, %v6338_v0  ;;  %v6303_v0 = vld [vmem:[%s11665_s3 + $0x3f8] sm:$0xff] }
  0x3a   : > { %8373 = vmatprep.subr.bf16.mxu1 %v8372_v3  ;;  %v6322_v3 = vld [vmem:[%s11665_s3 + $0x470] sm:$0xff] }
  0x3b   : > { %v8446_v5 = vpack.c.bf16 %v6323_v4, %v6322_v3  ;;  %v6286_v3 = vld [vmem:[%s11665_s3 + $0x370] sm:$0xff]  ;;  %v6287_v4 = vld [vmem:[%s11665_s3 + $0x378] sm:$0xff] }
  0x3d   : > { %8375 = vmatpush3.bf16.msra.mxu1 %v8374_v8 }
  0x3e   : > { %8377 = vmatprep.subr.bf16.mxu1 %v8376_v9  ;;  %v6231_v9 = vld [vmem:[%s11663_s1 + $0x18] sm:$0xff] }
  0x41   : > { %8379 = vmatpush3.bf16.msra.mxu1 %v8378_v14  ;;  %v384_v14 = vld [vmem:[%s11663_s1 + $0x8] sm:$0xff] }
  0x42   : > { %8381 = vmatprep.subr.bf16.mxu1 %v8380_v15  ;;  %v6268_v15 = vld [vmem:[%s11663_s1 + $0x20] sm:$0xff] }
  0x45   : > { %8383 = vmatpush3.bf16.msra.mxu1 %v8382_v18 }
  0x46   : > { %8417 = vmatprep.subr.bf16.mxu1 %v8416_v24 }
  0x48   : > { %752 = vmatmul.mubr.f32.vlgmr.msra.gmra.mrb[2].mxu1 %v9494_v35 }
  0x49   : > { %1129 = vmatprep.mubr.f32.mxu1 %v9387_v48  ;;  %8419 = vmatpush3.bf16.msra.mxu1 %v8418_v25  ;;  %v8384_v25 = vpack.c.bf16 %v6289_v17, %v6288_v16  ;;  %v6398_v16 = vld [vmem:[%s11665_s3 + $0x690] sm:$0xff]  ;;  %v6399_v17 = vld [vmem:[%s11665_s3 + $0x698] sm:$0xff] }
  0x4a   : > { %8421 = vmatprep.subr.bf16.mxu1 %v8420_v30  ;;  %v6275_v30 = vld [vmem:[%s11665_s3 + $0x318] sm:$0xff]  ;;  %v8484_v20 = vpack.c.bf16 %v6399_v17, %v6398_v16  ;;  %v6344_v17 = vld [vmem:[%s11665_s3 + $0x500] sm:$0xff] }
  0x4b   : > { %v8390_v33 = vpack.c.bf16 %v6275_v30, %v6274_v29  ;;  %v6403_v29 = vld [vmem:[%s11665_s3 + $0x6b8] sm:$0xff]  ;;  %v6386_v30 = vld [vmem:[%s11665_s3 + $0x630] sm:$0xff] }
  0x4d   : > { %8423 = vmatpush3.bf16.msra.mxu1 %v8422_v31  ;;  %v6292_v31 = vld [vmem:[%s11665_s3 + $0x3a0] sm:$0xff] }
  0x4e   : > { %8425 = vmatprep.subr.bf16.mxu1 %v8424_v37  ;;  %v8392_v34 = vpack.c.bf16 %v6293_v32, %v6292_v31  ;;  %v6277_v37 = vld [vmem:[%s11665_s3 + $0x328] sm:$0xff]  ;;  %v6387_v31 = vld [vmem:[%s11665_s3 + $0x638] sm:$0xff] }
  0x4f   : > { %v8394_v40 = vpack.c.bf16 %v6277_v37, %v6276_v36  ;;  %v6405_v36 = vld [vmem:[%s11665_s3 + $0x6c8] sm:$0xff]  ;;  %v6388_v37 = vld [vmem:[%s11665_s3 + $0x640] sm:$0xff] }
  0x51   : > { %8427 = vmatpush3.bf16.msra.mxu1 %v8426_v38  ;;  %v6294_v38 = vld [vmem:[%s11665_s3 + $0x3b0] sm:$0xff] }
  0x52   : > { %8429 = vmatprep.subr.bf16.mxu1 %v8428_v43  ;;  %v8396_v41 = vpack.c.bf16 %v6295_v39, %v6294_v38  ;;  %v6279_v43 = vld [vmem:[%s11665_s3 + $0x338] sm:$0xff]  ;;  %v6389_v38 = vld [vmem:[%s11665_s3 + $0x648] sm:$0xff] }
  0x53   : > { %v8398_v46 = vpack.c.bf16 %v6279_v43, %v6278_v42  ;;  %v6407_v42 = vld [vmem:[%s11665_s3 + $0x6d8] sm:$0xff]  ;;  %v6390_v43 = vld [vmem:[%s11665_s3 + $0x650] sm:$0xff] }
  0x55   : > { %8431 = vmatpush3.bf16.msra.mxu1 %v8430_v44  ;;  %v6296_v44 = vld [vmem:[%s11665_s3 + $0x3c0] sm:$0xff] }
  0x56   : > { %8433 = vmatprep.subr.bf16.mxu1 %v8432_v50  ;;  %v8400_v47 = vpack.c.bf16 %v6297_v45, %v6296_v44  ;;  %v6281_v50 = vld [vmem:[%s11665_s3 + $0x348] sm:$0xff]  ;;  %v6391_v44 = vld [vmem:[%s11665_s3 + $0x658] sm:$0xff] }
  0x57   : > { %v8402_v53 = vpack.c.bf16 %v6281_v50, %v6280_v49  ;;  %v6409_v49 = vld [vmem:[%s11665_s3 + $0x6e8] sm:$0xff]  ;;  %v6392_v50 = vld [vmem:[%s11665_s3 + $0x660] sm:$0xff] }
  0x59   : > { %8435 = vmatpush3.bf16.msra.mxu1 %v8434_v51  ;;  %v6298_v51 = vld [vmem:[%s11665_s3 + $0x3d0] sm:$0xff] }
  0x5a   : > { %8437 = vmatprep.subr.bf16.mxu1 %v8436_v56  ;;  %v8404_v54 = vpack.c.bf16 %v6299_v52, %v6298_v51  ;;  %v6283_v56 = vld [vmem:[%s11665_s3 + $0x358] sm:$0xff]  ;;  %v6393_v51 = vld [vmem:[%s11665_s3 + $0x668] sm:$0xff] }
  0x5b   : > { %v8406_v59 = vpack.c.bf16 %v6283_v56, %v6282_v55  ;;  %v6411_v55 = vld [vmem:[%s11665_s3 + $0x6f8] sm:$0xff] }
  0x5d   : > { %8439 = vmatpush3.bf16.msra.mxu1 %v8438_v57  ;;  %v6300_v57 = vld [vmem:[%s11665_s3 + $0x3e0] sm:$0xff] }
  0x5e   : > { %8441 = vmatprep.subr.bf16.mxu1 %v8440_v62  ;;  %v8408_v60 = vpack.c.bf16 %v6301_v58, %v6300_v57  ;;  %v6285_v62 = vld [vmem:[%s11665_s3 + $0x368] sm:$0xff]  ;;  %v6394_v57 = vld [vmem:[%s11665_s3 + $0x670] sm:$0xff]  ;;  %v6395_v58 = vld [vmem:[%s11665_s3 + $0x678] sm:$0xff] }
  0x5f   : > { %v8410_v1 = vpack.c.bf16 %v6285_v62, %v6284_v61  ;;  %v6469_v61 = vld [vmem:[%s11665_s3 + $0x888] sm:$0xff]  ;;  %v6452_v62 = vld [vmem:[%s11665_s3 + $0x800] sm:$0xff] }
  0x61   : > { %8443 = vmatpush3.bf16.msra.mxu1 %v8442_v63  ;;  %v6302_v63 = vld [vmem:[%s11665_s3 + $0x3f0] sm:$0xff] }
  0x62   : > { %8445 = vmatprep.subr.bf16.mxu1 %v8444_v2  ;;  %v8412_v2 = vpack.c.bf16 %v6303_v0, %v6302_v63  ;;  %v6453_v0 = vld [vmem:[%s11665_s3 + $0x808] sm:$0xff] }
  0x65   : > { %8447 = vmatpush3.bf16.msra.mxu1 %v8446_v5  ;;  %v8414_v5 = vpack.c.bf16 %v6287_v4, %v6286_v3  ;;  %v8546_v3 = vpack.c.bf16 %v6453_v0, %v6452_v62  ;;  %v6473_v0 = vld [vmem:[%s11665_s3 + $0x8a8] sm:$0xff] }
  0x68   : > { %1130 = vmatmul.mubr.f32.vlgmr.msra.gmra.mrb[4].mxu1 %v9494_v35 }
  0x69   : > { %1507 = vmatprep.mubr.f32.mxu1 %v9387_v48 }
  0xfb   : > { %v7027_v6 = vpop.f32.mrb[0].mxu1 }
  0xfc   : > { %v7028_v7 = vpop.f32.mrb[1].mxu1 }
  0xfd   : > { %v7029_v8 = vadd.f32 %v7028_v7, %v7027_v6  ;;  %v6304_v6 = vld [vmem:[%s11663_s1 + $0x30] sm:$0xff] }
  0xff   : > { %7792 = vmatprep.subr.mxu0 %v7029_v8 }
 0x100   : > { %7793 = vmatpush3.msra.mxu0 %v7029_v8 }
 0x101   : > { %7795 = vmatmul.mubr.msk.f32.vlgmr.msra.gmra.mrb[2].mxu0 %vm491_vm0, %v6231_v9  ;;  %v6992_v11 = vpop.f32.mrb[0].mxu0 }
 0x102   : > { %7799 = vmatprep.mubr.msk.f32.mxu0 %vm491_vm0, %v383_v10  ;;  %v6993_v12 = vpop.f32.mrb[1].mxu0  ;;  %v6396_v10 = vld [vmem:[%s11665_s3 + $0x680] sm:$0xff] }
 0x103   : > { %v6994_v13 = vadd.f32 %v6993_v12, %v6992_v11  ;;  %v6397_v11 = vld [vmem:[%s11665_s3 + $0x688] sm:$0xff]  ;;  %v6380_v12 = vld [vmem:[%s11665_s3 + $0x600] sm:$0xff] }
 0x105   : > { %7797 = vmatprep.subr.mxu0 %v6994_v13 }
 0x106   : > { %7798 = vmatpush3.msra.mxu0 %v6994_v13  ;;  %v6381_v13 = vld [vmem:[%s11665_s3 + $0x608] sm:$0xff] }
 0x109   : > { %7800 = vmatmul.mubr.msk.f32.vlgmr.msra.gmra.mrb[2].mxu0 %vm491_vm0, %v384_v14  ;;  %v8480_v14 = vpack.c.bf16 %v6397_v11, %v6396_v10  ;;  %v6360_v11 = vld [vmem:[%s11665_s3 + $0x580] sm:$0xff] }
 0x10a   : > { %7804 = vmatprep.mubr.msk.f32.mxu0 %vm491_vm0, %v6268_v15  ;;  %v8482_v15 = vpack.c.bf16 %v6381_v13, %v6380_v12  ;;  %v6361_v12 = vld [vmem:[%s11665_s3 + $0x588] sm:$0xff] }
 0x10b   : > { %8481 = vmatprep.subr.bf16.mxu1 %v8480_v14  ;;  %v6305_v14 = vld [vmem:[%s11663_s1 + $0x38] sm:$0xff]  ;;  %v8448_v16 = vpack.c.bf16 %v6361_v12, %v6360_v11 }
 0x10c   : > { %8483 = vmatpush3.bf16.msra.mxu1 %v8482_v15  ;;  %v6340_v15 = vld [vmem:[%s11663_s1 + $0x40] sm:$0xff]  ;;  %v6459_v11 = vld [vmem:[%s11665_s3 + $0x838] sm:$0xff] }
 0x10d   : > { %8485 = vmatprep.subr.bf16.mxu1 %v8484_v20  ;;  %v6363_v20 = vld [vmem:[%s11665_s3 + $0x598] sm:$0xff] }
 0x11b   : > { %v7068_v18 = vpop.f32.mrb[2].mxu1 }
 0x11c   : > { %v7069_v21 = vpop.f32.mrb[3].mxu1 }
 0x11d   : > { %v7070_v24 = vadd.f32 %v7069_v21, %v7068_v18  ;;  %v6382_v18 = vld [vmem:[%s11665_s3 + $0x610] sm:$0xff] }
 0x11e   : > { %v8486_v21 = vpack.c.bf16 %v6383_v19, %v6382_v18  ;;  %v6345_v18 = vld [vmem:[%s11665_s3 + $0x508] sm:$0xff]  ;;  %v6362_v19 = vld [vmem:[%s11665_s3 + $0x590] sm:$0xff] }
 0x11f   : > { %7802 = vmatprep.subr.mxu0 %v7070_v24 }
 0x120   : > { %7803 = vmatpush3.msra.mxu0 %v7070_v24  ;;  %8487 = vmatpush3.bf16.msra.mxu1 %v8486_v21  ;;  %v6384_v24 = vld [vmem:[%s11665_s3 + $0x620] sm:$0xff]  ;;  %v8450_v21 = vpack.c.bf16 %v6345_v18, %v6344_v17 }
 0x121   : > { %8385 = vmatprep.subr.bf16.mxu0 %v8384_v25  ;;  %7805 = vmatmul.mubr.msk.f32.vlgmr.msra.gmra.mrb[2].mxu0 %vm491_vm0, %v6269_v26  ;;  %v6385_v25 = vld [vmem:[%s11665_s3 + $0x628] sm:$0xff]  ;;  %v8488_v26 = vpack.c.bf16 %v6401_v23, %v6400_v22  ;;  %v8452_v22 = vpack.c.bf16 %v6363_v20, %v6362_v19  ;;  %v6346_v23 = vld [vmem:[%s11665_s3 + $0x510] sm:$0xff]  ;;  %v6460_v17 = vld [vmem:[%s11665_s3 + $0x840] sm:$0xff] }
 0x122   : > { %8387 = vmatpush3.bf16.msra.mxu0 %v8386_v27  ;;  %940 = vmatprep.mubr.f32.mxu0 %v9387_v48  ;;  %v8490_v27 = vpack.c.bf16 %v6385_v25, %v6384_v24  ;;  %v6347_v24 = vld [vmem:[%s11665_s3 + $0x518] sm:$0xff]  ;;  %v6364_v25 = vld [vmem:[%s11665_s3 + $0x5a0] sm:$0xff]  ;;  %v6461_v20 = vld [vmem:[%s11665_s3 + $0x848] sm:$0xff] }
 0x123   : > { %8389 = vmatprep.subr.bf16.mxu0 %v8388_v28  ;;  %8489 = vmatprep.subr.bf16.mxu1 %v8488_v26  ;;  %v6402_v28 = vld [vmem:[%s11665_s3 + $0x6b0] sm:$0xff]  ;;  %v6365_v26 = vld [vmem:[%s11665_s3 + $0x5a8] sm:$0xff] }
 0x124   : > { %8491 = vmatpush3.bf16.msra.mxu1 %v8490_v27  ;;  %v8492_v32 = vpack.c.bf16 %v6403_v29, %v6402_v28  ;;  %v8454_v27 = vpack.c.bf16 %v6347_v24, %v6346_v23  ;;  %v8456_v28 = vpack.c.bf16 %v6365_v26, %v6364_v25  ;;  %v6348_v29 = vld [vmem:[%s11665_s3 + $0x520] sm:$0xff]  ;;  %v6462_v24 = vld [vmem:[%s11665_s3 + $0x850] sm:$0xff]  ;;  %v6463_v25 = vld [vmem:[%s11665_s3 + $0x858] sm:$0xff] }
 0x125   : > { %v8566_v26 = vpack.c.bf16 %v6463_v25, %v6462_v24  ;;  %v10225_v25 = vld [vmem:[%s9360_s18] sm:$0xff] }
 0x126   : > { %8391 = vmatpush3.bf16.msra.mxu0 %v8390_v33  ;;  %v8494_v33 = vpack.c.bf16 %v6387_v31, %v6386_v30  ;;  %8493 = vmatprep.subr.bf16.mxu1 %v8492_v32  ;;  %v6349_v30 = vld [vmem:[%s11665_s3 + $0x528] sm:$0xff]  ;;  %v6366_v31 = vld [vmem:[%s11665_s3 + $0x5b0] sm:$0xff]  ;;  %v6367_v32 = vld [vmem:[%s11665_s3 + $0x5b8] sm:$0xff] }
 0x127   : > { %8393 = vmatprep.subr.bf16.mxu0 %v8392_v34  ;;  %v6404_v34 = vld [vmem:[%s11665_s3 + $0x6c0] sm:$0xff] }
 0x128   : > { %8495 = vmatpush3.bf16.msra.mxu1 %v8494_v33  ;;  %v8496_v39 = vpack.c.bf16 %v6405_v36, %v6404_v34  ;;  %v8460_v33 = vpack.c.bf16 %v6367_v32, %v6366_v31  ;;  %v6350_v34 = vld [vmem:[%s11665_s3 + $0x530] sm:$0xff]  ;;  %v6351_v36 = vld [vmem:[%s11665_s3 + $0x538] sm:$0xff] }
 0x12a   : > { %8395 = vmatpush3.bf16.msra.mxu0 %v8394_v40  ;;  %v8498_v40 = vpack.c.bf16 %v6389_v38, %v6388_v37  ;;  %8497 = vmatprep.subr.bf16.mxu1 %v8496_v39  ;;  %v6368_v37 = vld [vmem:[%s11665_s3 + $0x5c0] sm:$0xff]  ;;  %v6369_v38 = vld [vmem:[%s11665_s3 + $0x5c8] sm:$0xff]  ;;  %v8462_v39 = vpack.c.bf16 %v6351_v36, %v6350_v34  ;;  %v6466_v34 = vld [vmem:[%s11665_s3 + $0x870] sm:$0xff] }
 0x12b   : > { %8397 = vmatprep.subr.bf16.mxu0 %v8396_v41  ;;  %v6406_v41 = vld [vmem:[%s11665_s3 + $0x6d0] sm:$0xff]  ;;  %v6467_v36 = vld [vmem:[%s11665_s3 + $0x878] sm:$0xff] }
 0x12c   : > { %8499 = vmatpush3.bf16.msra.mxu1 %v8498_v40  ;;  %v8500_v45 = vpack.c.bf16 %v6407_v42, %v6406_v41  ;;  %v8464_v40 = vpack.c.bf16 %v6369_v38, %v6368_v37  ;;  %v6352_v41 = vld [vmem:[%s11665_s3 + $0x540] sm:$0xff]  ;;  %v6353_v42 = vld [vmem:[%s11665_s3 + $0x548] sm:$0xff]  ;;  %v8574_v38 = vpack.c.bf16 %v6467_v36, %v6466_v34  ;;  %v6434_v36 = vld [vmem:[%s11665_s3 + $0x790] sm:$0xff] }
 0x12d   : > { %v6417_v34 = vld [vmem:[%s11665_s3 + $0x708] sm:$0xff] }
 0x12e   : > { %8399 = vmatpush3.bf16.msra.mxu0 %v8398_v46  ;;  %v8502_v46 = vpack.c.bf16 %v6391_v44, %v6390_v43  ;;  %8501 = vmatprep.subr.bf16.mxu1 %v8500_v45  ;;  %v6370_v43 = vld [vmem:[%s11665_s3 + $0x5d0] sm:$0xff]  ;;  %v6371_v44 = vld [vmem:[%s11665_s3 + $0x5d8] sm:$0xff]  ;;  %v8466_v45 = vpack.c.bf16 %v6353_v42, %v6352_v41  ;;  %v6488_v41 = vld [vmem:[%s11665_s3 + $0x900] sm:$0xff] }
 0x12f   : > { %8401 = vmatprep.subr.bf16.mxu0 %v8400_v47  ;;  %v6408_v47 = vld [vmem:[%s11665_s3 + $0x6e0] sm:$0xff]  ;;  %v6489_v42 = vld [vmem:[%s11665_s3 + $0x908] sm:$0xff] }
 0x130   : > { %8503 = vmatpush3.bf16.msra.mxu1 %v8502_v46  ;;  %v8504_v52 = vpack.c.bf16 %v6409_v49, %v6408_v47  ;;  %v8468_v46 = vpack.c.bf16 %v6371_v44, %v6370_v43  ;;  %v6354_v47 = vld [vmem:[%s11665_s3 + $0x550] sm:$0xff]  ;;  %v6355_v49 = vld [vmem:[%s11665_s3 + $0x558] sm:$0xff]  ;;  %v8578_v44 = vpack.c.bf16 %v6489_v42, %v6488_v41  ;;  %v6436_v42 = vld [vmem:[%s11665_s3 + $0x7a0] sm:$0xff] }
 0x131   : > { %v6419_v41 = vld [vmem:[%s11665_s3 + $0x718] sm:$0xff] }
 0x132   : > { %8403 = vmatpush3.bf16.msra.mxu0 %v8402_v53  ;;  %v8506_v53 = vpack.c.bf16 %v6393_v51, %v6392_v50  ;;  %8505 = vmatprep.subr.bf16.mxu1 %v8504_v52  ;;  %v6372_v50 = vld [vmem:[%s11665_s3 + $0x5e0] sm:$0xff]  ;;  %v6373_v51 = vld [vmem:[%s11665_s3 + $0x5e8] sm:$0xff]  ;;  %v8470_v52 = vpack.c.bf16 %v6355_v49, %v6354_v47  ;;  %v6490_v47 = vld [vmem:[%s11665_s3 + $0x910] sm:$0xff] }
 0x133   : > { %8405 = vmatprep.subr.bf16.mxu0 %v8404_v54  ;;  %v6410_v54 = vld [vmem:[%s11665_s3 + $0x6f0] sm:$0xff]  ;;  %v6491_v49 = vld [vmem:[%s11665_s3 + $0x918] sm:$0xff] }
 0x134   : > { %8507 = vmatpush3.bf16.msra.mxu1 %v8506_v53  ;;  %v8508_v56 = vpack.c.bf16 %v6411_v55, %v6410_v54  ;;  %v8472_v53 = vpack.c.bf16 %v6373_v51, %v6372_v50  ;;  %v6356_v54 = vld [vmem:[%s11665_s3 + $0x560] sm:$0xff]  ;;  %v6357_v55 = vld [vmem:[%s11665_s3 + $0x568] sm:$0xff]  ;;  %v8582_v51 = vpack.c.bf16 %v6491_v49, %v6490_v47  ;;  %v6438_v49 = vld [vmem:[%s11665_s3 + $0x7b0] sm:$0xff] }
 0x135   : > { %v10149_v50 = vld [vmem:[%s9360_s18 + $0x8] sm:$0xff] }
 0x136   : > { %8407 = vmatpush3.bf16.msra.mxu0 %v8406_v59  ;;  %v8510_v59 = vpack.c.bf16 %v6395_v58, %v6394_v57  ;;  %8509 = vmatprep.subr.bf16.mxu1 %v8508_v56  ;;  %v6374_v56 = vld [vmem:[%s11665_s3 + $0x5f0] sm:$0xff]  ;;  %v6375_v57 = vld [vmem:[%s11665_s3 + $0x5f8] sm:$0xff]  ;;  %v8474_v58 = vpack.c.bf16 %v6357_v55, %v6356_v54  ;;  %v6492_v54 = vld [vmem:[%s11665_s3 + $0x920] sm:$0xff] }
 0x137   : > { %8409 = vmatprep.subr.bf16.mxu0 %v8408_v60  ;;  %v6468_v60 = vld [vmem:[%s11665_s3 + $0x880] sm:$0xff]  ;;  %v6493_v55 = vld [vmem:[%s11665_s3 + $0x928] sm:$0xff] }
 0x138   : > { %v8544_v63 = vpack.c.bf16 %v6469_v61, %v6468_v60  ;;  %8511 = vmatpush3.bf16.msra.mxu1 %v8510_v59  ;;  %v8476_v59 = vpack.c.bf16 %v6375_v57, %v6374_v56  ;;  %v6358_v60 = vld [vmem:[%s11665_s3 + $0x570] sm:$0xff]  ;;  %v6359_v61 = vld [vmem:[%s11665_s3 + $0x578] sm:$0xff]  ;;  %v8586_v57 = vpack.c.bf16 %v6493_v55, %v6492_v54  ;;  %v6421_v47 = vld [vmem:[%s11665_s3 + $0x728] sm:$0xff] }
 0x139   : > { %v8478_v62 = vpack.c.bf16 %v6359_v61, %v6358_v60  ;;  %v6494_v60 = vld [vmem:[%s11665_s3 + $0x930] sm:$0xff]  ;;  %v6495_v61 = vld [vmem:[%s11665_s3 + $0x938] sm:$0xff]  ;;  %v6440_v55 = vld [vmem:[%s11665_s3 + $0x7c0] sm:$0xff] }
 0x13a   : > { %8411 = vmatpush3.bf16.msra.mxu0 %v8410_v1  ;;  %v6470_v1 = vld [vmem:[%s11665_s3 + $0x890] sm:$0xff]  ;;  %8545 = vmatprep.subr.bf16.mxu1 %v8544_v63  ;;  %v6472_v63 = vld [vmem:[%s11665_s3 + $0x8a0] sm:$0xff]  ;;  %v6423_v54 = vld [vmem:[%s11665_s3 + $0x738] sm:$0xff] }
 0x13b   : > { %8413 = vmatprep.subr.bf16.mxu0 %v8412_v2  ;;  %v7144_v7 = vpop.f32.mrb[4].mxu1  ;;  %v6471_v2 = vld [vmem:[%s11665_s3 + $0x898] sm:$0xff]  ;;  %1508 = vmatmul.mubr.f32.vlgmr.msra.gmra.mrb[6].mxu1 %v9494_v35 }
 0x13c   : > { %v7145_v8 = vpop.f32.mrb[5].mxu1  ;;  %v8548_v4 = vpack.c.bf16 %v6471_v2, %v6470_v1  ;;  %8547 = vmatpush3.bf16.msra.mxu1 %v8546_v3  ;;  %1885 = vmatprep.mubr.f32.mxu1 %v9387_v48  ;;  %v8552_v1 = vpack.c.bf16 %v6473_v0, %v6472_v63  ;;  %v6456_v2 = vld [vmem:[%s11665_s3 + $0x820] sm:$0xff]  ;;  %v6457_v3 = vld [vmem:[%s11665_s3 + $0x828] sm:$0xff]  ;;  %v8590_v63 = vpack.c.bf16 %v6495_v61, %v6494_v60  ;;  %v6442_v61 = vld [vmem:[%s11665_s3 + $0x7d0] sm:$0xff] }
 0x13d   : > { %v9809_v9 = vadd.f32 %v7145_v8, %v7144_v7  ;;  %v6512_v0 = vld [vmem:[%s11665_s3 + $0x9c0] sm:$0xff]  ;;  %v6425_v60 = vld [vmem:[%s11665_s3 + $0x748] sm:$0xff] }
 0x13e   : > { %8415 = vmatpush3.bf16.msra.mxu0 %v8414_v5  ;;  %v6454_v5 = vld [vmem:[%s11665_s3 + $0x810] sm:$0xff]  ;;  %8549 = vmatprep.subr.bf16.mxu1 %v8548_v4  ;;  %v8554_v4 = vpack.c.bf16 %v6457_v3, %v6456_v2  ;;  %v6496_v2 = vld [vmem:[%s11665_s3 + $0x940] sm:$0xff]  ;;  %v6497_v3 = vld [vmem:[%s11665_s3 + $0x948] sm:$0xff] }
 0x141   : > { %941 = vmatmul.mubr.f32.vlgmr.msra.gmra.mrb[4].mxu0 %v9494_v35 }
 0x142   : > { %7809 = vmatprep.mubr.msk.f32.mxu0 %vm491_vm0, %v6304_v6  ;;  %v6455_v6 = vld [vmem:[%s11665_s3 + $0x818] sm:$0xff] }
 0x143   : > { %v8550_v7 = vpack.c.bf16 %v6455_v6, %v6454_v5  ;;  %v6474_v5 = vld [vmem:[%s11665_s3 + $0x8b0] sm:$0xff]  ;;  %v6475_v6 = vld [vmem:[%s11665_s3 + $0x8b8] sm:$0xff] }
 0x145   : > { %8551 = vmatpush3.bf16.msra.mxu1 %v8550_v7  ;;  %v6376_v7 = vld [vmem:[%s11663_s1 + $0x50] sm:$0xff] }
 0x146   : > { %8553 = vmatprep.subr.bf16.mxu1 %v8552_v1  ;;  %v6513_v1 = vld [vmem:[%s11665_s3 + $0x9c8] sm:$0xff] }
 0x149   : > { %8555 = vmatpush3.bf16.msra.mxu1 %v8554_v4  ;;  %v8592_v4 = vpack.c.bf16 %v6513_v1, %v6512_v0  ;;  %v6426_v1 = vld [vmem:[%s11665_s3 + $0x750] sm:$0xff] }
 0x214   : > { %v7106_v8 = vpop.f32.mrb[4].mxu0 }
 0x215   : > { %v7107_v10 = vpop.f32.mrb[5].mxu0 }
 0x216   : > { %v7108_v13 = vadd.f32 %v7107_v10, %v7106_v8  ;;  %v8556_v8 = vpack.c.bf16 %v6475_v6, %v6474_v5  ;;  %v6458_v10 = vld [vmem:[%s11665_s3 + $0x830] sm:$0xff]  ;;  %v8594_v5 = vpack.c.bf16 %v6497_v3, %v6496_v2  ;;  %v6427_v2 = vld [vmem:[%s11665_s3 + $0x758] sm:$0xff]  ;;  %v6444_v3 = vld [vmem:[%s11665_s3 + $0x7e0] sm:$0xff] }
 0x217   : > { %v8558_v12 = vpack.c.bf16 %v6459_v11, %v6458_v10  ;;  %v6514_v6 = vld [vmem:[%s11665_s3 + $0x9d0] sm:$0xff]  ;;  %v6499_v11 = vld [vmem:[%s11665_s3 + $0x958] sm:$0xff] }
 0x218   : > { %7807 = vmatprep.subr.mxu0 %v7108_v13  ;;  %8557 = vmatprep.subr.bf16.mxu1 %v8556_v8  ;;  %v6498_v10 = vld [vmem:[%s11665_s3 + $0x950] sm:$0xff] }
 0x219   : > { %7808 = vmatpush3.msra.mxu0 %v7108_v13  ;;  %v7220_v13 = vpop.f32.mrb[6].mxu1  ;;  %8559 = vmatpush3.bf16.msra.mxu1 %v8558_v12  ;;  %v8598_v12 = vpack.c.bf16 %v6499_v11, %v6498_v10  ;;  %v6446_v10 = vld [vmem:[%s11665_s3 + $0x7f0] sm:$0xff]  ;;  %v6447_v11 = vld [vmem:[%s11665_s3 + $0x7f8] sm:$0xff] }
 0x21a   : > { %7810 = vmatmul.mubr.msk.f32.vlgmr.msra.gmra.mrb[2].mxu0 %vm491_vm0, %v6305_v14  ;;  %7812 = vmatprep.subr.mxu0 %v9809_v9  ;;  %v7221_v14 = vpop.f32.mrb[7].mxu1 }
 0x21b   : > { %7813 = vmatpush3.msra.mxu0 %v9809_v9  ;;  %7814 = vmatprep.mubr.msk.f32.mxu0 %vm491_vm0, %v6340_v15  ;;  %v6341_v9 = vld [vmem:[%s11663_s1 + $0x48] sm:$0xff]  ;;  %v6476_v15 = vld [vmem:[%s11665_s3 + $0x8c0] sm:$0xff]  ;;  %v10082_v18 = vadd.f32 %v7221_v14, %v7220_v13 }
 0x21c   : > { %8449 = vmatprep.subr.bf16.mxu0 %v8448_v16  ;;  %v6477_v16 = vld [vmem:[%s11665_s3 + $0x8c8] sm:$0xff]  ;;  %v6516_v13 = vld [vmem:[%s11665_s3 + $0x9e0] sm:$0xff] }
 0x21d   : > { %v8560_v19 = vpack.c.bf16 %v6477_v16, %v6476_v15  ;;  %v6517_v14 = vld [vmem:[%s11665_s3 + $0x9e8] sm:$0xff]  ;;  %v6500_v15 = vld [vmem:[%s11665_s3 + $0x960] sm:$0xff] }
 0x21e   : > { %v8600_v16 = vpack.c.bf16 %v6517_v14, %v6516_v13  ;;  %v8540_v13 = vpack.c.bf16 %v6447_v11, %v6446_v10  ;;  %v6430_v14 = vld [vmem:[%s11665_s3 + $0x770] sm:$0xff] }
 0x21f   : > { %8561 = vmatprep.subr.bf16.mxu1 %v8560_v19  ;;  %v6518_v19 = vld [vmem:[%s11665_s3 + $0x9f0] sm:$0xff] }
 0x222   : > { %7815 = vmatmul.mubr.msk.f32.vlgmr.msra.gmra.mrb[2].mxu0 %vm491_vm0, %v6341_v9  ;;  %v8562_v9 = vpack.c.bf16 %v6461_v20, %v6460_v17  ;;  %v6501_v17 = vld [vmem:[%s11665_s3 + $0x968] sm:$0xff]  ;;  %v6519_v20 = vld [vmem:[%s11665_s3 + $0x9f8] sm:$0xff] }
 0x223   : > { %8451 = vmatpush3.bf16.msra.mxu0 %v8450_v21  ;;  %1318 = vmatprep.mubr.f32.mxu0 %v9387_v48  ;;  %v8458_v48 = vpack.c.bf16 %v6349_v30, %v6348_v29  ;;  %v6478_v21 = vld [vmem:[%s11665_s3 + $0x8d0] sm:$0xff]  ;;  %v6464_v29 = vld [vmem:[%s11665_s3 + $0x860] sm:$0xff]  ;;  %v6465_v30 = vld [vmem:[%s11665_s3 + $0x868] sm:$0xff] }
 0x224   : > { %8453 = vmatprep.subr.bf16.mxu0 %v8452_v22  ;;  %8563 = vmatpush3.bf16.msra.mxu1 %v8562_v9  ;;  %v6479_v22 = vld [vmem:[%s11665_s3 + $0x8d8] sm:$0xff]  ;;  %v8570_v32 = vpack.c.bf16 %v6465_v30, %v6464_v29  ;;  %v8602_v9 = vpack.c.bf16 %v6501_v17, %v6500_v15  ;;  %v6433_v29 = vld [vmem:[%s11665_s3 + $0x788] sm:$0xff] }
 0x225   : > { %v8564_v23 = vpack.c.bf16 %v6479_v22, %v6478_v21  ;;  %v8604_v21 = vpack.c.bf16 %v6519_v20, %v6518_v19  ;;  %v6502_v22 = vld [vmem:[%s11665_s3 + $0x970] sm:$0xff]  ;;  %v6431_v15 = vld [vmem:[%s11665_s3 + $0x778] sm:$0xff] }
 0x227   : > { %8455 = vmatpush3.bf16.msra.mxu0 %v8454_v27  ;;  %8565 = vmatprep.subr.bf16.mxu1 %v8564_v23  ;;  %v6480_v27 = vld [vmem:[%s11665_s3 + $0x8e0] sm:$0xff]  ;;  %v6503_v23 = vld [vmem:[%s11665_s3 + $0x978] sm:$0xff] }
 0x228   : > { %8457 = vmatprep.subr.bf16.mxu0 %v8456_v28  ;;  %8567 = vmatpush3.bf16.msra.mxu1 %v8566_v26  ;;  %v6481_v28 = vld [vmem:[%s11665_s3 + $0x8e8] sm:$0xff]  ;;  %v8606_v24 = vpack.c.bf16 %v6503_v23, %v6502_v22 }
 0x229   : > { %v8568_v31 = vpack.c.bf16 %v6481_v28, %v6480_v27  ;;  %v6432_v28 = vld [vmem:[%s11665_s3 + $0x780] sm:$0xff] }
 0x22b   : > { %8459 = vmatpush3.bf16.msra.mxu0 %v8458_v48  ;;  %8569 = vmatprep.subr.bf16.mxu1 %v8568_v31  ;;  %v6482_v48 = vld [vmem:[%s11665_s3 + $0x8f0] sm:$0xff]  ;;  %v6377_v31 = vld [vmem:[%s11663_s1 + $0x58] sm:$0xff] }
 0x22c   : > { %8461 = vmatprep.subr.bf16.mxu0 %v8460_v33  ;;  %8571 = vmatpush3.bf16.msra.mxu1 %v8570_v32  ;;  %v6483_v33 = vld [vmem:[%s11665_s3 + $0x8f8] sm:$0xff]  ;;  %v6412_v32 = vld [vmem:[%s11663_s1 + $0x60] sm:$0xff] }
 0x22d   : > { %v8572_v37 = vpack.c.bf16 %v6483_v33, %v6482_v48  ;;  %v8512_v48 = vpack.c.bf16 %v6433_v29, %v6432_v28  ;;  %v6416_v33 = vld [vmem:[%s11665_s3 + $0x700] sm:$0xff]  ;;  %v6561_v28 = vld [vmem:[%s11665_s3 + $0xb08] sm:$0xff] }
 0x22f   : > { %8463 = vmatpush3.bf16.msra.mxu0 %v8462_v39  ;;  %8573 = vmatprep.subr.bf16.mxu1 %v8572_v37  ;;  %v6504_v39 = vld [vmem:[%s11665_s3 + $0x980] sm:$0xff]  ;;  %v6435_v37 = vld [vmem:[%s11665_s3 + $0x798] sm:$0xff] }
 0x230   : > { %8465 = vmatprep.subr.bf16.mxu0 %v8464_v40  ;;  %8575 = vmatpush3.bf16.msra.mxu1 %v8574_v38  ;;  %v6505_v40 = vld [vmem:[%s11665_s3 + $0x988] sm:$0xff]  ;;  %v8514_v38 = vpack.c.bf16 %v6417_v34, %v6416_v33  ;;  %v6563_v33 = vld [vmem:[%s11665_s3 + $0xb18] sm:$0xff] }
 0x231   : > { %v8576_v43 = vpack.c.bf16 %v6505_v40, %v6504_v39  ;;  %v8516_v39 = vpack.c.bf16 %v6435_v37, %v6434_v36  ;;  %v6418_v40 = vld [vmem:[%s11665_s3 + $0x710] sm:$0xff]  ;;  %v6580_v37 = vld [vmem:[%s11665_s3 + $0xba0] sm:$0xff] }
 0x233   : > { %8467 = vmatpush3.bf16.msra.mxu0 %v8466_v45  ;;  %8577 = vmatprep.subr.bf16.mxu1 %v8576_v43  ;;  %v6506_v45 = vld [vmem:[%s11665_s3 + $0x990] sm:$0xff]  ;;  %v6437_v43 = vld [vmem:[%s11665_s3 + $0x7a8] sm:$0xff] }
 0x234   : > { %8469 = vmatprep.subr.bf16.mxu0 %v8468_v46  ;;  %1886 = vmatmul.mubr.f32.vlgmr.msra.gmra.mrb[8].mxu1 %v9494_v35  ;;  %v6507_v46 = vld [vmem:[%s11665_s3 + $0x998] sm:$0xff] }
 0x235   : > { %8579 = vmatpush3.bf16.msra.mxu1 %v8578_v44  ;;  %2074 = vmatprep.mubr.f32.mxu1 %v10149_v50  ;;  %v8518_v44 = vpack.c.bf16 %v6419_v41, %v6418_v40 }
 0x237   : > { %8471 = vmatpush3.bf16.msra.mxu0 %v8470_v52  ;;  %v6508_v52 = vld [vmem:[%s11665_s3 + $0x9a0] sm:$0xff] }
 0x238   : > { %8473 = vmatprep.subr.bf16.mxu0 %v8472_v53  ;;  %v6509_v53 = vld [vmem:[%s11665_s3 + $0x9a8] sm:$0xff] }
 0x239   : > { %v8584_v56 = vpack.c.bf16 %v6509_v53, %v6508_v52  ;;  %v6422_v53 = vld [vmem:[%s11665_s3 + $0x730] sm:$0xff] }
 0x23b   : > { %8475 = vmatpush3.bf16.msra.mxu0 %v8474_v58  ;;  %v6510_v58 = vld [vmem:[%s11665_s3 + $0x9b0] sm:$0xff] }
 0x23c   : > { %8477 = vmatprep.subr.bf16.mxu0 %v8476_v59  ;;  %v6511_v59 = vld [vmem:[%s11665_s3 + $0x9b8] sm:$0xff] }
 0x23f   : > { %8479 = vmatpush3.bf16.msra.mxu0 %v8478_v62  ;;  %v8588_v62 = vpack.c.bf16 %v6511_v59, %v6510_v58  ;;  %v6424_v59 = vld [vmem:[%s11665_s3 + $0x740] sm:$0xff] }
 0x242   : > { %1319 = vmatmul.mubr.f32.vlgmr.msra.gmra.mrb[6].mxu0 %v9494_v35  ;;  %v8580_v35 = vpack.c.bf16 %v6507_v46, %v6506_v45  ;;  %v8520_v45 = vpack.c.bf16 %v6437_v43, %v6436_v42  ;;  %v6420_v46 = vld [vmem:[%s11665_s3 + $0x720] sm:$0xff]  ;;  %v6582_v42 = vld [vmem:[%s11665_s3 + $0xbb0] sm:$0xff]  ;;  %v6583_v43 = vld [vmem:[%s11665_s3 + $0xbb8] sm:$0xff] }
 0x243   : > { %7819 = vmatprep.mubr.msk.f32.mxu0 %vm491_vm0, %v6376_v7  ;;  %v6515_v7 = vld [vmem:[%s11665_s3 + $0x9d8] sm:$0xff] }
 0x244   : > { %8581 = vmatprep.subr.bf16.mxu1 %v8580_v35  ;;  %v8596_v8 = vpack.c.bf16 %v6515_v7, %v6514_v6  ;;  %v6439_v35 = vld [vmem:[%s11665_s3 + $0x7b8] sm:$0xff]  ;;  %v6428_v7 = vld [vmem:[%s11665_s3 + $0x760] sm:$0xff] }
 0x245   : > { %8583 = vmatpush3.bf16.msra.mxu1 %v8582_v51  ;;  %v8522_v51 = vpack.c.bf16 %v6421_v47, %v6420_v46  ;;  %v8524_v52 = vpack.c.bf16 %v6439_v35, %v6438_v49  ;;  %v8652_v46 = vpack.c.bf16 %v6583_v43, %v6582_v42  ;;  %v6584_v49 = vld [vmem:[%s11665_s3 + $0xbc0] sm:$0xff]  ;;  %v6585_v35 = vld [vmem:[%s11665_s3 + $0xbc8] sm:$0xff] }
 0x246   : > { %8585 = vmatprep.subr.bf16.mxu1 %v8584_v56  ;;  %v6441_v56 = vld [vmem:[%s11665_s3 + $0x7c8] sm:$0xff] }
 0x247   : > { %v8528_v58 = vpack.c.bf16 %v6441_v56, %v6440_v55  ;;  %v6586_v55 = vld [vmem:[%s11665_s3 + $0xbd0] sm:$0xff]  ;;  %v6587_v56 = vld [vmem:[%s11665_s3 + $0xbd8] sm:$0xff]  ;;  %v6549_v42 = vld [vmem:[%s11665_s3 + $0xac8] sm:$0xff] }
 0x249   : > { %8587 = vmatpush3.bf16.msra.mxu1 %v8586_v57  ;;  %v8526_v57 = vpack.c.bf16 %v6423_v54, %v6422_v53  ;;  %v8656_v53 = vpack.c.bf16 %v6585_v35, %v6584_v49  ;;  %v6551_v49 = vld [vmem:[%s11665_s3 + $0xad8] sm:$0xff] }
 0x24a   : > { %8589 = vmatprep.subr.bf16.mxu1 %v8588_v62  ;;  %v6443_v62 = vld [vmem:[%s11665_s3 + $0x7d8] sm:$0xff] }
 0x24b   : > { %v8532_v0 = vpack.c.bf16 %v6443_v62, %v6442_v61  ;;  %v6588_v61 = vld [vmem:[%s11665_s3 + $0xbe0] sm:$0xff]  ;;  %v6589_v62 = vld [vmem:[%s11665_s3 + $0xbe8] sm:$0xff] }
 0x24d   : > { %8591 = vmatpush3.bf16.msra.mxu1 %v8590_v63  ;;  %v8530_v63 = vpack.c.bf16 %v6425_v60, %v6424_v59  ;;  %v8660_v59 = vpack.c.bf16 %v6587_v56, %v6586_v55  ;;  %v6553_v55 = vld [vmem:[%s11665_s3 + $0xae8] sm:$0xff] }
 0x24e   : > { %8593 = vmatprep.subr.bf16.mxu1 %v8592_v4  ;;  %v6445_v4 = vld [vmem:[%s11665_s3 + $0x7e8] sm:$0xff] }
 0x24f   : > { %v8536_v6 = vpack.c.bf16 %v6445_v4, %v6444_v3  ;;  %v6590_v3 = vld [vmem:[%s11665_s3 + $0xbf0] sm:$0xff]  ;;  %v6591_v4 = vld [vmem:[%s11665_s3 + $0xbf8] sm:$0xff] }
 0x251   : > { %8595 = vmatpush3.bf16.msra.mxu1 %v8594_v5  ;;  %v8534_v5 = vpack.c.bf16 %v6427_v2, %v6426_v1  ;;  %v8664_v1 = vpack.c.bf16 %v6589_v62, %v6588_v61  ;;  %v6555_v61 = vld [vmem:[%s11665_s3 + $0xaf8] sm:$0xff] }
 0x252   : > { %8597 = vmatprep.subr.bf16.mxu1 %v8596_v8  ;;  %v6429_v8 = vld [vmem:[%s11665_s3 + $0x768] sm:$0xff] }
 0x255   : > { %8599 = vmatpush3.bf16.msra.mxu1 %v8598_v12  ;;  %v8538_v12 = vpack.c.bf16 %v6429_v8, %v6428_v7  ;;  %v6575_v7 = vld [vmem:[%s11665_s3 + $0xb78] sm:$0xff] }
 0x256   : > { %8601 = vmatprep.subr.bf16.mxu1 %v8600_v16  ;;  %v8542_v16 = vpack.c.bf16 %v6431_v15, %v6430_v14  ;;  %v6484_v14 = vld [vmem:[%s11663_s1 + $0x80] sm:$0xff] }
 0x257   : > { %v6540_v15 = vld [vmem:[%s11665_s3 + $0xa80] sm:$0xff] }
 0x259   : > { %8603 = vmatpush3.bf16.msra.mxu1 %v8602_v9  ;;  %v6448_v9 = vld [vmem:[%s11663_s1 + $0x70] sm:$0xff] }
 0x25a   : > { %8605 = vmatprep.subr.bf16.mxu1 %v8604_v21 }
 0x25d   : > { %8607 = vmatpush3.bf16.msra.mxu1 %v8606_v24  ;;  %v6576_v24 = vld [vmem:[%s11665_s3 + $0xb80] sm:$0xff] }
 0x260   : > { %2075 = vmatmul.mubr.f32.vlgmr.msra.gmra.mrb[10].mxu1 %v10225_v25 }
 0x261   : > { %2452 = vmatprep.mubr.f32.mxu1 %v10149_v50 }
 0x307   : > { %v7296_v17 = vpop.f32.mrb[8].mxu1 }
 0x308   : > { %v7297_v19 = vpop.f32.mrb[9].mxu1 }
 0x309   : > { %v10341_v20 = vadd.f32 %v7297_v19, %v7296_v17  ;;  %v6485_v17 = vld [vmem:[%s11663_s1 + $0x88] sm:$0xff]  ;;  %v6520_v19 = vld [vmem:[%s11663_s1 + $0x90] sm:$0xff] }
 0x315   : > { %v7182_v26 = vpop.f32.mrb[6].mxu0 }
 0x316   : > { %v7183_v27 = vpop.f32.mrb[7].mxu0 }
 0x317   : > { %v7184_v30 = vadd.f32 %v7183_v27, %v7182_v26  ;;  %v6577_v26 = vld [vmem:[%s11665_s3 + $0xb88] sm:$0xff]  ;;  %v6560_v27 = vld [vmem:[%s11665_s3 + $0xb00] sm:$0xff] }
 0x318   : > { %v8640_v29 = vpack.c.bf16 %v6577_v26, %v6576_v24  ;;  %v6543_v24 = vld [vmem:[%s11665_s3 + $0xa98] sm:$0xff] }
 0x319   : > { %7817 = vmatprep.subr.mxu0 %v7184_v30 }
 0x31a   : > { %7818 = vmatpush3.msra.mxu0 %v7184_v30  ;;  %v8642_v30 = vpack.c.bf16 %v6561_v28, %v6560_v27  ;;  %8641 = vmatprep.subr.bf16.mxu1 %v8640_v29  ;;  %v6526_v28 = vld [vmem:[%s11665_s3 + $0xa10] sm:$0xff]  ;;  %v6527_v29 = vld [vmem:[%s11665_s3 + $0xa18] sm:$0xff] }
 0x31b   : > { %7820 = vmatmul.mubr.msk.f32.vlgmr.msra.gmra.mrb[2].mxu0 %vm491_vm0, %v6377_v31  ;;  %7822 = vmatprep.subr.mxu0 %v10082_v18  ;;  %v6578_v31 = vld [vmem:[%s11665_s3 + $0xb90] sm:$0xff] }
 0x31c   : > { %7823 = vmatpush3.msra.mxu0 %v10082_v18  ;;  %7824 = vmatprep.mubr.msk.f32.mxu0 %vm491_vm0, %v6412_v32  ;;  %v6413_v18 = vld [vmem:[%s11663_s1 + $0x68] sm:$0xff]  ;;  %v6579_v32 = vld [vmem:[%s11665_s3 + $0xb98] sm:$0xff] }
 0x31d   : > { %8513 = vmatprep.subr.bf16.mxu0 %v8512_v48  ;;  %8643 = vmatpush3.bf16.msra.mxu1 %v8642_v30  ;;  %v6562_v48 = vld [vmem:[%s11665_s3 + $0xb10] sm:$0xff]  ;;  %v8644_v34 = vpack.c.bf16 %v6579_v32, %v6578_v31  ;;  %v6544_v30 = vld [vmem:[%s11665_s3 + $0xaa0] sm:$0xff]  ;;  %v6545_v31 = vld [vmem:[%s11665_s3 + $0xaa8] sm:$0xff]  ;;  %v8614_v32 = vpack.c.bf16 %v6527_v29, %v6526_v28 }
 0x31e   : > { %v8646_v36 = vpack.c.bf16 %v6563_v33, %v6562_v48  ;;  %v8616_v48 = vpack.c.bf16 %v6545_v31, %v6544_v30  ;;  %v6528_v33 = vld [vmem:[%s11665_s3 + $0xa20] sm:$0xff]  ;;  %v6655_v28 = vld [vmem:[%s11665_s3 + $0xdb8] sm:$0xff]  ;;  %v6638_v29 = vld [vmem:[%s11665_s3 + $0xd30] sm:$0xff] }
 0x31f   : > { %8645 = vmatprep.subr.bf16.mxu1 %v8644_v34  ;;  %v6529_v34 = vld [vmem:[%s11665_s3 + $0xa28] sm:$0xff]  ;;  %v6639_v30 = vld [vmem:[%s11665_s3 + $0xd38] sm:$0xff] }
 0x321   : > { %8647 = vmatpush3.bf16.msra.mxu1 %v8646_v36  ;;  %v6546_v36 = vld [vmem:[%s11665_s3 + $0xab0] sm:$0xff] }
 0x323   : > { %7825 = vmatmul.mubr.msk.f32.vlgmr.msra.gmra.mrb[2].mxu0 %vm491_vm0, %v6413_v18  ;;  %v6581_v18 = vld [vmem:[%s11665_s3 + $0xba8] sm:$0xff] }
 0x324   : > { %8515 = vmatpush3.bf16.msra.mxu0 %v8514_v38  ;;  %1696 = vmatprep.mubr.f32.mxu0 %v10149_v50  ;;  %v6564_v38 = vld [vmem:[%s11665_s3 + $0xb20] sm:$0xff]  ;;  %v8648_v40 = vpack.c.bf16 %v6581_v18, %v6580_v37  ;;  %v6547_v37 = vld [vmem:[%s11665_s3 + $0xab8] sm:$0xff]  ;;  %v8618_v18 = vpack.c.bf16 %v6529_v34, %v6528_v33  ;;  %v6657_v33 = vld [vmem:[%s11665_s3 + $0xdc8] sm:$0xff] }
 0x325   : > { %8517 = vmatprep.subr.bf16.mxu0 %v8516_v39  ;;  %v6565_v39 = vld [vmem:[%s11665_s3 + $0xb28] sm:$0xff]  ;;  %v6640_v34 = vld [vmem:[%s11665_s3 + $0xd40] sm:$0xff] }
 0x326   : > { %v8650_v41 = vpack.c.bf16 %v6565_v39, %v6564_v38  ;;  %8649 = vmatprep.subr.bf16.mxu1 %v8648_v40  ;;  %v8620_v38 = vpack.c.bf16 %v6547_v37, %v6546_v36  ;;  %v6530_v39 = vld [vmem:[%s11665_s3 + $0xa30] sm:$0xff]  ;;  %v6531_v40 = vld [vmem:[%s11665_s3 + $0xa38] sm:$0xff]  ;;  %v6641_v36 = vld [vmem:[%s11665_s3 + $0xd48] sm:$0xff] }
 0x327   : > { %v8622_v43 = vpack.c.bf16 %v6531_v40, %v6530_v39  ;;  %v6659_v39 = vld [vmem:[%s11665_s3 + $0xdd8] sm:$0xff]  ;;  %v6642_v40 = vld [vmem:[%s11665_s3 + $0xd50] sm:$0xff] }
 0x328   : > { %8519 = vmatpush3.bf16.msra.mxu0 %v8518_v44  ;;  %8651 = vmatpush3.bf16.msra.mxu1 %v8650_v41  ;;  %v6566_v44 = vld [vmem:[%s11665_s3 + $0xb30] sm:$0xff]  ;;  %v6548_v41 = vld [vmem:[%s11665_s3 + $0xac0] sm:$0xff] }
 0x329   : > { %8521 = vmatprep.subr.bf16.mxu0 %v8520_v45  ;;  %v6567_v45 = vld [vmem:[%s11665_s3 + $0xb38] sm:$0xff]  ;;  %8653 = vmatprep.subr.bf16.mxu1 %v8652_v46  ;;  %v6533_v46 = vld [vmem:[%s11665_s3 + $0xa48] sm:$0xff] }
 0x32a   : > { %v8654_v47 = vpack.c.bf16 %v6567_v45, %v6566_v44  ;;  %v8624_v44 = vpack.c.bf16 %v6549_v42, %v6548_v41  ;;  %v6532_v45 = vld [vmem:[%s11665_s3 + $0xa40] sm:$0xff]  ;;  %v6643_v41 = vld [vmem:[%s11665_s3 + $0xd58] sm:$0xff] }
 0x32b   : > { %v8626_v35 = vpack.c.bf16 %v6533_v46, %v6532_v45  ;;  %v6661_v45 = vld [vmem:[%s11665_s3 + $0xde8] sm:$0xff]  ;;  %v6644_v46 = vld [vmem:[%s11665_s3 + $0xd60] sm:$0xff] }
 0x32c   : > { %8523 = vmatpush3.bf16.msra.mxu0 %v8522_v51  ;;  %8655 = vmatpush3.bf16.msra.mxu1 %v8654_v47  ;;  %v6568_v51 = vld [vmem:[%s11665_s3 + $0xb40] sm:$0xff]  ;;  %v6550_v47 = vld [vmem:[%s11665_s3 + $0xad0] sm:$0xff] }
 0x32d   : > { %8525 = vmatprep.subr.bf16.mxu0 %v8524_v52  ;;  %v6569_v52 = vld [vmem:[%s11665_s3 + $0xb48] sm:$0xff]  ;;  %8657 = vmatprep.subr.bf16.mxu1 %v8656_v53  ;;  %v6535_v53 = vld [vmem:[%s11665_s3 + $0xa58] sm:$0xff] }
 0x32e   : > { %v8658_v54 = vpack.c.bf16 %v6569_v52, %v6568_v51  ;;  %v8628_v51 = vpack.c.bf16 %v6551_v49, %v6550_v47  ;;  %v6534_v52 = vld [vmem:[%s11665_s3 + $0xa50] sm:$0xff]  ;;  %v6645_v47 = vld [vmem:[%s11665_s3 + $0xd68] sm:$0xff] }
 0x32f   : > { %v8630_v56 = vpack.c.bf16 %v6535_v53, %v6534_v52  ;;  %v6663_v52 = vld [vmem:[%s11665_s3 + $0xdf8] sm:$0xff] }
 0x330   : > { %8527 = vmatpush3.bf16.msra.mxu0 %v8526_v57  ;;  %8659 = vmatpush3.bf16.msra.mxu1 %v8658_v54  ;;  %v6570_v57 = vld [vmem:[%s11665_s3 + $0xb50] sm:$0xff]  ;;  %v6552_v54 = vld [vmem:[%s11665_s3 + $0xae0] sm:$0xff] }
 0x331   : > { %8529 = vmatprep.subr.bf16.mxu0 %v8528_v58  ;;  %v6571_v58 = vld [vmem:[%s11665_s3 + $0xb58] sm:$0xff]  ;;  %8661 = vmatprep.subr.bf16.mxu1 %v8660_v59  ;;  %v6537_v59 = vld [vmem:[%s11665_s3 + $0xa68] sm:$0xff] }
 0x332   : > { %v8662_v60 = vpack.c.bf16 %v6571_v58, %v6570_v57  ;;  %v8632_v57 = vpack.c.bf16 %v6553_v55, %v6552_v54  ;;  %v6536_v58 = vld [vmem:[%s11665_s3 + $0xa60] sm:$0xff]  ;;  %v6646_v54 = vld [vmem:[%s11665_s3 + $0xd70] sm:$0xff]  ;;  %v6647_v55 = vld [vmem:[%s11665_s3 + $0xd78] sm:$0xff] }
 0x333   : > { %v7334_v21 = vpop.f32.mrb[10].mxu1  ;;  %v8634_v62 = vpack.c.bf16 %v6537_v59, %v6536_v58  ;;  %v6612_v59 = vld [vmem:[%s11665_s3 + $0xc80] sm:$0xff] }
 0x334   : > { %8531 = vmatpush3.bf16.msra.mxu0 %v8530_v63  ;;  %v7335_v22 = vpop.f32.mrb[11].mxu1  ;;  %8663 = vmatpush3.bf16.msra.mxu1 %v8662_v60  ;;  %v6572_v63 = vld [vmem:[%s11665_s3 + $0xb60] sm:$0xff]  ;;  %v6554_v60 = vld [vmem:[%s11665_s3 + $0xaf0] sm:$0xff] }
 0x335   : > { %8533 = vmatprep.subr.bf16.mxu0 %v8532_v0  ;;  %v10347_v23 = vadd.f32 %v7335_v22, %v7334_v21  ;;  %v6573_v0 = vld [vmem:[%s11665_s3 + $0xb68] sm:$0xff]  ;;  %8665 = vmatprep.subr.bf16.mxu1 %v8664_v1  ;;  %v6542_v22 = vld [vmem:[%s11665_s3 + $0xa90] sm:$0xff]  ;;  %v6539_v1 = vld [vmem:[%s11665_s3 + $0xa78] sm:$0xff] }
 0x336   : > { %v8666_v2 = vpack.c.bf16 %v6573_v0, %v6572_v63  ;;  %v6525_v21 = vld [vmem:[%s11665_s3 + $0xa08] sm:$0xff]  ;;  %v8612_v27 = vpack.c.bf16 %v6543_v24, %v6542_v22  ;;  %v8636_v63 = vpack.c.bf16 %v6555_v61, %v6554_v60  ;;  %v6538_v0 = vld [vmem:[%s11665_s3 + $0xa70] sm:$0xff]  ;;  %v6636_v22 = vld [vmem:[%s11665_s3 + $0xd20] sm:$0xff] }
 0x337   : > { %v6637_v24 = vld [vmem:[%s11665_s3 + $0xd28] sm:$0xff] }
 0x338   : > { %8535 = vmatpush3.bf16.msra.mxu0 %v8534_v5  ;;  %8667 = vmatpush3.bf16.msra.mxu1 %v8666_v2  ;;  %v8668_v5 = vpack.c.bf16 %v6591_v4, %v6590_v3  ;;  %v8638_v2 = vpack.c.bf16 %v6539_v1, %v6538_v0  ;;  %v6556_v3 = vld [vmem:[%s11663_s1 + $0xa0] sm:$0xff]  ;;  %v6613_v60 = vld [vmem:[%s11665_s3 + $0xc88] sm:$0xff] }
 0x339   : > { %8537 = vmatprep.subr.bf16.mxu0 %v8536_v6  ;;  %v6574_v6 = vld [vmem:[%s11665_s3 + $0xb70] sm:$0xff]  ;;  %v8672_v0 = vpack.c.bf16 %v6613_v60, %v6612_v59  ;;  %v6596_v1 = vld [vmem:[%s11665_s3 + $0xc00] sm:$0xff]  ;;  %v6723_v59 = vld [vmem:[%s11665_s3 + $0xf98] sm:$0xff] }
 0x33a   : > { %v8670_v8 = vpack.c.bf16 %v6575_v7, %v6574_v6  ;;  %8669 = vmatprep.subr.bf16.mxu1 %v8668_v5  ;;  %v6648_v7 = vld [vmem:[%s11665_s3 + $0xd80] sm:$0xff] }
 0x33c   : > { %8539 = vmatpush3.bf16.msra.mxu0 %v8538_v12  ;;  %8671 = vmatpush3.bf16.msra.mxu1 %v8670_v8  ;;  %v6649_v8 = vld [vmem:[%s11665_s3 + $0xd88] sm:$0xff] }
 0x33d   : > { %8541 = vmatprep.subr.bf16.mxu0 %v8540_v13  ;;  %v6449_v13 = vld [vmem:[%s11663_s1 + $0x78] sm:$0xff] }
 0x33f   : > { %2453 = vmatmul.mubr.f32.vlgmr.msra.gmra.mrb[12].mxu1 %v10225_v25 }
 0x340   : > { %8543 = vmatpush3.bf16.msra.mxu0 %v8542_v16  ;;  %2830 = vmatprep.mubr.f32.mxu1 %v10149_v50  ;;  %v6541_v16 = vld [vmem:[%s11665_s3 + $0xa88] sm:$0xff] }
 0x343   : > { %1697 = vmatmul.mubr.f32.vlgmr.msra.gmra.mrb[8].mxu0 %v10225_v25 }
 0x344   : > { %7829 = vmatprep.mubr.msk.f32.mxu0 %vm491_vm0, %v6448_v9  ;;  %v6524_v9 = vld [vmem:[%s11665_s3 + $0xa00] sm:$0xff] }
 0x345   : > { %v8610_v26 = vpack.c.bf16 %v6525_v21, %v6524_v9  ;;  %v6652_v9 = vld [vmem:[%s11665_s3 + $0xda0] sm:$0xff]  ;;  %v6653_v21 = vld [vmem:[%s11665_s3 + $0xda8] sm:$0xff] }
 0x412   : > { %v7410_v4 = vpop.f32.mrb[12].mxu1 }
 0x413   : > { %v7411_v5 = vpop.f32.mrb[13].mxu1 }
 0x414   : > { %v10573_v6 = vadd.f32 %v7411_v5, %v7410_v4  ;;  %v6615_v4 = vld [vmem:[%s11665_s3 + $0xc98] sm:$0xff] }
 0x415   : > { %v6593_v5 = vld [vmem:[%s11663_s1 + $0xb8] sm:$0xff] }
 0x416   : > { %v7258_v10 = vpop.f32.mrb[8].mxu0 }
 0x417   : > { %v7259_v11 = vpop.f32.mrb[9].mxu0 }
 0x418   : > { %v7260_v12 = vadd.f32 %v7259_v11, %v7258_v10  ;;  %v6632_v10 = vld [vmem:[%s11665_s3 + $0xd00] sm:$0xff]  ;;  %v6633_v11 = vld [vmem:[%s11665_s3 + $0xd08] sm:$0xff] }
 0x41a   : > { %7827 = vmatprep.subr.mxu0 %v7260_v12 }
 0x41b   : > { %7828 = vmatpush3.msra.mxu0 %v7260_v12  ;;  %v8704_v12 = vpack.c.bf16 %v6649_v8, %v6648_v7  ;;  %v6598_v8 = vld [vmem:[%s11665_s3 + $0xc10] sm:$0xff] }
 0x41c   : > { %7830 = vmatmul.mubr.msk.f32.vlgmr.msra.gmra.mrb[2].mxu0 %vm491_vm0, %v6449_v13  ;;  %7832 = vmatprep.subr.mxu0 %v10341_v20  ;;  %v8706_v13 = vpack.c.bf16 %v6633_v11, %v6632_v10  ;;  %v6599_v10 = vld [vmem:[%s11665_s3 + $0xc18] sm:$0xff]  ;;  %v6616_v11 = vld [vmem:[%s11665_s3 + $0xca0] sm:$0xff] }
 0x41d   : > { %7833 = vmatpush3.msra.mxu0 %v10341_v20  ;;  %7834 = vmatprep.mubr.msk.f32.mxu0 %vm491_vm0, %v6484_v14  ;;  %v8608_v20 = vpack.c.bf16 %v6541_v16, %v6540_v15  ;;  %v6650_v14 = vld [vmem:[%s11665_s3 + $0xd90] sm:$0xff]  ;;  %v6651_v15 = vld [vmem:[%s11665_s3 + $0xd98] sm:$0xff] }
 0x41e   : > { %7837 = vmatprep.subr.mxu0 %v10347_v23  ;;  %8705 = vmatprep.subr.bf16.mxu1 %v8704_v12  ;;  %v6634_v16 = vld [vmem:[%s11665_s3 + $0xd10] sm:$0xff]  ;;  %v6617_v12 = vld [vmem:[%s11665_s3 + $0xca8] sm:$0xff] }
 0x41f   : > { %8707 = vmatpush3.bf16.msra.mxu1 %v8706_v13  ;;  %v8678_v13 = vpack.c.bf16 %v6599_v10, %v6598_v8  ;;  %v6710_v10 = vld [vmem:[%s11665_s3 + $0xf30] sm:$0xff] }
 0x424   : > { %7835 = vmatmul.mubr.msk.f32.vlgmr.msra.gmra.mrb[2].mxu0 %vm491_vm0, %v6485_v17  ;;  %v6635_v17 = vld [vmem:[%s11665_s3 + $0xd18] sm:$0xff] }
 0x425   : > { %7838 = vmatpush3.msra.mxu0 %v10347_v23  ;;  %7839 = vmatprep.mubr.msk.f32.mxu0 %vm491_vm0, %v6520_v19  ;;  %v6521_v23 = vld [vmem:[%s11663_s1 + $0x98] sm:$0xff]  ;;  %v8708_v19 = vpack.c.bf16 %v6651_v15, %v6650_v14  ;;  %v8680_v14 = vpack.c.bf16 %v6617_v12, %v6616_v11  ;;  %v6600_v15 = vld [vmem:[%s11665_s3 + $0xc20] sm:$0xff] }
 0x426   : > { %8609 = vmatprep.subr.bf16.mxu0 %v8608_v20  ;;  %v8710_v20 = vpack.c.bf16 %v6635_v17, %v6634_v16  ;;  %v6601_v16 = vld [vmem:[%s11665_s3 + $0xc28] sm:$0xff]  ;;  %v6618_v17 = vld [vmem:[%s11665_s3 + $0xcb0] sm:$0xff]  ;;  %v6711_v11 = vld [vmem:[%s11665_s3 + $0xf38] sm:$0xff] }
 0x427   : > { %8709 = vmatprep.subr.bf16.mxu1 %v8708_v19  ;;  %v6619_v19 = vld [vmem:[%s11665_s3 + $0xcb8] sm:$0xff]  ;;  %v8782_v12 = vpack.c.bf16 %v6711_v11, %v6710_v10 }
 0x428   : > { %8711 = vmatpush3.bf16.msra.mxu1 %v8710_v20  ;;  %v8684_v20 = vpack.c.bf16 %v6619_v19, %v6618_v17  ;;  %v6713_v17 = vld [vmem:[%s11665_s3 + $0xf48] sm:$0xff]  ;;  %v6695_v10 = vld [vmem:[%s11665_s3 + $0xed8] sm:$0xff] }
 0x42c   : > { %7840 = vmatmul.mubr.msk.f32.vlgmr.msra.gmra.mrb[2].mxu0 %vm491_vm0, %v6521_v23  ;;  %v8712_v23 = vpack.c.bf16 %v6653_v21, %v6652_v9  ;;  %v6602_v9 = vld [vmem:[%s11665_s3 + $0xc30] sm:$0xff]  ;;  %v6603_v21 = vld [vmem:[%s11665_s3 + $0xc38] sm:$0xff] }
 0x42d   : > { %8611 = vmatpush3.bf16.msra.mxu0 %v8610_v26  ;;  %2263 = vmatprep.mubr.f32.mxu0 %v10149_v50  ;;  %v8714_v26 = vpack.c.bf16 %v6637_v24, %v6636_v22  ;;  %v6620_v22 = vld [vmem:[%s11665_s3 + $0xcc0] sm:$0xff]  ;;  %v6621_v24 = vld [vmem:[%s11665_s3 + $0xcc8] sm:$0xff] }
 0x42e   : > { %8613 = vmatprep.subr.bf16.mxu0 %v8612_v27  ;;  %8713 = vmatprep.subr.bf16.mxu1 %v8712_v23  ;;  %v6654_v27 = vld [vmem:[%s11665_s3 + $0xdb0] sm:$0xff]  ;;  %v8686_v23 = vpack.c.bf16 %v6603_v21, %v6602_v9 }
 0x42f   : > { %8715 = vmatpush3.bf16.msra.mxu1 %v8714_v26  ;;  %v8716_v31 = vpack.c.bf16 %v6655_v28, %v6654_v27  ;;  %v8688_v26 = vpack.c.bf16 %v6621_v24, %v6620_v22  ;;  %v6604_v27 = vld [vmem:[%s11665_s3 + $0xc40] sm:$0xff]  ;;  %v6605_v28 = vld [vmem:[%s11665_s3 + $0xc48] sm:$0xff]  ;;  %v6714_v21 = vld [vmem:[%s11665_s3 + $0xf50] sm:$0xff] }
 0x430   : > { %v6715_v22 = vld [vmem:[%s11665_s3 + $0xf58] sm:$0xff] }
 0x431   : > { %8615 = vmatpush3.bf16.msra.mxu0 %v8614_v32  ;;  %v8718_v32 = vpack.c.bf16 %v6639_v30, %v6638_v29  ;;  %8717 = vmatprep.subr.bf16.mxu1 %v8716_v31  ;;  %v6622_v29 = vld [vmem:[%s11665_s3 + $0xcd0] sm:$0xff]  ;;  %v6623_v30 = vld [vmem:[%s11665_s3 + $0xcd8] sm:$0xff]  ;;  %v8690_v31 = vpack.c.bf16 %v6605_v28, %v6604_v27  ;;  %v8790_v24 = vpack.c.bf16 %v6715_v22, %v6714_v21  ;;  %v6716_v28 = vld [vmem:[%s11665_s3 + $0xf60] sm:$0xff] }
 0x432   : > { %8617 = vmatprep.subr.bf16.mxu0 %v8616_v48  ;;  %v6656_v48 = vld [vmem:[%s11665_s3 + $0xdc0] sm:$0xff]  ;;  %v6699_v21 = vld [vmem:[%s11665_s3 + $0xef8] sm:$0xff] }
 0x433   : > { %8719 = vmatpush3.bf16.msra.mxu1 %v8718_v32  ;;  %v8720_v37 = vpack.c.bf16 %v6657_v33, %v6656_v48  ;;  %v8692_v32 = vpack.c.bf16 %v6623_v30, %v6622_v29  ;;  %v6606_v48 = vld [vmem:[%s11665_s3 + $0xc50] sm:$0xff]  ;;  %v6607_v33 = vld [vmem:[%s11665_s3 + $0xc58] sm:$0xff]  ;;  %v6717_v29 = vld [vmem:[%s11665_s3 + $0xf68] sm:$0xff] }
 0x434   : > { %v8794_v30 = vpack.c.bf16 %v6717_v29, %v6716_v28  ;;  %v9210_v28 = vld [vmem:[%s9360_s18] sm:$0xff] }
 0x435   : > { %8619 = vmatpush3.bf16.msra.mxu0 %v8618_v18  ;;  %v8722_v18 = vpack.c.bf16 %v6641_v36, %v6640_v34  ;;  %8721 = vmatprep.subr.bf16.mxu1 %v8720_v37  ;;  %v6624_v34 = vld [vmem:[%s11665_s3 + $0xce0] sm:$0xff]  ;;  %v6625_v36 = vld [vmem:[%s11665_s3 + $0xce8] sm:$0xff]  ;;  %v8694_v37 = vpack.c.bf16 %v6607_v33, %v6606_v48  ;;  %v6718_v33 = vld [vmem:[%s11665_s3 + $0xf70] sm:$0xff] }
 0x436   : > { %8621 = vmatprep.subr.bf16.mxu0 %v8620_v38  ;;  %v6658_v38 = vld [vmem:[%s11665_s3 + $0xdd0] sm:$0xff]  ;;  %v6700_v29 = vld [vmem:[%s11663_s1 + $0xe0] sm:$0xff] }
 0x437   : > { %8723 = vmatpush3.bf16.msra.mxu1 %v8722_v18  ;;  %v8724_v42 = vpack.c.bf16 %v6659_v39, %v6658_v38  ;;  %v8696_v18 = vpack.c.bf16 %v6625_v36, %v6624_v34  ;;  %v6608_v38 = vld [vmem:[%s11665_s3 + $0xc60] sm:$0xff]  ;;  %v6609_v39 = vld [vmem:[%s11665_s3 + $0xc68] sm:$0xff]  ;;  %v6719_v34 = vld [vmem:[%s11665_s3 + $0xf78] sm:$0xff] }
 0x438   : > { %v8798_v36 = vpack.c.bf16 %v6719_v34, %v6718_v33  ;;  %v9219_v33 = vmov 0   ;;  %v3301_v34 = vld [vmem:[%s11664_s2 + $0x8] sm:$0xff] }
 0x439   : > { %8623 = vmatpush3.bf16.msra.mxu0 %v8622_v43  ;;  %v8726_v43 = vpack.c.bf16 %v6643_v41, %v6642_v40  ;;  %8725 = vmatprep.subr.bf16.mxu1 %v8724_v42  ;;  %v6626_v40 = vld [vmem:[%s11665_s3 + $0xcf0] sm:$0xff]  ;;  %v6627_v41 = vld [vmem:[%s11665_s3 + $0xcf8] sm:$0xff]  ;;  %v8698_v42 = vpack.c.bf16 %v6609_v39, %v6608_v38  ;;  %v6684_v38 = vld [vmem:[%s11665_s3 + $0xe80] sm:$0xff] }
 0x43a   : > { %8625 = vmatprep.subr.bf16.mxu0 %v8624_v44  ;;  %v6660_v44 = vld [vmem:[%s11665_s3 + $0xde0] sm:$0xff]  ;;  %v6685_v39 = vld [vmem:[%s11665_s3 + $0xe88] sm:$0xff]  ;;  %9189 = vset.pattern.permute.xlu0 %v9219_v33 }
 0x43b   : > { %8727 = vmatpush3.bf16.msra.mxu1 %v8726_v43  ;;  %v8728_v49 = vpack.c.bf16 %v6661_v45, %v6660_v44  ;;  %v8700_v43 = vpack.c.bf16 %v6627_v41, %v6626_v40  ;;  %v6610_v44 = vld [vmem:[%s11665_s3 + $0xc70] sm:$0xff]  ;;  %v6611_v45 = vld [vmem:[%s11665_s3 + $0xc78] sm:$0xff]  ;;  %v6629_v41 = vld [vmem:[%s11663_s1 + $0xc8] sm:$0xff]  ;;  %9190 = vset.pattern.permute.xlu1 %v9219_v33 }
 0x43d   : > { %8627 = vmatpush3.bf16.msra.mxu0 %v8626_v35  ;;  %v8730_v35 = vpack.c.bf16 %v6645_v47, %v6644_v46  ;;  %8729 = vmatprep.subr.bf16.mxu1 %v8728_v49  ;;  %v8702_v46 = vpack.c.bf16 %v6611_v45, %v6610_v44  ;;  %v6628_v47 = vld [vmem:[%s11663_s1 + $0xc0] sm:$0xff]  ;;  %v6669_v44 = vld [vmem:[%s11665_s3 + $0xe08] sm:$0xff]  ;;  %v6686_v45 = vld [vmem:[%s11665_s3 + $0xe90] sm:$0xff] }
 0x43e   : > { %8629 = vmatprep.subr.bf16.mxu0 %v8628_v51  ;;  %v6662_v51 = vld [vmem:[%s11665_s3 + $0xdf0] sm:$0xff] }
 0x43f   : > { %8731 = vmatpush3.bf16.msra.mxu1 %v8730_v35  ;;  %v8732_v53 = vpack.c.bf16 %v6663_v52, %v6662_v51  ;;  %v6720_v52 = vld [vmem:[%s11665_s3 + $0xf80] sm:$0xff] }
 0x441   : > { %8631 = vmatpush3.bf16.msra.mxu0 %v8630_v56  ;;  %v8734_v56 = vpack.c.bf16 %v6647_v55, %v6646_v54  ;;  %8733 = vmatprep.subr.bf16.mxu1 %v8732_v53  ;;  %v6721_v53 = vld [vmem:[%s11665_s3 + $0xf88] sm:$0xff]  ;;  %v6704_v55 = vld [vmem:[%s11665_s3 + $0xf00] sm:$0xff] }
 0x442   : > { %8633 = vmatprep.subr.bf16.mxu0 %v8632_v57  ;;  %v8768_v54 = vpack.c.bf16 %v6721_v53, %v6720_v52  ;;  %v6671_v52 = vld [vmem:[%s11665_s3 + $0xe18] sm:$0xff]  ;;  %v6688_v53 = vld [vmem:[%s11665_s3 + $0xea0] sm:$0xff] }
 0x443   : > { %8735 = vmatpush3.bf16.msra.mxu1 %v8734_v56  ;;  %v6705_v56 = vld [vmem:[%s11665_s3 + $0xf08] sm:$0xff] }
 0x444   : > { %8769 = vmatprep.subr.bf16.mxu1 %v8768_v54  ;;  %v6689_v54 = vld [vmem:[%s11665_s3 + $0xea8] sm:$0xff] }
 0x445   : > { %8635 = vmatpush3.bf16.msra.mxu0 %v8634_v62  ;;  %v6557_v62 = vld [vmem:[%s11663_s1 + $0xa8] sm:$0xff] }
 0x446   : > { %8637 = vmatprep.subr.bf16.mxu0 %v8636_v63  ;;  %2831 = vmatmul.mubr.f32.vlgmr.msra.gmra.mrb[14].mxu1 %v10225_v25  ;;  %v6592_v63 = vld [vmem:[%s11663_s1 + $0xb0] sm:$0xff] }
 0x447   : > { %3208 = vmatprep.mubr.f32.mxu1 %v10149_v50 }
 0x449   : > { %8639 = vmatpush3.bf16.msra.mxu0 %v8638_v2  ;;  %v6597_v2 = vld [vmem:[%s11665_s3 + $0xc08] sm:$0xff] }
 0x44c   : > { %2264 = vmatmul.mubr.f32.vlgmr.msra.gmra.mrb[10].mxu0 %v10225_v25 }
 0x44d   : > { %7844 = vmatprep.mubr.msk.f32.mxu0 %vm491_vm0, %v6556_v3  ;;  %v6614_v3 = vld [vmem:[%s11665_s3 + $0xc90] sm:$0xff] }
 0x44e   : > { %v8676_v7 = vpack.c.bf16 %v6615_v4, %v6614_v3  ;;  %v6708_v3 = vld [vmem:[%s11665_s3 + $0xf20] sm:$0xff]  ;;  %v6709_v4 = vld [vmem:[%s11665_s3 + $0xf28] sm:$0xff] }
 0x519   : > { %v7486_v49 = vpop.f32.mrb[14].mxu1 }
 0x51a   : > { %v7487_v35 = vpop.f32.mrb[15].mxu1 }
 0x51b   : > { %v10789_v51 = vadd.f32 %v7487_v35, %v7486_v49 }
 0x51f   : > { %v7372_v57 = vpop.f32.mrb[10].mxu0 }
 0x520   : > { %v7373_v58 = vpop.f32.mrb[11].mxu0 }
 0x521   : > { %v7374_v61 = vadd.f32 %v7373_v58, %v7372_v57  ;;  %v8770_v57 = vpack.c.bf16 %v6705_v56, %v6704_v55  ;;  %v6722_v58 = vld [vmem:[%s11665_s3 + $0xf90] sm:$0xff]  ;;  %v9209_v56 = vld [vmem:[%s9360_s18 + $0x8] sm:$0xff] }
 0x522   : > { %v8772_v60 = vpack.c.bf16 %v6723_v59, %v6722_v58  ;;  %v6672_v58 = vld [vmem:[%s11665_s3 + $0xe20] sm:$0xff]  ;;  %v6673_v59 = vld [vmem:[%s11665_s3 + $0xe28] sm:$0xff] }
 0x523   : > { %7842 = vmatprep.subr.mxu0 %v7374_v61  ;;  %8771 = vmatpush3.bf16.msra.mxu1 %v8770_v57  ;;  %v8744_v57 = vpack.c.bf16 %v6689_v54, %v6688_v53  ;;  %v6742_v53 = vld [vmem:[%s11668_s6 + $0x40] sm:$0xff]  ;;  %v6743_v54 = vld [vmem:[%s11668_s6 + $0x48] sm:$0xff] }
 0x524   : > { %7843 = vmatpush3.msra.mxu0 %v7374_v61  ;;  %v6706_v61 = vld [vmem:[%s11665_s3 + $0xf10] sm:$0xff]  ;;  %8773 = vmatprep.subr.bf16.mxu1 %v8772_v60 }
 0x525   : > { %7845 = vmatmul.mubr.msk.f32.vlgmr.msra.gmra.mrb[2].mxu0 %vm491_vm0, %v6557_v62  ;;  %7847 = vmatprep.subr.mxu0 %v10573_v6  ;;  %v6707_v62 = vld [vmem:[%s11665_s3 + $0xf18] sm:$0xff]  ;;  %v6690_v60 = vld [vmem:[%s11665_s3 + $0xeb0] sm:$0xff] }
 0x526   : > { %7848 = vmatpush3.msra.mxu0 %v10573_v6  ;;  %7849 = vmatprep.mubr.msk.f32.mxu0 %vm491_vm0, %v6592_v63  ;;  %v8674_v6 = vpack.c.bf16 %v6597_v2, %v6596_v1  ;;  %v8774_v63 = vpack.c.bf16 %v6707_v62, %v6706_v61  ;;  %v6725_v1 = vld [vmem:[%s11665_s3 + $0xfa8] sm:$0xff]  ;;  %v6691_v61 = vld [vmem:[%s11665_s3 + $0xeb8] sm:$0xff]  ;;  %v8746_v62 = vpack.c.bf16 %v6673_v59, %v6672_v58  ;;  %v6744_v59 = vld [vmem:[%s11668_s6 + $0x50] sm:$0xff] }
 0x527   : > { %8673 = vmatprep.subr.bf16.mxu0 %v8672_v0  ;;  %v6724_v0 = vld [vmem:[%s11665_s3 + $0xfa0] sm:$0xff] }
 0x528   : > { %8775 = vmatpush3.bf16.msra.mxu1 %v8774_v63  ;;  %v8776_v2 = vpack.c.bf16 %v6725_v1, %v6724_v0  ;;  %v8748_v63 = vpack.c.bf16 %v6691_v61, %v6690_v60  ;;  %v6674_v0 = vld [vmem:[%s11665_s3 + $0xe30] sm:$0xff]  ;;  %v6675_v1 = vld [vmem:[%s11665_s3 + $0xe38] sm:$0xff] }
 0x529   : > { %v6745_v60 = vld [vmem:[%s11668_s6 + $0x58] sm:$0xff] }
 0x52a   : > { %8777 = vmatprep.subr.bf16.mxu1 %v8776_v2  ;;  %v6692_v2 = vld [vmem:[%s11665_s3 + $0xec0] sm:$0xff]  ;;  %v8820_v61 = vpack.c.bf16 %v6745_v60, %v6744_v59  ;;  %v6792_v60 = vld [vmem:[%s11668_s6 + $0x130] sm:$0xff] }
 0x52d   : > { %7850 = vmatmul.mubr.msk.f32.vlgmr.msra.gmra.mrb[2].mxu0 %vm491_vm0, %v6593_v5  ;;  %v8778_v5 = vpack.c.bf16 %v6709_v4, %v6708_v3  ;;  %v6693_v3 = vld [vmem:[%s11665_s3 + $0xec8] sm:$0xff]  ;;  %v8750_v4 = vpack.c.bf16 %v6675_v1, %v6674_v0  ;;  %v6746_v1 = vld [vmem:[%s11668_s6 + $0x60] sm:$0xff] }
 0x52e   : > { %8675 = vmatpush3.bf16.msra.mxu0 %v8674_v6  ;;  %2641 = vmatprep.mubr.f32.mxu0 %v10149_v50  ;;  %v8682_v50 = vpack.c.bf16 %v6601_v16, %v6600_v15  ;;  %v6726_v6 = vld [vmem:[%s11665_s3 + $0xfb0] sm:$0xff]  ;;  %v6712_v16 = vld [vmem:[%s11665_s3 + $0xf40] sm:$0xff] }
 0x52f   : > { %8677 = vmatprep.subr.bf16.mxu0 %v8676_v7  ;;  %8779 = vmatpush3.bf16.msra.mxu1 %v8778_v5  ;;  %v6727_v7 = vld [vmem:[%s11665_s3 + $0xfb8] sm:$0xff]  ;;  %v8786_v19 = vpack.c.bf16 %v6713_v17, %v6712_v16  ;;  %v8752_v5 = vpack.c.bf16 %v6693_v3, %v6692_v2  ;;  %v6697_v16 = vld [vmem:[%s11665_s3 + $0xee8] sm:$0xff] }
 0x530   : > { %v8780_v8 = vpack.c.bf16 %v6727_v7, %v6726_v6  ;;  %v6676_v6 = vld [vmem:[%s11665_s3 + $0xe40] sm:$0xff]  ;;  %v6677_v7 = vld [vmem:[%s11665_s3 + $0xe48] sm:$0xff] }
 0x531   : > { %v8754_v11 = vpack.c.bf16 %v6677_v7, %v6676_v6  ;;  %v6747_v2 = vld [vmem:[%s11668_s6 + $0x68] sm:$0xff]  ;;  %v6748_v7 = vld [vmem:[%s11668_s6 + $0x70] sm:$0xff] }
 0x532   : > { %8679 = vmatpush3.bf16.msra.mxu0 %v8678_v13  ;;  %8781 = vmatprep.subr.bf16.mxu1 %v8780_v8  ;;  %v6728_v13 = vld [vmem:[%s11665_s3 + $0xfc0] sm:$0xff]  ;;  %v6694_v8 = vld [vmem:[%s11665_s3 + $0xed0] sm:$0xff]  ;;  %v8824_v3 = vpack.c.bf16 %v6747_v2, %v6746_v1 }
 0x533   : > { %8681 = vmatprep.subr.bf16.mxu0 %v8680_v14  ;;  %8783 = vmatpush3.bf16.msra.mxu1 %v8782_v12  ;;  %v6729_v14 = vld [vmem:[%s11665_s3 + $0xfc8] sm:$0xff]  ;;  %v8756_v12 = vpack.c.bf16 %v6695_v10, %v6694_v8  ;;  %v6749_v8 = vld [vmem:[%s11668_s6 + $0x78] sm:$0xff]  ;;  %v6802_v2 = vld [vmem:[%s11668_s6 + $0x150] sm:$0xff] }
 0x534   : > { %v8784_v15 = vpack.c.bf16 %v6729_v14, %v6728_v13  ;;  %v6678_v13 = vld [vmem:[%s11665_s3 + $0xe50] sm:$0xff]  ;;  %v6679_v14 = vld [vmem:[%s11665_s3 + $0xe58] sm:$0xff]  ;;  %v8828_v10 = vpack.c.bf16 %v6749_v8, %v6748_v7 }
 0x535   : > { %v8758_v17 = vpack.c.bf16 %v6679_v14, %v6678_v13  ;;  %v6758_v14 = vld [vmem:[%s11668_s6 + $0x80] sm:$0xff]  ;;  %v6806_v8 = vld [vmem:[%s11668_s6 + $0x170] sm:$0xff] }
 0x536   : > { %8683 = vmatpush3.bf16.msra.mxu0 %v8682_v50  ;;  %8785 = vmatprep.subr.bf16.mxu1 %v8784_v15  ;;  %v6730_v50 = vld [vmem:[%s11665_s3 + $0xfd0] sm:$0xff]  ;;  %v6696_v15 = vld [vmem:[%s11665_s3 + $0xee0] sm:$0xff] }
 0x537   : > { %8685 = vmatprep.subr.bf16.mxu0 %v8684_v20  ;;  %8787 = vmatpush3.bf16.msra.mxu1 %v8786_v19  ;;  %v6731_v20 = vld [vmem:[%s11665_s3 + $0xfd8] sm:$0xff]  ;;  %v8760_v19 = vpack.c.bf16 %v6697_v16, %v6696_v15  ;;  %v6759_v15 = vld [vmem:[%s11668_s6 + $0x88] sm:$0xff] }
 0x538   : > { %v8788_v9 = vpack.c.bf16 %v6731_v20, %v6730_v50  ;;  %v6680_v50 = vld [vmem:[%s11665_s3 + $0xe60] sm:$0xff]  ;;  %v6681_v20 = vld [vmem:[%s11665_s3 + $0xe68] sm:$0xff]  ;;  %v8840_v16 = vpack.c.bf16 %v6759_v15, %v6758_v14  ;;  %v6830_v15 = vld [vmem:[%s11668_s6 + $0x1d0] sm:$0xff] }
 0x539   : > { %v8762_v22 = vpack.c.bf16 %v6681_v20, %v6680_v50 }
 0x53a   : > { %8687 = vmatpush3.bf16.msra.mxu0 %v8686_v23  ;;  %8789 = vmatprep.subr.bf16.mxu1 %v8788_v9  ;;  %v6732_v23 = vld [vmem:[%s11665_s3 + $0xfe0] sm:$0xff]  ;;  %v6698_v9 = vld [vmem:[%s11665_s3 + $0xef0] sm:$0xff] }
 0x53b   : > { %8689 = vmatprep.subr.bf16.mxu0 %v8688_v26  ;;  %8791 = vmatpush3.bf16.msra.mxu1 %v8790_v24  ;;  %v6733_v26 = vld [vmem:[%s11665_s3 + $0xfe8] sm:$0xff]  ;;  %v8764_v24 = vpack.c.bf16 %v6699_v21, %v6698_v9 }
 0x53c   : > { %v8792_v27 = vpack.c.bf16 %v6733_v26, %v6732_v23  ;;  %v6682_v23 = vld [vmem:[%s11665_s3 + $0xe70] sm:$0xff]  ;;  %v6683_v26 = vld [vmem:[%s11665_s3 + $0xe78] sm:$0xff] }
 0x53e   : > { %8691 = vmatpush3.bf16.msra.mxu0 %v8690_v31  ;;  %8793 = vmatprep.subr.bf16.mxu1 %v8792_v27  ;;  %v6734_v31 = vld [vmem:[%s11665_s3 + $0xff0] sm:$0xff]  ;;  %v8766_v27 = vpack.c.bf16 %v6683_v26, %v6682_v23 }
 0x53f   : > { %8693 = vmatprep.subr.bf16.mxu0 %v8692_v32  ;;  %8795 = vmatpush3.bf16.msra.mxu1 %v8794_v30  ;;  %v6735_v32 = vld [vmem:[%s11665_s3 + $0xff8] sm:$0xff] }
 0x540   : > { %v8796_v48 = vpack.c.bf16 %v6735_v32, %v6734_v31 }
 0x542   : > { %8695 = vmatpush3.bf16.msra.mxu0 %v8694_v37  ;;  %8797 = vmatprep.subr.bf16.mxu1 %v8796_v48  ;;  %v3300_v48 = vld [vmem:[%s11664_s2] sm:$0xff] }
 0x543   : > { %8697 = vmatprep.subr.bf16.mxu0 %v8696_v18  ;;  %8799 = vmatpush3.bf16.msra.mxu1 %v8798_v36 }
 0x544   : > { %3304 = vperm.xlu0 %9189, %v3300_v48  }
 0x546   : > { %8699 = vmatpush3.bf16.msra.mxu0 %v8698_v42  ;;  %3209 = vmatmul.mubr.f32.vlgmr.msra.gmra.mrb[16].mxu1 %v10225_v25  ;;  %v8736_v42 = vpack.c.bf16 %v6685_v39, %v6684_v38  ;;  %v6701_v38 = vld [vmem:[%s11663_s1 + $0xe8] sm:$0xff]  ;;  %v6736_v39 = vld [vmem:[%s11663_s1 + $0xf0] sm:$0xff] }
 0x547   : > { %8701 = vmatprep.subr.bf16.mxu0 %v8700_v43  ;;  %v6668_v43 = vld [vmem:[%s11665_s3 + $0xe00] sm:$0xff] }
 0x548   : > { %v8738_v49 = vpack.c.bf16 %v6669_v44, %v6668_v43  ;;  %3309 = vperm.xlu0 %9189, %v3301_v34  }
 0x54a   : > { %8703 = vmatpush3.bf16.msra.mxu0 %v8702_v46  ;;  %v6687_v46 = vld [vmem:[%s11665_s3 + $0xe98] sm:$0xff] }
 0x54b   : > { %v8740_v35 = vpack.c.bf16 %v6687_v46, %v6686_v45 }
 0x54d   : > { %2642 = vmatmul.mubr.f32.vlgmr.msra.gmra.mrb[12].mxu0 %v10225_v25  ;;  %v6664_v25 = vld [vmem:[%s11663_s1 + $0xd0] sm:$0xff] }
 0x54e   : > { %7854 = vmatprep.mubr.msk.f32.mxu0 %vm491_vm0, %v6628_v47  ;;  %v6665_v47 = vld [vmem:[%s11663_s1 + $0xd8] sm:$0xff] }
 0x619   : > { %v7562_v30 = vpop.f32.mrb[16].mxu1 }
 0x61a   : > { %v7563_v31 = vpop.f32.mrb[17].mxu1 }
 0x61b   : > { %v7564_v32 = vadd.f32 %v7563_v31, %v7562_v30 }
 0x620   : > { %v7448_v37 = vpop.f32.mrb[12].mxu0 }
 0x621   : > { %v7449_v18 = vpop.f32.mrb[13].mxu0 }
 0x622   : > { %v7450_v40 = vadd.f32 %v7449_v18, %v7448_v37 }
 0x624   : > { %7852 = vmatprep.subr.mxu0 %v7450_v40 }
 0x625   : > { %7853 = vmatpush3.msra.mxu0 %v7450_v40  ;;  %v6737_v40 = vld [vmem:[%s11663_s1 + $0xf8] sm:$0xff] }
 0x626   : > { %7855 = vmatmul.mubr.msk.f32.vlgmr.msra.gmra.mrb[2].mxu0 %vm491_vm0, %v6629_v41  ;;  %7857 = vmatprep.subr.mxu0 %v10789_v51  ;;  %v3305_v41 = vpop.permute.xlu0 %3304 }
 0x627   : > { %7858 = vmatpush3.msra.mxu0 %v10789_v51  ;;  %7859 = vmatprep.mubr.msk.f32.mxu0 %vm491_vm0, %v6664_v25  ;;  %v6670_v51 = vld [vmem:[%s11665_s3 + $0xe10] sm:$0xff] }
 0x628   : > { %8737 = vmatprep.subr.bf16.mxu0 %v8736_v42  ;;  %v8742_v55 = vpack.c.bf16 %v6671_v52, %v6670_v51 }
 0x62a   : > { %v3310_v25 = vpop.permute.xlu0 %3309 }
 0x62e   : > { %7860 = vmatmul.mubr.msk.f32.vlgmr.msra.gmra.mrb[2].mxu0 %vm491_vm0, %v6665_v47 }
 0x62f   : > { %8739 = vmatpush3.bf16.msra.mxu0 %v8738_v49  ;;  %3019 = vmatprep.mubr.f32.mxu0 %v9209_v56  ;;  %v3353_v56 = vld [vmem:[%s11668_s6] sm:$0xff] }
 0x630   : > { %8741 = vmatprep.subr.bf16.mxu0 %v8740_v35 }
 0x633   : > { %8743 = vmatpush3.bf16.msra.mxu0 %v8742_v55  ;;  %v8816_v55 = vpack.c.bf16 %v6743_v54, %v6742_v53  ;;  %v6788_v54 = vld [vmem:[%s11668_s6 + $0x110] sm:$0xff] }
 0x634   : > { %8745 = vmatprep.subr.bf16.mxu0 %v8744_v57  ;;  %v3354_v57 = vld [vmem:[%s11668_s6 + $0x8] sm:$0xff] }
 0x635   : > { %v8800_v58 = vpack.c.bf16 %v3354_v57, %v3353_v56  ;;  %8817 = vmatprep.subr.bf16.mxu1 %v8816_v55  ;;  %v6790_v57 = vld [vmem:[%s11668_s6 + $0x120] sm:$0xff] }
 0x636   : > { %8819 = vmatpush3.bf16.msra.mxu1 %v8816_v55  ;;  %v6789_v55 = vld [vmem:[%s11668_s6 + $0x118] sm:$0xff] }
 0x637   : > { %8747 = vmatpush3.bf16.msra.mxu0 %v8746_v62  ;;  %v3355_v62 = vld [vmem:[%s11668_s6 + $0x10] sm:$0xff]  ;;  %8821 = vmatprep.subr.bf16.mxu1 %v8820_v61  ;;  %v8884_v56 = vpack.c.bf16 %v6789_v55, %v6788_v54  ;;  %v6901_v54 = vld [vmem:[%s11668_s6 + $0x318] sm:$0xff] }
 0x638   : > { %8749 = vmatprep.subr.bf16.mxu0 %v8748_v63  ;;  %v3356_v63 = vld [vmem:[%s11668_s6 + $0x18] sm:$0xff] }
 0x639   : > { %v8804_v0 = vpack.c.bf16 %v3356_v63, %v3355_v62  ;;  %v6800_v63 = vld [vmem:[%s11668_s6 + $0x140] sm:$0xff] }
 0x63a   : > { %8823 = vmatpush3.bf16.msra.mxu1 %v8820_v61  ;;  %v6793_v61 = vld [vmem:[%s11668_s6 + $0x138] sm:$0xff] }
 0x63b   : > { %8751 = vmatpush3.bf16.msra.mxu0 %v8750_v4  ;;  %v3357_v4 = vld [vmem:[%s11668_s6 + $0x20] sm:$0xff]  ;;  %8825 = vmatprep.subr.bf16.mxu1 %v8824_v3  ;;  %v8892_v62 = vpack.c.bf16 %v6793_v61, %v6792_v60  ;;  %v6905_v60 = vld [vmem:[%s11668_s6 + $0x338] sm:$0xff] }
 0x63c   : > { %8753 = vmatprep.subr.bf16.mxu0 %v8752_v5  ;;  %v3358_v5 = vld [vmem:[%s11668_s6 + $0x28] sm:$0xff] }
 0x63d   : > { %v8808_v6 = vpack.c.bf16 %v3358_v5, %v3357_v4  ;;  %v6804_v5 = vld [vmem:[%s11668_s6 + $0x160] sm:$0xff] }
 0x63e   : > { %8827 = vmatpush3.bf16.msra.mxu1 %v8824_v3  ;;  %v6803_v3 = vld [vmem:[%s11668_s6 + $0x158] sm:$0xff] }
 0x63f   : > { %8755 = vmatpush3.bf16.msra.mxu0 %v8754_v11  ;;  %v3359_v11 = vld [vmem:[%s11668_s6 + $0x30] sm:$0xff]  ;;  %8829 = vmatprep.subr.bf16.mxu1 %v8828_v10  ;;  %v8904_v4 = vpack.c.bf16 %v6803_v3, %v6802_v2  ;;  %v6915_v2 = vld [vmem:[%s11668_s6 + $0x358] sm:$0xff] }
 0x640   : > { %8757 = vmatprep.subr.bf16.mxu0 %v8756_v12  ;;  %v3360_v12 = vld [vmem:[%s11668_s6 + $0x38] sm:$0xff] }
 0x641   : > { %v8812_v13 = vpack.c.bf16 %v3360_v12, %v3359_v11  ;;  %v6828_v12 = vld [vmem:[%s11668_s6 + $0x1c0] sm:$0xff] }
 0x642   : > { %8831 = vmatpush3.bf16.msra.mxu1 %v8828_v10  ;;  %v6807_v10 = vld [vmem:[%s11668_s6 + $0x178] sm:$0xff] }
 0x643   : > { %8759 = vmatpush3.bf16.msra.mxu0 %v8758_v17  ;;  %8841 = vmatprep.subr.bf16.mxu1 %v8840_v16  ;;  %v8912_v11 = vpack.c.bf16 %v6807_v10, %v6806_v8  ;;  %v6919_v8 = vld [vmem:[%s11668_s6 + $0x378] sm:$0xff] }
 0x644   : > { %8761 = vmatprep.subr.bf16.mxu0 %v8760_v19 }
 0x647   : > { %8763 = vmatpush3.bf16.msra.mxu0 %v8762_v22 }
 0x648   : > { %8765 = vmatprep.subr.bf16.mxu0 %v8764_v24 }
 0x64b   : > { %8767 = vmatpush3.bf16.msra.mxu0 %v8766_v27 }
 0x64e   : > { %3020 = vmatmul.mubr.f32.vlgmr.msra.gmra.mrb[14].mxu0 %v9210_v28 }
 0x64f   : > { %7864 = vmatprep.mubr.msk.f32.mxu0 %vm491_vm0, %v6700_v29 }
 0x721   : > { %v7524_v36 = vpop.f32.mrb[14].mxu0 }
 0x722   : > { %v7525_v37 = vpop.f32.mrb[15].mxu0 }
 0x723   : > { %v7526_v18 = vadd.f32 %v7525_v37, %v7524_v36 }
 0x725   : > { %7862 = vmatprep.subr.mxu0 %v7526_v18 }
 0x726   : > { %7863 = vmatpush3.msra.mxu0 %v7526_v18 }
 0x727   : > { %7865 = vmatmul.mubr.msk.f32.vlgmr.msra.gmra.mrb[2].mxu0 %vm491_vm0, %v6701_v38  ;;  %7867 = vmatprep.subr.mxu0 %v7564_v32 }
 0x728   : > { %7868 = vmatpush3.msra.mxu0 %v7564_v32  ;;  %7869 = vmatprep.mubr.msk.f32.mxu0 %vm491_vm0, %v6736_v39  ;;  %v6760_v39 = vld [vmem:[%s11668_s6 + $0x90] sm:$0xff] }
 0x729   : > { %8801 = vmatprep.subr.bf16.mxu0 %v8800_v58 }
 0x72f   : > { %7870 = vmatmul.mubr.msk.f32.vlgmr.msra.gmra.mrb[2].mxu0 %vm491_vm0, %v6737_v40  ;;  %v6761_v40 = vld [vmem:[%s11668_s6 + $0x98] sm:$0xff] }
 0x730   : > { %8803 = vmatpush3.bf16.msra.mxu0 %v8800_v58  ;;  %v6791_v58 = vld [vmem:[%s11668_s6 + $0x128] sm:$0xff] }
 0x731   : > { %8805 = vmatprep.subr.bf16.mxu0 %v8804_v0  ;;  %v8888_v59 = vpack.c.bf16 %v6791_v58, %v6790_v57  ;;  %v6903_v57 = vld [vmem:[%s11668_s6 + $0x328] sm:$0xff] }
 0x734   : > { %8807 = vmatpush3.bf16.msra.mxu0 %v8804_v0  ;;  %v6801_v0 = vld [vmem:[%s11668_s6 + $0x148] sm:$0xff] }
 0x735   : > { %8809 = vmatprep.subr.bf16.mxu0 %v8808_v6  ;;  %v8900_v1 = vpack.c.bf16 %v6801_v0, %v6800_v63  ;;  %v6913_v63 = vld [vmem:[%s11668_s6 + $0x348] sm:$0xff] }
 0x738   : > { %8811 = vmatpush3.bf16.msra.mxu0 %v8808_v6  ;;  %v6805_v6 = vld [vmem:[%s11668_s6 + $0x168] sm:$0xff] }
 0x739   : > { %8813 = vmatprep.subr.bf16.mxu0 %v8812_v13  ;;  %v8908_v7 = vpack.c.bf16 %v6805_v6, %v6804_v5  ;;  %v6917_v5 = vld [vmem:[%s11668_s6 + $0x368] sm:$0xff] }
 0x73c   : > { %8815 = vmatpush3.bf16.msra.mxu0 %v8812_v13  ;;  %v6829_v13 = vld [vmem:[%s11668_s6 + $0x1c8] sm:$0xff] }
 0x73d   : > { %v8940_v14 = vpack.c.bf16 %v6829_v13, %v6828_v12  ;;  %v6941_v12 = vld [vmem:[%s11668_s6 + $0x3c8] sm:$0xff] }
 0x802   : > { %v7871_v42 = vpop.f32.mrb[2].mxu0 }
 0x803   : > { %v11022_v43 = vadd.f32 %v7871_v42, %v3310_v25  ;;  %v3289_v44 = vpop.f32.mrb[3].mxu0  ;;  %v8844_v42 = vpack.c.bf16 %v6761_v40, %v6760_v39  ;;  %v6873_v39 = vld [vmem:[%s11668_s6 + $0x298] sm:$0xff] }
 0x804   : > { %v11024_v45 = vadd.f32 %v3305_v41, %v3289_v44  ;;  %v6762_v44 = vld [vmem:[%s11668_s6 + $0xa0] sm:$0xff] }
 0x805   : > { %v3318_v46 = vsel %vm3314_vm1, %v11022_v43, 0.0  ;;  %v3324_v51 = vmul.f32 %v11022_v43, %v11022_v43 }
 0x806   : > { %3319 = vadd.xlane.f32.xlu1 %v3318_v46  ;;  %v3323_v47 = vmul.f32 %v11024_v45, %v11024_v45  ;;  %v3315_v35 = vsel %vm3314_vm1, %v11024_v45, 0.0 }
 0x807   : > { %v3328_v52 = vsel %vm3314_vm1, %v3324_v51, 0.0  ;;  %v6786_v51 = vld [vmem:[%s11668_s6 + $0x100] sm:$0xff] }
 0x808   : > { %v3325_v49 = vsel %vm3314_vm1, %v3323_v47, 0.0  ;;  %v6764_v47 = vld [vmem:[%s11668_s6 + $0xb0] sm:$0xff] }
 0x809   : > { %3326 = vadd.xlane.f32.xlu0 %v3325_v49  ;;  %v6765_v49 = vld [vmem:[%s11668_s6 + $0xb8] sm:$0xff] }
 0x80a   : > { %3316 = vadd.xlane.f32.xlu1 %v3315_v35  ;;  %v8852_v35 = vpack.c.bf16 %v6765_v49, %v6764_v47  ;;  %v6898_v49 = vld [vmem:[%s11668_s6 + $0x300] sm:$0xff] }
 0x80e   : > { %3329 = vadd.xlane.f32.xlu1 %v3328_v52  ;;  %v6787_v52 = vld [vmem:[%s11668_s6 + $0x108] sm:$0xff] }
 0x80f   : > { %v8880_v53 = vpack.c.bf16 %v6787_v52, %v6786_v51  ;;  %v6752_v51 = vld [vmem:[%s11666_s4 + $0x10] sm:$0xff] }
 0x893   : > { %v3320_v17 = vpop.xlane.xlu1 %3319 }
 0x894   : > { %v3322_v20 = vmul.f32 0.015625, %v3320_v17 }
 0x896   : > { %v3327_v19 = vpop.xlane.xlu0 %3326  ;;  %v3334_v23 = vmul.f32 %v3322_v20, %v3322_v20  ;;  %v3340_v34 = vsub.f32 %v11022_v43, %v3322_v20 }
 0x897   : > { %v3317_v50 = vpop.xlane.xlu1 %3316  ;;  %v3331_v21 = vmul.f32 0.015625, %v3327_v19  ;;  %v6832_v19 = vld [vmem:[%s11668_s6 + $0x1e0] sm:$0xff] }
 0x898   : > { %v3321_v9 = vmul.f32 0.015625, %v3317_v50  ;;  %v6833_v50 = vld [vmem:[%s11668_s6 + $0x1e8] sm:$0xff] }
 0x899   : > { %v8948_v20 = vpack.c.bf16 %v6833_v50, %v6832_v19  ;;  %v6945_v19 = vld [vmem:[%s11668_s6 + $0x3e8] sm:$0xff] }
 0x89a   : > { %v3333_v22 = vmul.f32 %v3321_v9, %v3321_v9  ;;  %v3339_v48 = vsub.f32 %v11024_v45, %v3321_v9  ;;  %v6763_v45 = vld [vmem:[%s11668_s6 + $0xa8] sm:$0xff]  ;;  %v6834_v9 = vld [vmem:[%s11668_s6 + $0x1f0] sm:$0xff] }
 0x89b   : > { %v3330_v24 = vpop.xlane.xlu1 %3329  ;;  %v8848_v46 = vpack.c.bf16 %v6763_v45, %v6762_v44  ;;  %v6876_v45 = vld [vmem:[%s11668_s6 + $0x2b0] sm:$0xff] }
 0x89c   : > { %v3335_v26 = vsub.f32 %v3331_v21, %v3333_v22  ;;  %v3332_v27 = vmul.f32 0.015625, %v3330_v24  ;;  %v6835_v21 = vld [vmem:[%s11668_s6 + $0x1f8] sm:$0xff]  ;;  %v6856_v24 = vld [vmem:[%s11668_s6 + $0x240] sm:$0xff] }
 0x89d   : > { %v8952_v22 = vpack.c.bf16 %v6835_v21, %v6834_v9  ;;  %v6947_v9 = vld [vmem:[%s11668_s6 + $0x3f8] sm:$0xff] }
 0x89e   : > { %v3337_v28 = vmax.f32 %v3335_v26, 0.0  ;;  %v3336_v29 = vsub.f32 %v3332_v27, %v3334_v23  ;;  %v6857_v23 = vld [vmem:[%s11668_s6 + $0x248] sm:$0xff]  ;;  %v6858_v27 = vld [vmem:[%s11668_s6 + $0x250] sm:$0xff] }
 0x89f   : > { %v8980_v26 = vpack.c.bf16 %v6857_v23, %v6856_v24 }
 0x8a0   : > { %v3341_v30 = vadd.f32 1e-05, %v3337_v28  ;;  %v3338_v31 = vmax.f32 %v3336_v29, 0.0  ;;  %v6859_v28 = vld [vmem:[%s11668_s6 + $0x258] sm:$0xff] }
 0x8a1   : > { %v8984_v29 = vpack.c.bf16 %v6859_v28, %v6858_v27 }
 0x8a2   : > { %9191 = vrsqrt.f32 %v3341_v30  ;;  %v3342_v32 = vadd.f32 1e-05, %v3338_v31  ;;  %v6860_v30 = vld [vmem:[%s11668_s6 + $0x260] sm:$0xff]  ;;  %v6861_v31 = vld [vmem:[%s11668_s6 + $0x268] sm:$0xff] }
 0x8a4   : > { %9193 = vrsqrt.f32 %v3342_v32  ;;  %v8988_v32 = vpack.c.bf16 %v6861_v31, %v6860_v30  ;;  %v3442_v30 = vld [vmem:[%s11666_s4] sm:$0xff]  ;;  %v3443_v31 = vld [vmem:[%s11666_s4 + $0x8] sm:$0xff] }
 0x8ac   : > { %v9192_v33 = vpop.eup %9191 }
 0x8ad   : > { %v3345_v36 = vmul.f32 %v9192_v33, %v3339_v48  ;;  %v6862_v48 = vld [vmem:[%s11668_s6 + $0x270] sm:$0xff]  ;;  %v6863_v33 = vld [vmem:[%s11668_s6 + $0x278] sm:$0xff] }
 0x8ae   : > { %v9194_v37 = vpop.eup %9193 }
 0x8af   : > { %vm3347_vm2 = vcmp.gt.f32.partialorder %v3345_v36, 0.0  ;;  %v3349_v18 = vmul.f32 0.2, %v3345_v36  ;;  %v3346_v38 = vmul.f32 %v9194_v37, %v3340_v34  ;;  %v8992_v34 = vpack.c.bf16 %v6863_v33, %v6862_v48  ;;  %v6871_v37 = vld [vmem:[%s11668_s6 + $0x288] sm:$0xff]  ;;  %v6772_v48 = vld [vmem:[%s11668_s6 + $0xc0] sm:$0xff] }
 0x8b0   : > { %v6773_v33 = vld [vmem:[%s11668_s6 + $0xc8] sm:$0xff] }
 0x8b1   : > { %v11098_v41 = vsel %vm3347_vm2, %v3345_v36, %v3349_v18  ;;  %vm3348_vm3 = vcmp.gt.f32.partialorder %v3346_v38, 0.0  ;;  %v3350_v25 = vmul.f32 0.2, %v3346_v38  ;;  %v6870_v36 = vld [vmem:[%s11668_s6 + $0x280] sm:$0xff] }
 0x8b2   : > { %7888 = vmatprep.mubr.msk.f32.mxu0 %vm3314_vm1, %v11098_v41  ;;  %7907 = vmatprep.mubr.msk.f32.mxu1 %vm3314_vm1, %v11098_v41  ;;  %v9000_v18 = vpack.c.bf16 %v6871_v37, %v6870_v36 }
 0x8b3   : > { %v11104_v43 = vsel %vm3348_vm3, %v3346_v38, %v3350_v25  ;;  %v6872_v38 = vld [vmem:[%s11668_s6 + $0x290] sm:$0xff]  ;;  %v6874_v25 = vld [vmem:[%s11668_s6 + $0x2a0] sm:$0xff] }
 0x8b4   : > { %7889 = vmatmul.mubr.msk.f32.vlgmr.msra.gmra.mrb[16].mxu0 %vm3314_vm1, %v11104_v43  ;;  %7908 = vmatmul.mubr.msk.f32.vlgmr.msra.gmra.mrb[18].mxu1 %vm3314_vm1, %v11104_v43  ;;  %v9004_v40 = vpack.c.bf16 %v6873_v39, %v6872_v38  ;;  %v6774_v38 = vld [vmem:[%s11668_s6 + $0xd0] sm:$0xff]  ;;  %v6775_v39 = vld [vmem:[%s11668_s6 + $0xd8] sm:$0xff] }
 0x8b5   : > { %8843 = vmatpush3.bf16.msra.mxu1 %v8840_v16  ;;  %7940 = vmatprep.mubr.msk.f32.mxu1 %vm3314_vm1, %v11098_v41  ;;  %v6831_v16 = vld [vmem:[%s11668_s6 + $0x1d8] sm:$0xff] }
 0x8b6   : > { %8845 = vmatprep.subr.bf16.mxu1 %v8844_v42  ;;  %v8944_v17 = vpack.c.bf16 %v6831_v16, %v6830_v15  ;;  %7914 = vmatprep.mubr.msk.f32.mxu0 %vm3531_vm4, %v6752_v51  ;;  %v6943_v15 = vld [vmem:[%s11668_s6 + $0x3d8] sm:$0xff] }
 0x8b9   : > { %8847 = vmatpush3.bf16.msra.mxu1 %v8844_v42  ;;  %v6875_v42 = vld [vmem:[%s11668_s6 + $0x2a8] sm:$0xff] }
 0x8ba   : > { %8849 = vmatprep.subr.bf16.mxu1 %v8848_v46  ;;  %v9008_v44 = vpack.c.bf16 %v6875_v42, %v6874_v25  ;;  %v8864_v25 = vpack.c.bf16 %v6775_v39, %v6774_v38  ;;  %v6776_v42 = vld [vmem:[%s11668_s6 + $0xe0] sm:$0xff]  ;;  %v6838_v38 = vld [vmem:[%s11666_s4 + $0x70] sm:$0xff] }
 0x8bd   : > { %8851 = vmatpush3.bf16.msra.mxu1 %v8848_v46  ;;  %v6877_v46 = vld [vmem:[%s11668_s6 + $0x2b8] sm:$0xff] }
 0x8be   : > { %8853 = vmatprep.subr.bf16.mxu1 %v8852_v35  ;;  %v9012_v47 = vpack.c.bf16 %v6877_v46, %v6876_v45  ;;  %v6778_v46 = vld [vmem:[%s11668_s6 + $0xf0] sm:$0xff] }
 0x8c1   : > { %8855 = vmatpush3.bf16.msra.mxu1 %v8852_v35  ;;  %v6899_v35 = vld [vmem:[%s11668_s6 + $0x308] sm:$0xff] }
 0x8c2   : > { %8881 = vmatprep.subr.bf16.mxu1 %v8880_v53  ;;  %v9040_v52 = vpack.c.bf16 %v6899_v35, %v6898_v49 }
 0x8c4   : > { %7941 = vmatmul.mubr.msk.f32.vlgmr.msra.gmra.mrb[20].mxu1 %vm3314_vm1, %v11104_v43 }
 0x8c5   : > { %8883 = vmatpush3.bf16.msra.mxu1 %v8880_v53  ;;  %7992 = vmatprep.mubr.msk.f32.mxu1 %vm3314_vm1, %v11098_v41  ;;  %v6900_v53 = vld [vmem:[%s11668_s6 + $0x310] sm:$0xff] }
 0x8c6   : > { %8885 = vmatprep.subr.bf16.mxu1 %v8884_v56  ;;  %v9044_v55 = vpack.c.bf16 %v6901_v54, %v6900_v53 }
 0x8c9   : > { %8887 = vmatpush3.bf16.msra.mxu1 %v8884_v56  ;;  %v6902_v56 = vld [vmem:[%s11668_s6 + $0x320] sm:$0xff] }
 0x8ca   : > { %8889 = vmatprep.subr.bf16.mxu1 %v8888_v59  ;;  %v9048_v58 = vpack.c.bf16 %v6903_v57, %v6902_v56 }
 0x8cd   : > { %8891 = vmatpush3.bf16.msra.mxu1 %v8888_v59  ;;  %v6904_v59 = vld [vmem:[%s11668_s6 + $0x330] sm:$0xff] }
 0x8ce   : > { %8893 = vmatprep.subr.bf16.mxu1 %v8892_v62  ;;  %v9052_v61 = vpack.c.bf16 %v6905_v60, %v6904_v59 }
 0x8d1   : > { %8895 = vmatpush3.bf16.msra.mxu1 %v8892_v62  ;;  %v6912_v62 = vld [vmem:[%s11668_s6 + $0x340] sm:$0xff] }
 0x8d2   : > { %8901 = vmatprep.subr.bf16.mxu1 %v8900_v1  ;;  %v9060_v0 = vpack.c.bf16 %v6913_v63, %v6912_v62 }
 0x8d4   : > { %7993 = vmatmul.mubr.msk.f32.vlgmr.msra.gmra.mrb[22].mxu1 %vm3314_vm1, %v11104_v43 }
 0x8d5   : > { %8903 = vmatpush3.bf16.msra.mxu1 %v8900_v1  ;;  %8018 = vmatprep.mubr.msk.f32.mxu1 %vm3314_vm1, %v11098_v41  ;;  %v6914_v1 = vld [vmem:[%s11668_s6 + $0x350] sm:$0xff] }
 0x8d6   : > { %8905 = vmatprep.subr.bf16.mxu1 %v8904_v4  ;;  %v9064_v3 = vpack.c.bf16 %v6915_v2, %v6914_v1 }
 0x8d9   : > { %8907 = vmatpush3.bf16.msra.mxu1 %v8904_v4  ;;  %v6916_v4 = vld [vmem:[%s11668_s6 + $0x360] sm:$0xff] }
 0x8da   : > { %8909 = vmatprep.subr.bf16.mxu1 %v8908_v7  ;;  %v9068_v6 = vpack.c.bf16 %v6917_v5, %v6916_v4 }
 0x8dd   : > { %8911 = vmatpush3.bf16.msra.mxu1 %v8908_v7  ;;  %v6918_v7 = vld [vmem:[%s11668_s6 + $0x370] sm:$0xff] }
 0x8de   : > { %8913 = vmatprep.subr.bf16.mxu1 %v8912_v11  ;;  %v9072_v10 = vpack.c.bf16 %v6919_v8, %v6918_v7 }
 0x8e1   : > { %8915 = vmatpush3.bf16.msra.mxu1 %v8912_v11  ;;  %v6940_v11 = vld [vmem:[%s11668_s6 + $0x3c0] sm:$0xff] }
 0x8e2   : > { %8941 = vmatprep.subr.bf16.mxu1 %v8940_v14  ;;  %v9100_v13 = vpack.c.bf16 %v6941_v12, %v6940_v11 }
 0x8e4   : > { %8019 = vmatmul.mubr.msk.f32.vlgmr.msra.gmra.mrb[24].mxu1 %vm3314_vm1, %v11104_v43 }
 0x8e5   : > { %8943 = vmatpush3.bf16.msra.mxu1 %v8940_v14  ;;  %8070 = vmatprep.mubr.msk.f32.mxu1 %vm3314_vm1, %v11098_v41  ;;  %v6942_v14 = vld [vmem:[%s11668_s6 + $0x3d0] sm:$0xff] }
 0x8e6   : > { %8945 = vmatprep.subr.bf16.mxu1 %v8944_v17  ;;  %v9104_v16 = vpack.c.bf16 %v6943_v15, %v6942_v14  ;;  %v6783_v15 = vld [vmem:[%s11666_s4 + $0x38] sm:$0xff] }
 0x8e9   : > { %8947 = vmatpush3.bf16.msra.mxu1 %v8944_v17  ;;  %v6944_v17 = vld [vmem:[%s11668_s6 + $0x3e0] sm:$0xff] }
 0x8ea   : > { %8949 = vmatprep.subr.bf16.mxu1 %v8948_v20  ;;  %v9108_v50 = vpack.c.bf16 %v6945_v19, %v6944_v17  ;;  %v6814_v17 = vld [vmem:[%s11668_s6 + $0x180] sm:$0xff]  ;;  %v6815_v19 = vld [vmem:[%s11668_s6 + $0x188] sm:$0xff] }
 0x8ed   : > { %8951 = vmatpush3.bf16.msra.mxu1 %v8948_v20  ;;  %v6946_v20 = vld [vmem:[%s11668_s6 + $0x3f0] sm:$0xff] }
 0x8ee   : > { %8953 = vmatprep.subr.bf16.mxu1 %v8952_v22  ;;  %v9112_v21 = vpack.c.bf16 %v6947_v9, %v6946_v20  ;;  %v6810_v20 = vld [vmem:[%s11666_s4 + $0x50] sm:$0xff]  ;;  %v8920_v9 = vpack.c.bf16 %v6815_v19, %v6814_v17  ;;  %v6895_v17 = vld [vmem:[%s11666_s4 + $0xb8] sm:$0xff]  ;;  %v6908_v19 = vld [vmem:[%s11666_s4 + $0xc0] sm:$0xff] }
 0x8f1   : > { %8955 = vmatpush3.bf16.msra.mxu1 %v8952_v22 }
 0x8f2   : > { %8981 = vmatprep.subr.bf16.mxu1 %v8980_v26 }
 0x8f4   : > { %8071 = vmatmul.mubr.msk.f32.vlgmr.msra.gmra.mrb[26].mxu1 %vm3314_vm1, %v11104_v43 }
 0x8f5   : > { %8983 = vmatpush3.bf16.msra.mxu1 %v8980_v26  ;;  %8122 = vmatprep.mubr.msk.f32.mxu1 %vm3314_vm1, %v11098_v41 }
 0x8f6   : > { %8985 = vmatprep.subr.bf16.mxu1 %v8984_v29 }
 0x8f9   : > { %8987 = vmatpush3.bf16.msra.mxu1 %v8984_v29  ;;  %v6753_v29 = vld [vmem:[%s11666_s4 + $0x18] sm:$0xff] }
 0x8fa   : > { %8989 = vmatprep.subr.bf16.mxu1 %v8988_v32 }
 0x8fd   : > { %8991 = vmatpush3.bf16.msra.mxu1 %v8988_v32  ;;  %v6768_v32 = vld [vmem:[%s11666_s4 + $0x20] sm:$0xff] }
 0x8fe   : > { %8993 = vmatprep.subr.bf16.mxu1 %v8992_v34 }
 0x901   : > { %8995 = vmatpush3.bf16.msra.mxu1 %v8992_v34 }
 0x902   : > { %9001 = vmatprep.subr.bf16.mxu1 %v9000_v18 }
 0x904   : > { %8123 = vmatmul.mubr.msk.f32.vlgmr.msra.gmra.mrb[28].mxu1 %vm3314_vm1, %v11104_v43 }
 0x905   : > { %9003 = vmatpush3.bf16.msra.mxu1 %v9000_v18  ;;  %8148 = vmatprep.mubr.msk.f32.mxu1 %vm3314_vm1, %v11098_v41  ;;  %v8860_v18 = vpack.c.bf16 %v6773_v33, %v6772_v48 }
 0x906   : > { %9005 = vmatprep.subr.bf16.mxu1 %v9004_v40 }
 0x909   : > { %9007 = vmatpush3.bf16.msra.mxu1 %v9004_v40  ;;  %v6769_v40 = vld [vmem:[%s11666_s4 + $0x28] sm:$0xff] }
 0x90a   : > { %9009 = vmatprep.subr.bf16.mxu1 %v9008_v44 }
 0x90d   : > { %9011 = vmatpush3.bf16.msra.mxu1 %v9008_v44  ;;  %v6777_v44 = vld [vmem:[%s11668_s6 + $0xe8] sm:$0xff] }
 0x90e   : > { %9013 = vmatprep.subr.bf16.mxu1 %v9012_v47  ;;  %v8868_v45 = vpack.c.bf16 %v6777_v44, %v6776_v42  ;;  %v6839_v42 = vld [vmem:[%s11666_s4 + $0x78] sm:$0xff] }
 0x911   : > { %9015 = vmatpush3.bf16.msra.mxu1 %v9012_v47  ;;  %v6779_v47 = vld [vmem:[%s11668_s6 + $0xf8] sm:$0xff] }
 0x912   : > { %9041 = vmatprep.subr.bf16.mxu1 %v9040_v52  ;;  %v8872_v49 = vpack.c.bf16 %v6779_v47, %v6778_v46  ;;  %v6847_v46 = vld [vmem:[%s11668_s6 + $0x228] sm:$0xff] }
 0x914   : > { %8149 = vmatmul.mubr.msk.f32.vlgmr.msra.gmra.mrb[30].mxu1 %vm3314_vm1, %v11104_v43 }
 0x915   : > { %9043 = vmatpush3.bf16.msra.mxu1 %v9040_v52  ;;  %8200 = vmatprep.mubr.msk.f32.mxu1 %vm3314_vm1, %v11098_v41 }
 0x916   : > { %9045 = vmatprep.subr.bf16.mxu1 %v9044_v55 }
 0x919   : > { %9047 = vmatpush3.bf16.msra.mxu1 %v9044_v55 }
 0x91a   : > { %9049 = vmatprep.subr.bf16.mxu1 %v9048_v58 }
 0x91d   : > { %9051 = vmatpush3.bf16.msra.mxu1 %v9048_v58 }
 0x91e   : > { %9053 = vmatprep.subr.bf16.mxu1 %v9052_v61 }
 0x921   : > { %9055 = vmatpush3.bf16.msra.mxu1 %v9052_v61 }
 0x922   : > { %9061 = vmatprep.subr.bf16.mxu1 %v9060_v0 }
 0x924   : > { %8201 = vmatmul.mubr.msk.f32.vlgmr.msra.gmra.mrb[32].mxu1 %vm3314_vm1, %v11104_v43 }
 0x925   : > { %9063 = vmatpush3.bf16.msra.mxu1 %v9060_v0  ;;  %8226 = vmatprep.mubr.msk.f32.mxu1 %vm3314_vm1, %v11098_v41 }
 0x926   : > { %9065 = vmatprep.subr.bf16.mxu1 %v9064_v3 }
 0x929   : > { %9067 = vmatpush3.bf16.msra.mxu1 %v9064_v3 }
 0x92a   : > { %9069 = vmatprep.subr.bf16.mxu1 %v9068_v6 }
 0x92d   : > { %9071 = vmatpush3.bf16.msra.mxu1 %v9068_v6  ;;  %v6782_v6 = vld [vmem:[%s11666_s4 + $0x30] sm:$0xff] }
 0x92e   : > { %9073 = vmatprep.subr.bf16.mxu1 %v9072_v10 }
 0x931   : > { %9075 = vmatpush3.bf16.msra.mxu1 %v9072_v10 }
 0x932   : > { %9101 = vmatprep.subr.bf16.mxu1 %v9100_v13 }
 0x934   : > { %8227 = vmatmul.mubr.msk.f32.vlgmr.msra.gmra.mrb[34].mxu1 %vm3314_vm1, %v11104_v43 }
 0x935   : > { %9103 = vmatpush3.bf16.msra.mxu1 %v9100_v13  ;;  %8278 = vmatprep.mubr.msk.f32.mxu1 %vm3314_vm1, %v11098_v41 }
 0x936   : > { %9105 = vmatprep.subr.bf16.mxu1 %v9104_v16 }
 0x939   : > { %9107 = vmatpush3.bf16.msra.mxu1 %v9104_v16  ;;  %v6796_v16 = vld [vmem:[%s11666_s4 + $0x40] sm:$0xff] }
 0x93a   : > { %9109 = vmatprep.subr.bf16.mxu1 %v9108_v50 }
 0x93d   : > { %9111 = vmatpush3.bf16.msra.mxu1 %v9108_v50  ;;  %v6797_v50 = vld [vmem:[%s11666_s4 + $0x48] sm:$0xff] }
 0x93e   : > { %9113 = vmatprep.subr.bf16.mxu1 %v9112_v21 }
 0x941   : > { %9115 = vmatpush3.bf16.msra.mxu1 %v9112_v21  ;;  %v6816_v21 = vld [vmem:[%s11668_s6 + $0x190] sm:$0xff] }
 0x944   : > { %8279 = vmatmul.mubr.msk.f32.vlgmr.msra.gmra.mrb[36].mxu1 %vm3314_vm1, %v11104_v43 }
 0x987   : > { %v7890_v22 = vpop.f32.mrb[16].mxu0  ;;  %v7909_v24 = vpop.f32.mrb[18].mxu1 }
 0x988   : > { %v3433_v23 = vpop.f32.mrb[17].mxu0  ;;  %v3519_v26 = vpop.f32.mrb[19].mxu1 }
 0x989   : > { %v8836_v27 = vpack.c.bf16 %v7890_v22, %v3433_v23  ;;  %v8832_v28 = vpack.c.bf16 %v7909_v24, %v3519_v26  ;;  %v6817_v22 = vld [vmem:[%s11668_s6 + $0x198] sm:$0xff]  ;;  %v6818_v26 = vld [vmem:[%s11668_s6 + $0x1a0] sm:$0xff] }
 0x98a   : > { %v6811_v24 = vld [vmem:[%s11666_s4 + $0x58] sm:$0xff]  ;;  %v8924_v23 = vpack.c.bf16 %v6817_v22, %v6816_v21  ;;  %v6928_v22 = vld [vmem:[%s11668_s6 + $0x390] sm:$0xff] }
 0x98b   : > { %8833 = vmatprep.subr.bf16.mxu0 %v8832_v28 }
 0x98c   : > { %8835 = vmatpush3.bf16.msra.mxu0 %v8832_v28 }
 0x98d   : > { %8837 = vmatprep.subr.bf16.mxu0 %v8836_v27 }
 0x98f   : > { %7915 = vmatmul.mubr.msk.f32.vlgmr.msra.gmra.mrb[18].mxu0 %vm3531_vm4, %v6753_v29  ;;  %v6820_v29 = vld [vmem:[%s11668_s6 + $0x1b0] sm:$0xff] }
 0x990   : > { %8839 = vmatpush3.bf16.msra.mxu0 %v8836_v27  ;;  %7921 = vmatprep.mubr.msk.f32.mxu0 %vm3531_vm4, %v3442_v30  ;;  %v6819_v27 = vld [vmem:[%s11668_s6 + $0x1a8] sm:$0xff]  ;;  %v6821_v30 = vld [vmem:[%s11668_s6 + $0x1b8] sm:$0xff] }
 0x991   : > { %v8928_v28 = vpack.c.bf16 %v6819_v27, %v6818_v26  ;;  %v6931_v27 = vld [vmem:[%s11668_s6 + $0x3a8] sm:$0xff] }
 0x997   : > { %v7942_v34 = vpop.f32.mrb[20].mxu1  ;;  %7922 = vmatmul.mubr.msk.f32.vlgmr.msra.gmra.mrb[18].mxu0 %vm3531_vm4, %v3443_v31  ;;  %v8932_v31 = vpack.c.bf16 %v6821_v30, %v6820_v29  ;;  %v6932_v29 = vld [vmem:[%s11668_s6 + $0x3b0] sm:$0xff]  ;;  %v6933_v30 = vld [vmem:[%s11668_s6 + $0x3b8] sm:$0xff] }
 0x998   : > { %v3769_v36 = vpop.f32.mrb[21].mxu1  ;;  %7947 = vmatprep.mubr.msk.f32.mxu0 %vm3531_vm4, %v6768_v32  ;;  %v6824_v32 = vld [vmem:[%s11666_s4 + $0x60] sm:$0xff] }
 0x999   : > { %v8856_v37 = vpack.c.bf16 %v7942_v34, %v3769_v36  ;;  %v6842_v36 = vld [vmem:[%s11668_s6 + $0x200] sm:$0xff] }
 0x99b   : > { %8857 = vmatprep.subr.bf16.mxu0 %v8856_v37 }
 0x99c   : > { %8859 = vmatpush3.bf16.msra.mxu0 %v8856_v37  ;;  %v6843_v37 = vld [vmem:[%s11668_s6 + $0x208] sm:$0xff] }
 0x99d   : > { %8861 = vmatprep.subr.bf16.mxu0 %v8860_v18  ;;  %v8960_v39 = vpack.c.bf16 %v6843_v37, %v6842_v36  ;;  %v6950_v37 = vld [vmem:[%s11666_s4 + $0xf0] sm:$0xff] }
 0x99f   : > { %7948 = vmatmul.mubr.msk.f32.vlgmr.msra.gmra.mrb[18].mxu0 %vm3531_vm4, %v6769_v40  ;;  %v6844_v40 = vld [vmem:[%s11668_s6 + $0x210] sm:$0xff] }
 0x9a0   : > { %8863 = vmatpush3.bf16.msra.mxu0 %v8860_v18  ;;  %7966 = vmatprep.mubr.msk.f32.mxu0 %vm3314_vm1, %v11098_v41  ;;  %v6825_v18 = vld [vmem:[%s11666_s4 + $0x68] sm:$0xff] }
 0x9a1   : > { %8865 = vmatprep.subr.bf16.mxu0 %v8864_v25 }
 0x9a4   : > { %8867 = vmatpush3.bf16.msra.mxu0 %v8864_v25  ;;  %v6845_v25 = vld [vmem:[%s11668_s6 + $0x218] sm:$0xff] }
 0x9a5   : > { %8869 = vmatprep.subr.bf16.mxu0 %v8868_v45  ;;  %v8964_v44 = vpack.c.bf16 %v6845_v25, %v6844_v40 }
 0x9a7   : > { %v7994_v35 = vpop.f32.mrb[22].mxu1 }
 0x9a8   : > { %8871 = vmatpush3.bf16.msra.mxu0 %v8868_v45  ;;  %v4109_v51 = vpop.f32.mrb[23].mxu1  ;;  %v6846_v45 = vld [vmem:[%s11668_s6 + $0x220] sm:$0xff] }
 0x9a9   : > { %v8896_v52 = vpack.c.bf16 %v7994_v35, %v4109_v51  ;;  %8873 = vmatprep.subr.bf16.mxu0 %v8872_v49  ;;  %v8968_v47 = vpack.c.bf16 %v6847_v46, %v6846_v45  ;;  %v6849_v35 = vld [vmem:[%s11668_s6 + $0x238] sm:$0xff] }
 0x9ac   : > { %8875 = vmatpush3.bf16.msra.mxu0 %v8872_v49  ;;  %v6848_v49 = vld [vmem:[%s11668_s6 + $0x230] sm:$0xff] }
 0x9ad   : > { %v8972_v51 = vpack.c.bf16 %v6849_v35, %v6848_v49 }
 0x9af   : > { %7967 = vmatmul.mubr.msk.f32.vlgmr.msra.gmra.mrb[20].mxu0 %vm3314_vm1, %v11104_v43 }
 0x9b0   : > { %7973 = vmatprep.mubr.msk.f32.mxu0 %vm3531_vm4, %v6782_v6 }
 0x9b7   : > { %v8020_v53 = vpop.f32.mrb[24].mxu1 }
 0x9b8   : > { %v4279_v54 = vpop.f32.mrb[25].mxu1 }
 0x9b9   : > { %v8916_v55 = vpack.c.bf16 %v8020_v53, %v4279_v54 }
 0x9c7   : > { %v8072_v56 = vpop.f32.mrb[26].mxu1 }
 0x9c8   : > { %v4619_v57 = vpop.f32.mrb[27].mxu1 }
 0x9c9   : > { %v11402_v58 = vpack.c.bf16 %v8072_v56, %v4619_v57  ;;  %v6853_v56 = vld [vmem:[%s11666_s4 + $0x88] sm:$0xff]  ;;  %v6866_v57 = vld [vmem:[%s11666_s4 + $0x90] sm:$0xff] }
 0x9d7   : > { %v8124_v59 = vpop.f32.mrb[28].mxu1 }
 0x9d8   : > { %v4959_v60 = vpop.f32.mrb[29].mxu1 }
 0x9d9   : > { %v11404_v61 = vpack.c.bf16 %v8124_v59, %v4959_v60  ;;  %v6885_v59 = vld [vmem:[%s11668_s6 + $0x2c8] sm:$0xff]  ;;  %v6867_v60 = vld [vmem:[%s11666_s4 + $0x98] sm:$0xff] }
 0x9e7   : > { %v8150_v62 = vpop.f32.mrb[30].mxu1 }
 0x9e8   : > { %v5129_v63 = vpop.f32.mrb[31].mxu1 }
 0x9e9   : > { %v11406_v0 = vpack.c.bf16 %v8150_v62, %v5129_v63  ;;  %v6886_v63 = vld [vmem:[%s11668_s6 + $0x2d0] sm:$0xff] }
 0x9f7   : > { %v8202_v1 = vpop.f32.mrb[32].mxu1 }
 0x9f8   : > { %v5469_v2 = vpop.f32.mrb[33].mxu1 }
 0x9f9   : > { %v11408_v3 = vpack.c.bf16 %v8202_v1, %v5469_v2  ;;  %v6887_v1 = vld [vmem:[%s11668_s6 + $0x2d8] sm:$0xff]  ;;  %v6881_v2 = vld [vmem:[%s11666_s4 + $0xa8] sm:$0xff] }
 0xa07   : > { %v8228_v4 = vpop.f32.mrb[34].mxu1 }
 0xa08   : > { %v5639_v5 = vpop.f32.mrb[35].mxu1 }
 0xa09   : > { %v11413_v7 = vpack.c.bf16 %v8228_v4, %v5639_v5  ;;  %v9024_v4 = vpack.c.bf16 %v6887_v1, %v6886_v63  ;;  %v6889_v5 = vld [vmem:[%s11668_s6 + $0x2e8] sm:$0xff] }
 0xa17   : > { %v8280_v8 = vpop.f32.mrb[36].mxu1 }
 0xa18   : > { %v5979_v10 = vpop.f32.mrb[37].mxu1 }
 0xa19   : > { %v11416_v11 = vpack.c.bf16 %v8280_v8, %v5979_v10  ;;  %v6890_v8 = vld [vmem:[%s11668_s6 + $0x2f0] sm:$0xff]  ;;  %v6891_v10 = vld [vmem:[%s11668_s6 + $0x2f8] sm:$0xff] }
 0xa82   : > { %v7968_v12 = vpop.f32.mrb[20].mxu0 }
 0xa83   : > { %v3939_v13 = vpop.f32.mrb[21].mxu0 }
 0xa84   : > { %v8876_v14 = vpack.c.bf16 %v7968_v12, %v3939_v13  ;;  %v9032_v12 = vpack.c.bf16 %v6891_v10, %v6890_v8  ;;  %v6894_v13 = vld [vmem:[%s11666_s4 + $0xb0] sm:$0xff] }
 0xa86   : > { %8877 = vmatprep.subr.bf16.mxu0 %v8876_v14 }
 0xa87   : > { %8879 = vmatpush3.bf16.msra.mxu0 %v8876_v14 }
 0xa88   : > { %8897 = vmatprep.subr.bf16.mxu0 %v8896_v52 }
 0xa8a   : > { %7974 = vmatmul.mubr.msk.f32.vlgmr.msra.gmra.mrb[18].mxu0 %vm3531_vm4, %v6783_v15 }
 0xa8b   : > { %8899 = vmatpush3.bf16.msra.mxu0 %v8896_v52  ;;  %7999 = vmatprep.mubr.msk.f32.mxu0 %vm3531_vm4, %v6796_v16  ;;  %v6852_v52 = vld [vmem:[%s11666_s4 + $0x80] sm:$0xff] }
 0xa8c   : > { %8917 = vmatprep.subr.bf16.mxu0 %v8916_v55 }
 0xa92   : > { %8000 = vmatmul.mubr.msk.f32.vlgmr.msra.gmra.mrb[18].mxu0 %vm3531_vm4, %v6797_v50  ;;  %v6926_v50 = vld [vmem:[%s11668_s6 + $0x380] sm:$0xff] }
 0xa93   : > { %8919 = vmatpush3.bf16.msra.mxu0 %v8916_v55  ;;  %8025 = vmatprep.mubr.msk.f32.mxu0 %vm3531_vm4, %v6810_v20  ;;  %v6927_v20 = vld [vmem:[%s11668_s6 + $0x388] sm:$0xff] }
 0xa94   : > { %8921 = vmatprep.subr.bf16.mxu0 %v8920_v9  ;;  %v9080_v21 = vpack.c.bf16 %v6927_v20, %v6926_v50 }
 0xa9a   : > { %8026 = vmatmul.mubr.msk.f32.vlgmr.msra.gmra.mrb[18].mxu0 %vm3531_vm4, %v6811_v24  ;;  %v6929_v24 = vld [vmem:[%s11668_s6 + $0x398] sm:$0xff] }
 0xa9b   : > { %8923 = vmatpush3.bf16.msra.mxu0 %v8920_v9  ;;  %8044 = vmatprep.mubr.msk.f32.mxu0 %vm3314_vm1, %v11098_v41  ;;  %v6909_v9 = vld [vmem:[%s11666_s4 + $0xc8] sm:$0xff]  ;;  %v9084_v26 = vpack.c.bf16 %v6929_v24, %v6928_v22 }
 0xa9c   : > { %8925 = vmatprep.subr.bf16.mxu0 %v8924_v23 }
 0xa9f   : > { %8927 = vmatpush3.bf16.msra.mxu0 %v8924_v23  ;;  %v6923_v23 = vld [vmem:[%s11666_s4 + $0xd8] sm:$0xff] }
 0xaa0   : > { %8929 = vmatprep.subr.bf16.mxu0 %v8928_v28 }
 0xaa3   : > { %8931 = vmatpush3.bf16.msra.mxu0 %v8928_v28 }
 0xaa4   : > { %8933 = vmatprep.subr.bf16.mxu0 %v8932_v31 }
 0xaa7   : > { %8935 = vmatpush3.bf16.msra.mxu0 %v8932_v31  ;;  %v9092_v31 = vpack.c.bf16 %v6933_v30, %v6932_v29 }
 0xaaa   : > { %8045 = vmatmul.mubr.msk.f32.vlgmr.msra.gmra.mrb[22].mxu0 %vm3314_vm1, %v11104_v43 }
 0xaab   : > { %8051 = vmatprep.mubr.msk.f32.mxu0 %vm3531_vm4, %v6824_v32  ;;  %v6074_v32 = vld [vmem:[%s11667_s5] sm:$0xff] }
 0xaac   : > { %6078 = vperm.xlu1 %9190, %v6074_v32  }
 0xb7d   : > { %v8046_v48 = vpop.f32.mrb[22].mxu0 }
 0xb7e   : > { %v4449_v33 = vpop.f32.mrb[23].mxu0 }
 0xb7f   : > { %v8936_v34 = vpack.c.bf16 %v8046_v48, %v4449_v33  ;;  %v6075_v48 = vld [vmem:[%s11667_s5 + $0x8] sm:$0xff] }
 0xb80   : > { %6083 = vperm.xlu1 %9190, %v6075_v48  }
 0xb81   : > { %8937 = vmatprep.subr.bf16.mxu0 %v8936_v34 }
 0xb82   : > { %8939 = vmatpush3.bf16.msra.mxu0 %v8936_v34 }
 0xb83   : > { %8957 = vmatprep.subr.bf16.mxu0 %v11402_v58 }
 0xb85   : > { %8052 = vmatmul.mubr.msk.f32.vlgmr.msra.gmra.mrb[18].mxu0 %vm3531_vm4, %v6825_v18  ;;  %v6951_v18 = vld [vmem:[%s11666_s4 + $0xf8] sm:$0xff] }
 0xb86   : > { %8959 = vmatpush3.bf16.msra.mxu0 %v11402_v58  ;;  %8077 = vmatprep.mubr.msk.f32.mxu0 %vm3531_vm4, %v6838_v38  ;;  %v6884_v58 = vld [vmem:[%s11668_s6 + $0x2c0] sm:$0xff]  ;;  %v6079_v38 = vpop.permute.xlu1 %6078 }
 0xb87   : > { %8961 = vmatprep.subr.bf16.mxu0 %v8960_v39  ;;  %v9020_v62 = vpack.c.bf16 %v6885_v59, %v6884_v58 }
 0xb8d   : > { %8078 = vmatmul.mubr.msk.f32.vlgmr.msra.gmra.mrb[18].mxu0 %vm3531_vm4, %v6839_v42 }
 0xb8e   : > { %8963 = vmatpush3.bf16.msra.mxu0 %v8960_v39  ;;  %8096 = vmatprep.mubr.msk.f32.mxu0 %vm3314_vm1, %v11098_v41 }
 0xb8f   : > { %8965 = vmatprep.subr.bf16.mxu0 %v8964_v44 }
 0xb92   : > { %8967 = vmatpush3.bf16.msra.mxu0 %v8964_v44 }
 0xb93   : > { %8969 = vmatprep.subr.bf16.mxu0 %v8968_v47 }
 0xb96   : > { %8971 = vmatpush3.bf16.msra.mxu0 %v8968_v47 }
 0xb97   : > { %8973 = vmatprep.subr.bf16.mxu0 %v8972_v51 }
 0xb9a   : > { %8975 = vmatpush3.bf16.msra.mxu0 %v8972_v51 }
 0xb9d   : > { %8097 = vmatmul.mubr.msk.f32.vlgmr.msra.gmra.mrb[24].mxu0 %vm3314_vm1, %v11104_v43 }
 0xb9e   : > { %8103 = vmatprep.mubr.msk.f32.mxu0 %vm3531_vm4, %v6852_v52 }
 0xbff   : > { %v6084_v40 = vpop.permute.xlu1 %6083 }
 0xc70   : > { %v8098_v53 = vpop.f32.mrb[24].mxu0 }
 0xc71   : > { %v4789_v54 = vpop.f32.mrb[25].mxu0 }
 0xc72   : > { %v8976_v55 = vpack.c.bf16 %v8098_v53, %v4789_v54 }
 0xc74   : > { %8977 = vmatprep.subr.bf16.mxu0 %v8976_v55 }
 0xc75   : > { %8979 = vmatpush3.bf16.msra.mxu0 %v8976_v55 }
 0xc76   : > { %8997 = vmatprep.subr.bf16.mxu0 %v11404_v61 }
 0xc78   : > { %8104 = vmatmul.mubr.msk.f32.vlgmr.msra.gmra.mrb[18].mxu0 %vm3531_vm4, %v6853_v56 }
 0xc79   : > { %8999 = vmatpush3.bf16.msra.mxu0 %v11404_v61  ;;  %8129 = vmatprep.mubr.msk.f32.mxu0 %vm3531_vm4, %v6866_v57  ;;  %v6880_v61 = vld [vmem:[%s11666_s4 + $0xa0] sm:$0xff] }
 0xc7a   : > { %9017 = vmatprep.subr.bf16.mxu0 %v11406_v0 }
 0xc80   : > { %8130 = vmatmul.mubr.msk.f32.vlgmr.msra.gmra.mrb[18].mxu0 %vm3531_vm4, %v6867_v60 }
 0xc81   : > { %9019 = vmatpush3.bf16.msra.mxu0 %v11406_v0  ;;  %8155 = vmatprep.mubr.msk.f32.mxu0 %vm3531_vm4, %v6880_v61  ;;  %v6888_v0 = vld [vmem:[%s11668_s6 + $0x2e0] sm:$0xff] }
 0xc82   : > { %9021 = vmatprep.subr.bf16.mxu0 %v9020_v62  ;;  %v9028_v6 = vpack.c.bf16 %v6889_v5, %v6888_v0 }
 0xc88   : > { %8156 = vmatmul.mubr.msk.f32.vlgmr.msra.gmra.mrb[18].mxu0 %vm3531_vm4, %v6881_v2 }
 0xc89   : > { %9023 = vmatpush3.bf16.msra.mxu0 %v9020_v62  ;;  %8174 = vmatprep.mubr.msk.f32.mxu0 %vm3314_vm1, %v11098_v41 }
 0xc8a   : > { %9025 = vmatprep.subr.bf16.mxu0 %v9024_v4 }
 0xc8d   : > { %9027 = vmatpush3.bf16.msra.mxu0 %v9024_v4 }
 0xc8e   : > { %9029 = vmatprep.subr.bf16.mxu0 %v9028_v6 }
 0xc91   : > { %9031 = vmatpush3.bf16.msra.mxu0 %v9028_v6 }
 0xc92   : > { %9033 = vmatprep.subr.bf16.mxu0 %v9032_v12 }
 0xc95   : > { %9035 = vmatpush3.bf16.msra.mxu0 %v9032_v12 }
 0xc98   : > { %8175 = vmatmul.mubr.msk.f32.vlgmr.msra.gmra.mrb[26].mxu0 %vm3314_vm1, %v11104_v43 }
 0xc99   : > { %8181 = vmatprep.mubr.msk.f32.mxu0 %vm3531_vm4, %v6894_v13 }
 0xd6b   : > { %v8176_v14 = vpop.f32.mrb[26].mxu0 }
 0xd6c   : > { %v5299_v15 = vpop.f32.mrb[27].mxu0 }
 0xd6d   : > { %v9036_v16 = vpack.c.bf16 %v8176_v14, %v5299_v15 }
 0xd6f   : > { %9037 = vmatprep.subr.bf16.mxu0 %v9036_v16 }
 0xd70   : > { %9039 = vmatpush3.bf16.msra.mxu0 %v9036_v16 }
 0xd71   : > { %9057 = vmatprep.subr.bf16.mxu0 %v11408_v3 }
 0xd73   : > { %8182 = vmatmul.mubr.msk.f32.vlgmr.msra.gmra.mrb[18].mxu0 %vm3531_vm4, %v6895_v17 }
 0xd74   : > { %9059 = vmatpush3.bf16.msra.mxu0 %v11408_v3  ;;  %8207 = vmatprep.mubr.msk.f32.mxu0 %vm3531_vm4, %v6908_v19  ;;  %v6922_v3 = vld [vmem:[%s11666_s4 + $0xd0] sm:$0xff] }
 0xd75   : > { %9077 = vmatprep.subr.bf16.mxu0 %v11413_v7 }
 0xd7b   : > { %8208 = vmatmul.mubr.msk.f32.vlgmr.msra.gmra.mrb[18].mxu0 %vm3531_vm4, %v6909_v9 }
 0xd7c   : > { %9079 = vmatpush3.bf16.msra.mxu0 %v11413_v7  ;;  %8233 = vmatprep.mubr.msk.f32.mxu0 %vm3531_vm4, %v6922_v3  ;;  %v6930_v7 = vld [vmem:[%s11668_s6 + $0x3a0] sm:$0xff] }
 0xd7d   : > { %9081 = vmatprep.subr.bf16.mxu0 %v9080_v21  ;;  %v9088_v28 = vpack.c.bf16 %v6931_v27, %v6930_v7 }
 0xd83   : > { %8234 = vmatmul.mubr.msk.f32.vlgmr.msra.gmra.mrb[18].mxu0 %vm3531_vm4, %v6923_v23 }
 0xd84   : > { %9083 = vmatpush3.bf16.msra.mxu0 %v9080_v21  ;;  %8252 = vmatprep.mubr.msk.f32.mxu0 %vm3314_vm1, %v11098_v41  ;;  %v6936_v41 = vld [vmem:[%s11666_s4 + $0xe0] sm:$0xff] }
 0xd85   : > { %9085 = vmatprep.subr.bf16.mxu0 %v9084_v26 }
 0xd88   : > { %9087 = vmatpush3.bf16.msra.mxu0 %v9084_v26 }
 0xd89   : > { %9089 = vmatprep.subr.bf16.mxu0 %v9088_v28 }
 0xd8c   : > { %9091 = vmatpush3.bf16.msra.mxu0 %v9088_v28 }
 0xd8d   : > { %9093 = vmatprep.subr.bf16.mxu0 %v9092_v31 }
 0xd90   : > { %9095 = vmatpush3.bf16.msra.mxu0 %v9092_v31 }
 0xd93   : > { %8253 = vmatmul.mubr.msk.f32.vlgmr.msra.gmra.mrb[28].mxu0 %vm3314_vm1, %v11104_v43  ;;  %v6937_v43 = vld [vmem:[%s11666_s4 + $0xe8] sm:$0xff] }
 0xd94   : > { %8259 = vmatprep.mubr.msk.f32.mxu0 %vm3531_vm4, %v6936_v41 }
 0xe66   : > { %v8254_v33 = vpop.f32.mrb[28].mxu0 }
 0xe67   : > { %v5809_v34 = vpop.f32.mrb[29].mxu0 }
 0xe68   : > { %v9096_v36 = vpack.c.bf16 %v8254_v33, %v5809_v34 }
 0xe6a   : > { %9097 = vmatprep.subr.bf16.mxu0 %v9096_v36 }
 0xe6b   : > { %9099 = vmatpush3.bf16.msra.mxu0 %v9096_v36 }
 0xe6c   : > { %9117 = vmatprep.subr.bf16.mxu0 %v11416_v11 }
 0xe6e   : > { %8260 = vmatmul.mubr.msk.f32.vlgmr.msra.gmra.mrb[18].mxu0 %vm3531_vm4, %v6937_v43 }
 0xe6f   : > { %9119 = vmatpush3.bf16.msra.mxu0 %v11416_v11  ;;  %8285 = vmatprep.mubr.msk.f32.mxu0 %vm3531_vm4, %v6950_v37 }
 0xe76   : > { %8286 = vmatmul.mubr.msk.f32.vlgmr.msra.gmra.mrb[18].mxu0 %vm3531_vm4, %v6951_v18 }
 0xf49   : > { %v8287_v39 = vpop.f32.mrb[18].mxu0 }
 0xf4a   : > { %v6087_v25 = vadd.f32 %v8287_v39, %v6084_v40  ;;  %v6063_v42 = vpop.f32.mrb[19].mxu0 }
 0xf4b   : > { %v6086_v44 = vadd.f32 %v6079_v38, %v6063_v42 }
 0xf4c   : > { %v6091_v45 = vsel %vm3531_vm4, %v6087_v25, 0.0  ;;  %v6097_v49 = vmul.f32 %v6087_v25, %v6087_v25 }
 0xf4d   : > { %6092 = vadd.xlane.f32.xlu0 %v6091_v45  ;;  %v6088_v46 = vsel %vm3531_vm4, %v6086_v44, 0.0  ;;  %v6096_v11 = vmul.f32 %v6086_v44, %v6086_v44 }
 0xf4e   : > { %6089 = vadd.xlane.f32.xlu1 %v6088_v46  ;;  %v6101_v35 = vsel %vm3531_vm4, %v6097_v49, 0.0 }
 0xf4f   : > { %v6098_v47 = vsel %vm3531_vm4, %v6096_v11, 0.0 }
 0xf51   : > { %6099 = vadd.xlane.f32.xlu0 %v6098_v47 }
 0xf55   : > { %6102 = vadd.xlane.f32.xlu0 %v6101_v35 }
 0xfda   : > { %v6093_v51 = vpop.xlane.xlu0 %6092 }
 0xfdb   : > { %v6090_v52 = vpop.xlane.xlu1 %6089  ;;  %v6095_v56 = vmul.f32 0.0625, %v6093_v51 }
 0xfdc   : > { %v6094_v53 = vmul.f32 0.0625, %v6090_v52 }
 0xfdd   : > { %v6107_v60 = vmul.f32 %v6095_v56, %v6095_v56  ;;  %v6113_v8 = vsub.f32 %v6087_v25, %v6095_v56 }
 0xfde   : > { %v6106_v54 = vmul.f32 %v6094_v53, %v6094_v53  ;;  %v6100_v55 = vpop.xlane.xlu0 %6099  ;;  %v6112_v0 = vsub.f32 %v6086_v44, %v6094_v53 }
 0xfdf   : > { %v6104_v57 = vmul.f32 0.0625, %v6100_v55 }
 0xfe1   : > { %v6108_v58 = vsub.f32 %v6104_v57, %v6106_v54 }
 0xfe2   : > { %v6103_v59 = vpop.xlane.xlu0 %6102 }
 0xfe3   : > { %v6110_v61 = vmax.f32 %v6108_v58, 0.0  ;;  %v6105_v62 = vmul.f32 0.0625, %v6103_v59 }
 0xfe5   : > { %v6114_v63 = vadd.f32 1e-05, %v6110_v61  ;;  %v6109_v1 = vsub.f32 %v6105_v62, %v6107_v60 }
 0xfe7   : > { %9195 = vrsqrt.f32 %v6114_v63  ;;  %v6111_v2 = vmax.f32 %v6109_v1, 0.0 }
 0xfe9   : > { %v6115_v4 = vadd.f32 1e-05, %v6111_v2 }
 0xfeb   : > { %9197 = vrsqrt.f32 %v6115_v4 }
 0xff1   : > { %v9196_v5 = vpop.eup %9195 }
 0xff2   : > { %v6118_v6 = vmul.f32 %v9196_v5, %v6112_v0 }
 0xff4   : > { %v6954_v10 = vmul.f32 -1.442695, %v6118_v6 }
 0xff5   : > { %v9198_v12 = vpop.eup %9197 }
 0xff6   : > { %9199 = vpow2.f32 %v6954_v10  ;;  %v6119_v13 = vmul.f32 %v9198_v12, %v6113_v8 }
 0xff8   : > { %v6955_v14 = vmul.f32 -1.442695, %v6119_v13 }
 0xffa   : > { %9201 = vpow2.f32 %v6955_v14 }
0x1000   : > { %v9200_v15 = vpop.eup %9199 }
0x1001   : > { %v6126_v16 = vadd.f32 1.0, %v9200_v15 }
0x1003   : > { %9203 = vrcp.f32 %v6126_v16 }
0x1004   : > { %v9202_v17 = vpop.eup %9201 }
0x1005   : > { %v6127_v19 = vadd.f32 1.0, %v9202_v17 }
0x1007   : > { %9205 = vrcp.f32 %v6127_v19 }
0x100d   : > { %v9204_v50 = vpop.eup %9203 }
0x100e   : > { %6132 = vst.msk [vmem:[%s278_s19] sm:$0xff] %vm3531_vm4, %v9204_v50 }
0x1011   : > { %v9206_v20 = vpop.eup %9205 }
0x1012   : > { %6133 = vst.msk [vmem:[%s278_s19 + $0x8] sm:$0xff] %vm3531_vm4, %v9206_v20 }
0x1013 PF: > { %s17_s24 = sadd.s32 1, %s9217_s24  }
0x1014   : > { %p14_p4 = scmp.ge.s32.totalorder %s17_s24, 4  }
0x1016   :  { %16 = sbr.rel (!%p14_p4) target bundleno = 1 (0x1), region = 138 }

</bundles_post_ra>
